<compile_context>
chip_gen: v5e
topology: v5e:2x2
jax: 0.10.0
libtpu: 0.0.40
codegen_flags: <defaults>
</compile_context>

<pallas_src>
import functools

import jax
import jax.numpy as jnp
import numpy as np
from jax import lax
from jax.experimental import pallas as pl
from jax.experimental.pallas import tpu as pltpu

EPS = 1e-5        # nn.LayerNorm default
LANE = 128
SUBLANE = 8

# Row layout of the packed (8, Dp) per-layer parameter array.
_ROW_BP, _ROW_G1, _ROW_BE1, _ROW_BF2, _ROW_G2, _ROW_BE2 = 0, 1, 2, 3, 4, 5


def _round_up(n, m):
    return ((n + m - 1) // m) * m


def _pad_to(a, shape):
    out = jnp.zeros(shape, a.dtype)
    return out.at[tuple(slice(0, s) for s in a.shape)].set(a)


def _vmem_capacity_bytes():
    """Generation-aware VMEM capacity (64 MiB on v7x, 128 MiB on v5e/v6e)."""
    try:
        return int(pltpu.get_tpu_info().vmem_capacity_bytes)
    except Exception:
        return 128 * 2**20


# ----------------------------------------------------------------------------
# Kernel: one TransformerBlock on a (bm, Dp) row tile.
# Grid = (row_blocks [parallel], H_blocks [arbitrary, reduction]).
# ----------------------------------------------------------------------------
def _block_kernel(d_real,
                  x_ref, wpT_ref, prm_ref, w1T_ref, bf1_ref, w2T_ref,
                  o_ref, ln1_f32_ref, ln1_bf16_ref, acc_ref):
    h = pl.program_id(1)
    nh = pl.num_programs(1)
    dp = x_ref.shape[-1]
    inv_d = 1.0 / float(d_real)

    # Lane mask for the real (unpadded) embed dim; padded activation and
    # weight/bias lanes are exactly zero (see prepare_layer / forward), so the
    # masked statistics equal the exact LayerNorm over d_real features.
    lane = lax.broadcasted_iota(jnp.int32, (1, dp), 1)
    mask = (lane < d_real).astype(jnp.float32)

    def masked_layernorm(v, g, b):
        mu = jnp.sum(v, axis=-1, keepdims=True) * inv_d
        diff = (v - mu) * mask
        var = jnp.sum(diff * diff, axis=-1, keepdims=True) * inv_d
        return diff * lax.rsqrt(var + EPS) * g + b

    @pl.when(h == 0)
    def _():
        x_bf = x_ref[...]                       # bf16 inter-layer activations
        x = x_bf.astype(jnp.float32)
        # MultiHeadAttention (effective): proj(x).  bf16 MXU, f32 accumulate.
        a = jnp.dot(x_bf, wpT_ref[...], preferred_element_type=jnp.float32)
        a = a + prm_ref[_ROW_BP:_ROW_BP + 1, :]
        h1 = a + x                               # attention(x) + x
        ln1 = masked_layernorm(h1, prm_ref[_ROW_G1:_ROW_G1 + 1, :],
                               prm_ref[_ROW_BE1:_ROW_BE1 + 1, :])
        ln1_f32_ref[...] = ln1                   # f32 copy for the residual
        ln1_bf16_ref[...] = ln1.astype(jnp.bfloat16)   # cast once, reused nh times
        acc_ref[...] = jnp.zeros_like(acc_ref)

    # FFN, tiled over the hidden dim:
    #   acc += relu(ln1 @ W1T[:, h] + b1[h]) @ W2T[h, :]
    f1 = jnp.dot(ln1_bf16_ref[...], w1T_ref[...],
                 preferred_element_type=jnp.float32) + bf1_ref[...]
    f1 = jnp.maximum(f1, 0.0)
    acc_ref[...] += jnp.dot(f1.astype(jnp.bfloat16), w2T_ref[...],
                            preferred_element_type=jnp.float32)

    @pl.when(h == nh - 1)
    def _():
        h2 = acc_ref[...] + prm_ref[_ROW_BF2:_ROW_BF2 + 1, :] + ln1_f32_ref[...]
        o_ref[...] = masked_layernorm(
            h2, prm_ref[_ROW_G2:_ROW_G2 + 1, :],
            prm_ref[_ROW_BE2:_ROW_BE2 + 1, :]).astype(o_ref.dtype)


def _transformer_block_padded(x2p, lp, *, bm, bh, d_real):
    """One TransformerBlock on an already padded bf16 (Mp, Dp) activation matrix."""
    Mp, Dp = x2p.shape
    Hp = lp["w1T"].shape[1]
    assert Mp % bm == 0 and Hp % bh == 0 and Dp % LANE == 0
    nh = Hp // bh

    cap = _vmem_capacity_bytes()

    # Constant-index operands (index_map always (0, 0)) gain nothing from
    # double-buffering.  Single-buffer them when their double-buffered footprint
    # would pressure VMEM (large Dp; critical on v7x's 64 MiB).
    const_bytes = Dp * Dp * 2 + 8 * Dp * 4          # wpT (bf16) + packed params (f32)
    single_buffer_const = 2 * const_bytes > cap // 4
    const_kwargs = dict(pipeline_mode=pl.Buffered(1)) if single_buffer_const else {}

    def const_spec(shape):
        return pl.BlockSpec(shape, lambda i, h: (0, 0), **const_kwargs)

    # Explicit VMEM budget: residents (1x or 2x) + double-buffered streamed
    # blocks (bf16 x/out, bf16 FFN weight chunks, f32 b1 chunk) + f32/bf16 scratch.
    buf = 1 if single_buffer_const else 2
    stream_bytes = 2 * (2 * bm * Dp * 2 + Dp * bh * 2 + bh * 4 + bh * Dp * 2)
    scratch_bytes = bm * Dp * (4 + 2 + 4)
    est = buf * const_bytes + stream_bytes + scratch_bytes
    vmem_limit = int(min(0.75 * cap, max(32 * 2**20, 2 * est)))

    # Advisory cost estimate so XLA schedules the L unrolled calls sensibly.
    ffn_passes = (Mp // bm) if nh > 1 else 1        # weight re-streams per row block
    flops = int(2 * Mp * Dp * (Dp + 2 * Hp) + 10 * Mp * Dp)
    bytes_accessed = int(2 * Mp * Dp * 2            # activations in + out (bf16)
                         + Dp * Dp * 2               # proj weight (fetched once)
                         + 2 * Dp * Hp * 2 * ffn_passes
                         + (8 * Dp + Hp) * 4)
    cost = pl.CostEstimate(flops=flops, transcendentals=2 * Mp,
                           bytes_accessed=bytes_accessed)

    return pl.pallas_call(
        functools.partial(_block_kernel, d_real),
        out_shape=jax.ShapeDtypeStruct((Mp, Dp), jnp.bfloat16),
        grid_spec=pltpu.PrefetchScalarGridSpec(
            num_scalar_prefetch=0,
            grid=(Mp // bm, nh),
            in_specs=[
                pl.BlockSpec((bm, Dp), lambda i, h: (i, 0)),    # x rows (bf16)
                const_spec((Dp, Dp)),                           # proj W^T (bf16)
                const_spec((8, Dp)),                            # packed bias/gamma/beta (f32)
                pl.BlockSpec((Dp, bh), lambda i, h: (0, h)),    # FFN W1^T chunk (bf16)
                pl.BlockSpec((1, bh), lambda i, h: (0, h)),     # FFN b1 chunk (f32)
                pl.BlockSpec((bh, Dp), lambda i, h: (h, 0)),    # FFN W2^T chunk (bf16)
            ],
            out_specs=pl.BlockSpec((bm, Dp), lambda i, h: (i, 0)),
            scratch_shapes=[pltpu.VMEM((bm, Dp), jnp.float32),   # ln1 (f32, residual)
                            pltpu.VMEM((bm, Dp), jnp.bfloat16),  # ln1 (bf16, matmul LHS)
                            pltpu.VMEM((bm, Dp), jnp.float32)],  # FFN accumulator
        ),
        compiler_params=pltpu.CompilerParams(
            dimension_semantics=("parallel", "arbitrary"),
            vmem_limit_bytes=vmem_limit),
        cost_estimate=cost,
    )(x2p, lp["wpT"], lp["prm"], lp["w1T"], lp["bf1"], lp["w2T"])


# ----------------------------------------------------------------------------
# Host-side parameter preparation (transpose / pad / pack / bf16 cast — once).
# ----------------------------------------------------------------------------
def prepare_layer(p, Dp, Hp):
    prm = jnp.zeros((8, Dp), jnp.float32)
    for name, r in (("bp", _ROW_BP), ("g1", _ROW_G1), ("be1", _ROW_BE1),
                    ("bf2", _ROW_BF2), ("g2", _ROW_G2), ("be2", _ROW_BE2)):
        v = p[name].astype(jnp.float32)
        prm = prm.at[r, :v.shape[0]].set(v)
    return {
        "wpT": _pad_to(p["wp"].T.astype(jnp.float32), (Dp, Dp)).astype(jnp.bfloat16),
        "prm": prm,
        "w1T": _pad_to(p["w1"].T.astype(jnp.float32), (Dp, Hp)).astype(jnp.bfloat16),
        "bf1": _pad_to(p["bf1"].reshape(1, -1).astype(jnp.float32), (1, Hp)),
        "w2T": _pad_to(p["w2"].T.astype(jnp.float32), (Hp, Dp)).astype(jnp.bfloat16),
    }


def make_transformer(raw_layers, embed_dim, hidden_dim, *,
                     block_rows=512, block_hidden=None):
    """Builds a jitted forward for the L-layer Transformer."""
    assert block_rows % SUBLANE == 0
    Dp = _round_up(embed_dim, LANE)
    Hp_full = _round_up(hidden_dim, LANE)
    cap = _vmem_capacity_bytes()

    if block_hidden is None:
        # Full FFN-weight VMEM residency when it fits comfortably (then the
        # hidden axis has one step, the chunk index is constant, and W1/W2 are
        # fetched once for the whole call instead of once per row block).
        if 2 * (2 * Dp * Hp_full * 2) <= cap // 3:
            block_hidden = Hp_full
        else:
            block_hidden = 512        # multiple of 256: fills the 256-wide MXU on v6e/v7x
    assert block_hidden % LANE == 0
    bh = min(block_hidden, Hp_full)
    Hp = _round_up(hidden_dim, bh)
    layers = [prepare_layer(p, Dp, Hp) for p in raw_layers]

    def forward(x):
        B, T, N, D = x.shape
        assert D == embed_dim
        M = B * T * N
        bm = min(block_rows, _round_up(M, 16))
        # v7x has 2 TensorCores and the "parallel" row axis shards across them:
        # guarantee at least 2 row blocks (down to bm=128).
        while bm >= 256 and _round_up(M, bm) // bm < 2:
            bm //= 2
        Mp = _round_up(M, bm)
        # Inter-layer activations carried in bf16 (LN/residual math stays f32).
        xp = jnp.zeros((Mp, Dp), jnp.bfloat16).at[:M, :D].set(
            x.reshape(M, D).astype(jnp.bfloat16))
        for lp in layers:
            xp = _transformer_block_padded(xp, lp, bm=bm, bh=bh, d_real=D)
        return xp[:M, :D].reshape(B, T, N, D).astype(x.dtype)

    return jax.jit(forward)


# ----------------------------------------------------------------------------
# Pure-JAX f32 reference mirroring the PyTorch forward (as written).
# ----------------------------------------------------------------------------
def reference_forward(x, raw_layers):
    B, T, N, D = x.shape
    h = x.reshape(-1, D).astype(jnp.float32)

    def ln(v, g, b):
        mu = jnp.mean(v, axis=-1, keepdims=True)
        var = jnp.mean(jnp.square(v - mu), axis=-1, keepdims=True)
        return (v - mu) / jnp.sqrt(var + EPS) * g + b

    for p in raw_layers:
        a = h @ p["wp"].T + p["bp"]                 # attention(x) == proj(x)
        h1 = a + h
        ln1 = ln(h1, p["g1"], p["be1"])
        f = jnp.maximum(ln1 @ p["w1"].T + p["bf1"], 0.0) @ p["w2"].T + p["bf2"]
        h = ln(f + ln1, p["g2"], p["be2"])
    return h.reshape(B, T, N, D)


def init_params(key, embed_dim, expansion_factor):
    H = embed_dim * expansion_factor
    ks = jax.random.split(key, 8)
    n = lambda k, shape, s=0.02: (s * jax.random.normal(k, shape)).astype(jnp.float32)
    return {
        "wp": n(ks[0], (embed_dim, embed_dim)),          # attention.proj.weight
        "bp": n(ks[1], (embed_dim,)),                    # attention.proj.bias
        "g1": 1.0 + n(ks[2], (embed_dim,), 0.01),        # norm1.weight
        "be1": n(ks[3], (embed_dim,), 0.01),             # norm1.bias
        "w1": n(ks[4], (H, embed_dim)),                  # feed_forward[0].weight
        "bf1": n(ks[5], (H,)),                           # feed_forward[0].bias
        "w2": n(ks[6], (embed_dim, H)),                  # feed_forward[2].weight
        "bf2": n(ks[7], (embed_dim,)),                   # feed_forward[2].bias
        "g2": jnp.ones((embed_dim,), jnp.float32),       # norm2.weight
        "be2": jnp.zeros((embed_dim,), jnp.float32),     # norm2.bias
    }
    # TODO(synk): qkv weights of MultiHeadAttention are not materialized — the
    # `if x.dim == 4` bug makes the qkv/softmax path dead code (no numerical effect).
    # TODO(synk): dropout layers treated as identity (eval mode only).


if __name__ == "__main__":
    # Small [B, T, N, D] consistent with the module's 4-D video-frame input.
    B, T, N, D = 2, 2, 128, 128
    n_heads, expansion_factor, L = 4, 4, 2
    assert D % n_heads == 0
    H = D * expansion_factor                             # 512

    key = jax.random.PRNGKey(0)
    keys = jax.random.split(key, L + 1)
    x = jax.random.normal(keys[0], (B, T, N, D), dtype=jnp.float32)
    raw_layers = [init_params(keys[1 + i], D, expansion_factor) for i in range(L)]

    ref = reference_forward(x, raw_layers)

    # Config 1 (default): FFN weights VMEM-resident (single hidden step),
    # bm auto-halved to 256 so there are 2 parallel row blocks for M = 512.
    fwd_resident = make_transformer(raw_layers, D, H)
    out1 = jax.block_until_ready(fwd_resident(x))
    assert out1.shape == (B, T, N, D)
    # Tolerance sized for bf16 MXU operands / bf16 activation carry;
    # LayerNorm and residual math stays f32.
    np.testing.assert_allclose(np.asarray(out1), np.asarray(ref), rtol=2e-2, atol=2e-2)

    # Config 2: force the H-tiled reduction path (2 hidden chunks of 256 lanes).
    fwd_tiled = make_transformer(raw_layers, D, H, block_rows=256, block_hidden=256)
    out2 = jax.block_until_ready(fwd_tiled(x))
    np.testing.assert_allclose(np.asarray(out2), np.asarray(ref), rtol=2e-2, atol=2e-2)

    print("KERNEL_OK")
</pallas_src>

<mosaic_0001>
module attributes {stable_mosaic.version = 11 : i64} {
  func.func @_block_kernel(%arg0: i32, %arg1: i32, %arg2: memref<256x128xbf16, #tpu.memory_space<vmem>>, %arg3: memref<128x128xbf16, #tpu.memory_space<vmem>>, %arg4: memref<8x128xf32, #tpu.memory_space<vmem>>, %arg5: memref<128x512xbf16, #tpu.memory_space<vmem>>, %arg6: memref<1x512xf32, #tpu.memory_space<vmem>>, %arg7: memref<512x128xbf16, #tpu.memory_space<vmem>>, %arg8: memref<256x128xbf16, #tpu.memory_space<vmem>>, %arg9: memref<256x128xf32, #tpu.memory_space<vmem>>, %arg10: memref<256x128xbf16, #tpu.memory_space<vmem>>, %arg11: memref<256x128xf32, #tpu.memory_space<vmem>>) attributes {dimension_semantics = [#tpu.dimension_semantics<parallel>, #tpu.dimension_semantics<arbitrary>], iteration_bounds = array<i64: 2, 1>, scalar_prefetch = 0 : i64, scratch_operands = 3 : i64, tpu.core_type = #tpu.core_type<tc>, window_params = [{transform_indices = @transform_0, window_bounds = array<i64: 256, 128>}, {pipeline_mode = #tpu.pipeline_mode<synchronous>, transform_indices = @transform_1, window_bounds = array<i64: 128, 128>}, {pipeline_mode = #tpu.pipeline_mode<synchronous>, transform_indices = @transform_2, window_bounds = array<i64: 8, 128>}, {transform_indices = @transform_3, window_bounds = array<i64: 128, 512>}, {transform_indices = @transform_4, window_bounds = array<i64: 1, 512>}, {transform_indices = @transform_5, window_bounds = array<i64: 512, 128>}, {transform_indices = @transform_6, window_bounds = array<i64: 256, 128>}]} {
    %0 = tpu.iota {dimensions = array<i32: 1>} : vector<1x128xi32>
    %c128_i32 = arith.constant 128 : i32
    %1 = vector.broadcast %c128_i32 : i32 to vector<1x128xi32>
    %2 = arith.cmpi slt, %0, %1 : vector<1x128xi32>
    %3 = arith.extui %2 : vector<1x128xi1> to vector<1x128xi32>
    %4 = arith.sitofp %3 : vector<1x128xi32> to vector<1x128xf32>
    %c0_i32 = arith.constant 0 : i32
    %5 = arith.cmpi eq, %arg1, %c0_i32 : i32
    %6 = arith.extui %5 : i1 to i32
    %c0_i32_0 = arith.constant 0 : i32
    %7 = arith.cmpi ne, %6, %c0_i32_0 : i32
    scf.if %7 {
      %c0_16 = arith.constant 0 : index
      %c0_17 = arith.constant 0 : index
      %25 = vector.load %arg2[%c0_16, %c0_17] : memref<256x128xbf16, #tpu.memory_space<vmem>>, vector<256x128xbf16>
      %26 = arith.extf %25 : vector<256x128xbf16> to vector<256x128xf32>
      %c0_18 = arith.constant 0 : index
      %c0_19 = arith.constant 0 : index
      %27 = vector.load %arg3[%c0_18, %c0_19] : memref<128x128xbf16, #tpu.memory_space<vmem>>, vector<128x128xbf16>
      %cst_20 = arith.constant dense<0.000000e+00> : vector<256x128xf32>
      %28 = tpu.matmul %25, %27, %cst_20 {dimension_numbers = #tpu.dot_dimension_numbers<[1], [0], [0], [1], [0, 0, 1, 1], [], []>} : vector<256x128xbf16>, vector<128x128xbf16>, vector<256x128xf32> -> vector<256x128xf32>
      %c0_21 = arith.constant 0 : index
      %c0_22 = arith.constant 0 : index
      %29 = vector.load %arg4[%c0_21, %c0_22] : memref<8x128xf32, #tpu.memory_space<vmem>>, vector<1x128xf32>
      %30 = vector.broadcast %29 : vector<1x128xf32> to vector<256x128xf32>
      %31 = arith.addf %28, %30 : vector<256x128xf32>
      %32 = arith.addf %31, %26 : vector<256x128xf32>
      %c1 = arith.constant 1 : index
      %c0_23 = arith.constant 0 : index
      %33 = vector.load %arg4[%c1, %c0_23] : memref<8x128xf32, #tpu.memory_space<vmem>>, vector<1x128xf32>
      %c2 = arith.constant 2 : index
      %c0_24 = arith.constant 0 : index
      %34 = vector.load %arg4[%c2, %c0_24] : memref<8x128xf32, #tpu.memory_space<vmem>>, vector<1x128xf32>
      %cst_25 = arith.constant dense<0.000000e+00> : vector<256xf32>
      %35 = vector.multi_reduction <add>, %32, %cst_25 [1] : vector<256x128xf32> to vector<256xf32>
      %36 = vector.shape_cast %35 : vector<256xf32> to vector<256x1xf32>
      %cst_26 = arith.constant 7.812500e-03 : f32
      %37 = vector.broadcast %cst_26 : f32 to vector<256x1xf32>
      %38 = arith.mulf %36, %37 : vector<256x1xf32>
      %39 = vector.broadcast %38 : vector<256x1xf32> to vector<256x128xf32>
      %40 = arith.subf %32, %39 : vector<256x128xf32>
      %41 = vector.broadcast %4 : vector<1x128xf32> to vector<256x128xf32>
      %42 = arith.mulf %40, %41 : vector<256x128xf32>
      %43 = arith.mulf %42, %42 : vector<256x128xf32>
      %cst_27 = arith.constant dense<0.000000e+00> : vector<256xf32>
      %44 = vector.multi_reduction <add>, %43, %cst_27 [1] : vector<256x128xf32> to vector<256xf32>
      %45 = vector.shape_cast %44 : vector<256xf32> to vector<256x1xf32>
      %cst_28 = arith.constant 7.812500e-03 : f32
      %46 = vector.broadcast %cst_28 : f32 to vector<256x1xf32>
      %47 = arith.mulf %45, %46 : vector<256x1xf32>
      %cst_29 = arith.constant 9.99999974E-6 : f32
      %48 = vector.broadcast %cst_29 : f32 to vector<256x1xf32>
      %49 = arith.addf %47, %48 : vector<256x1xf32>
      %50 = math.rsqrt %49 : vector<256x1xf32>
      %51 = vector.broadcast %50 : vector<256x1xf32> to vector<256x128xf32>
      %52 = arith.mulf %42, %51 : vector<256x128xf32>
      %53 = vector.broadcast %33 : vector<1x128xf32> to vector<256x128xf32>
      %54 = arith.mulf %52, %53 : vector<256x128xf32>
      %55 = vector.broadcast %34 : vector<1x128xf32> to vector<256x128xf32>
      %56 = arith.addf %54, %55 : vector<256x128xf32>
      %c0_30 = arith.constant 0 : index
      %c0_31 = arith.constant 0 : index
      %57 = vector.load %arg9[%c0_30, %c0_31] : memref<256x128xf32, #tpu.memory_space<vmem>>, vector<256x128xf32>
      tpu.vector_store %arg9[%c0_30, %c0_31], %56 {strides = array<i32>} : memref<256x128xf32, #tpu.memory_space<vmem>>, vector<256x128xf32>,
      %58 = arith.truncf %56 : vector<256x128xf32> to vector<256x128xbf16>
      %c0_32 = arith.constant 0 : index
      %c0_33 = arith.constant 0 : index
      %59 = vector.load %arg10[%c0_32, %c0_33] : memref<256x128xbf16, #tpu.memory_space<vmem>>, vector<256x128xbf16>
      tpu.vector_store %arg10[%c0_32, %c0_33], %58 {strides = array<i32>} : memref<256x128xbf16, #tpu.memory_space<vmem>>, vector<256x128xbf16>,
      %cst_34 = arith.constant 0.000000e+00 : f32
      %60 = vector.broadcast %cst_34 : f32 to vector<256x128xf32>
      %c0_35 = arith.constant 0 : index
      %c0_36 = arith.constant 0 : index
      %61 = vector.load %arg11[%c0_35, %c0_36] : memref<256x128xf32, #tpu.memory_space<vmem>>, vector<256x128xf32>
      tpu.vector_store %arg11[%c0_35, %c0_36], %60 {strides = array<i32>} : memref<256x128xf32, #tpu.memory_space<vmem>>, vector<256x128xf32>,
    } else {
    }
    %c0 = arith.constant 0 : index
    %c0_1 = arith.constant 0 : index
    %8 = vector.load %arg10[%c0, %c0_1] : memref<256x128xbf16, #tpu.memory_space<vmem>>, vector<256x128xbf16>
    %c0_2 = arith.constant 0 : index
    %c0_3 = arith.constant 0 : index
    %9 = vector.load %arg5[%c0_2, %c0_3] : memref<128x512xbf16, #tpu.memory_space<vmem>>, vector<128x512xbf16>
    %cst = arith.constant dense<0.000000e+00> : vector<256x512xf32>
    %10 = tpu.matmul %8, %9, %cst {dimension_numbers = #tpu.dot_dimension_numbers<[1], [0], [0], [1], [0, 0, 1, 1], [], []>} : vector<256x128xbf16>, vector<128x512xbf16>, vector<256x512xf32> -> vector<256x512xf32>
    %c0_4 = arith.constant 0 : index
    %c0_5 = arith.constant 0 : index
    %11 = vector.load %arg6[%c0_4, %c0_5] : memref<1x512xf32, #tpu.memory_space<vmem>>, vector<1x512xf32>
    %12 = vector.broadcast %11 : vector<1x512xf32> to vector<256x512xf32>
    %13 = arith.addf %10, %12 : vector<256x512xf32>
    %cst_6 = arith.constant 0.000000e+00 : f32
    %14 = vector.broadcast %cst_6 : f32 to vector<256x512xf32>
    %15 = arith.maximumf %13, %14 : vector<256x512xf32>
    %c0_7 = arith.constant 0 : index
    %c0_8 = arith.constant 0 : index
    %16 = vector.load %arg11[%c0_7, %c0_8] : memref<256x128xf32, #tpu.memory_space<vmem>>, vector<256x128xf32>
    %17 = arith.truncf %15 : vector<256x512xf32> to vector<256x512xbf16>
    %c0_9 = arith.constant 0 : index
    %c0_10 = arith.constant 0 : index
    %18 = vector.load %arg7[%c0_9, %c0_10] : memref<512x128xbf16, #tpu.memory_space<vmem>>, vector<512x128xbf16>
    %cst_11 = arith.constant dense<0.000000e+00> : vector<256x128xf32>
    %19 = tpu.matmul %17, %18, %cst_11 {dimension_numbers = #tpu.dot_dimension_numbers<[1], [0], [0], [1], [0, 0, 1, 1], [], []>} : vector<256x512xbf16>, vector<512x128xbf16>, vector<256x128xf32> -> vector<256x128xf32>
    %20 = arith.addf %16, %19 : vector<256x128xf32>
    %c0_12 = arith.constant 0 : index
    %c0_13 = arith.constant 0 : index
    %21 = vector.load %arg11[%c0_12, %c0_13] : memref<256x128xf32, #tpu.memory_space<vmem>>, vector<256x128xf32>
    tpu.vector_store %arg11[%c0_12, %c0_13], %20 {strides = array<i32>} : memref<256x128xf32, #tpu.memory_space<vmem>>, vector<256x128xf32>,
    %c0_i32_14 = arith.constant 0 : i32
    %22 = arith.cmpi eq, %arg1, %c0_i32_14 : i32
    %23 = arith.extui %22 : i1 to i32
    %c0_i32_15 = arith.constant 0 : i32
    %24 = arith.cmpi ne, %23, %c0_i32_15 : i32
    scf.if %24 {
      %c0_16 = arith.constant 0 : index
      %c0_17 = arith.constant 0 : index
      %25 = vector.load %arg11[%c0_16, %c0_17] : memref<256x128xf32, #tpu.memory_space<vmem>>, vector<256x128xf32>
      %c3 = arith.constant 3 : index
      %c0_18 = arith.constant 0 : index
      %26 = vector.load %arg4[%c3, %c0_18] : memref<8x128xf32, #tpu.memory_space<vmem>>, vector<1x128xf32>
      %27 = vector.broadcast %26 : vector<1x128xf32> to vector<256x128xf32>
      %28 = arith.addf %25, %27 : vector<256x128xf32>
      %c0_19 = arith.constant 0 : index
      %c0_20 = arith.constant 0 : index
      %29 = vector.load %arg9[%c0_19, %c0_20] : memref<256x128xf32, #tpu.memory_space<vmem>>, vector<256x128xf32>
      %30 = arith.addf %28, %29 : vector<256x128xf32>
      %c4 = arith.constant 4 : index
      %c0_21 = arith.constant 0 : index
      %31 = vector.load %arg4[%c4, %c0_21] : memref<8x128xf32, #tpu.memory_space<vmem>>, vector<1x128xf32>
      %c5 = arith.constant 5 : index
      %c0_22 = arith.constant 0 : index
      %32 = vector.load %arg4[%c5, %c0_22] : memref<8x128xf32, #tpu.memory_space<vmem>>, vector<1x128xf32>
      %cst_23 = arith.constant dense<0.000000e+00> : vector<256xf32>
      %33 = vector.multi_reduction <add>, %30, %cst_23 [1] : vector<256x128xf32> to vector<256xf32>
      %34 = vector.shape_cast %33 : vector<256xf32> to vector<256x1xf32>
      %cst_24 = arith.constant 7.812500e-03 : f32
      %35 = vector.broadcast %cst_24 : f32 to vector<256x1xf32>
      %36 = arith.mulf %34, %35 : vector<256x1xf32>
      %37 = vector.broadcast %36 : vector<256x1xf32> to vector<256x128xf32>
      %38 = arith.subf %30, %37 : vector<256x128xf32>
      %39 = vector.broadcast %4 : vector<1x128xf32> to vector<256x128xf32>
      %40 = arith.mulf %38, %39 : vector<256x128xf32>
      %41 = arith.mulf %40, %40 : vector<256x128xf32>
      %cst_25 = arith.constant dense<0.000000e+00> : vector<256xf32>
      %42 = vector.multi_reduction <add>, %41, %cst_25 [1] : vector<256x128xf32> to vector<256xf32>
      %43 = vector.shape_cast %42 : vector<256xf32> to vector<256x1xf32>
      %cst_26 = arith.constant 7.812500e-03 : f32
      %44 = vector.broadcast %cst_26 : f32 to vector<256x1xf32>
      %45 = arith.mulf %43, %44 : vector<256x1xf32>
      %cst_27 = arith.constant 9.99999974E-6 : f32
      %46 = vector.broadcast %cst_27 : f32 to vector<256x1xf32>
      %47 = arith.addf %45, %46 : vector<256x1xf32>
      %48 = math.rsqrt %47 : vector<256x1xf32>
      %49 = vector.broadcast %48 : vector<256x1xf32> to vector<256x128xf32>
      %50 = arith.mulf %40, %49 : vector<256x128xf32>
      %51 = vector.broadcast %31 : vector<1x128xf32> to vector<256x128xf32>
      %52 = arith.mulf %50, %51 : vector<256x128xf32>
      %53 = vector.broadcast %32 : vector<1x128xf32> to vector<256x128xf32>
      %54 = arith.addf %52, %53 : vector<256x128xf32>
      %55 = arith.truncf %54 : vector<256x128xf32> to vector<256x128xbf16>
      %c0_28 = arith.constant 0 : index
      %c0_29 = arith.constant 0 : index
      %56 = vector.load %arg8[%c0_28, %c0_29] : memref<256x128xbf16, #tpu.memory_space<vmem>>, vector<256x128xbf16>
      tpu.vector_store %arg8[%c0_28, %c0_29], %55 {strides = array<i32>} : memref<256x128xbf16, #tpu.memory_space<vmem>>, vector<256x128xbf16>,
    } else {
    }
    return
  }
  func.func @transform_0(%arg0: i32, %arg1: i32) -> (i32, i32) {
    %c0_i32 = arith.constant 0 : i32
    %c0_i32_0 = arith.constant 0 : i32
    return %arg0, %c0_i32 : i32, i32
  }
  func.func @transform_1(%arg0: i32, %arg1: i32) -> (i32, i32) {
    %c0_i32 = arith.constant 0 : i32
    %c0_i32_0 = arith.constant 0 : i32
    %c0_i32_1 = arith.constant 0 : i32
    return %c0_i32, %c0_i32_0 : i32, i32
  }
  func.func @transform_2(%arg0: i32, %arg1: i32) -> (i32, i32) {
    %c0_i32 = arith.constant 0 : i32
    %c0_i32_0 = arith.constant 0 : i32
    %c0_i32_1 = arith.constant 0 : i32
    return %c0_i32, %c0_i32_0 : i32, i32
  }
  func.func @transform_3(%arg0: i32, %arg1: i32) -> (i32, i32) {
    %c0_i32 = arith.constant 0 : i32
    %c0_i32_0 = arith.constant 0 : i32
    return %c0_i32, %arg1 : i32, i32
  }
  func.func @transform_4(%arg0: i32, %arg1: i32) -> (i32, i32) {
    %c0_i32 = arith.constant 0 : i32
    %c0_i32_0 = arith.constant 0 : i32
    return %c0_i32, %arg1 : i32, i32
  }
  func.func @transform_5(%arg0: i32, %arg1: i32) -> (i32, i32) {
    %c0_i32 = arith.constant 0 : i32
    %c0_i32_0 = arith.constant 0 : i32
    return %arg1, %c0_i32 : i32, i32
  }
  func.func @transform_6(%arg0: i32, %arg1: i32) -> (i32, i32) {
    %c0_i32 = arith.constant 0 : i32
    %c0_i32_0 = arith.constant 0 : i32
    return %arg0, %c0_i32 : i32, i32
  }
}

</mosaic_0001>

<bundles_post_ra>
// kernel: forward.2
= control target key start
LH: loop header
LB: loop body
LE: loop exit
PB: predicated region body
PF: predicated region fallthrough
CT: control target
= control target key end

     0   :  { %s5155_s21 = smov 0   ;;  %s5157_s22 = smov 0   ;;  %s7098_s0 = inlined_call_operand.vmem [shape: bf16[512,128], index: 0, kind: input, shape index: {}]   ;;  %s7099_s1 = inlined_call_operand.vmem [shape: bf16[128,128], index: 1, kind: input, shape index: {}]   ;;  %s7100_s2 = inlined_call_operand.vmem [shape: f32[8,128], index: 2, kind: input, shape index: {}]   ;;  %s7101_s3 = inlined_call_operand.vmem [shape: bf16[128,512], index: 3, kind: input, shape index: {}]   ;;  %s7102_s4 = inlined_call_operand.vmem [shape: f32[1,512], index: 4, kind: input, shape index: {}]   ;;  %s7103_s5 = inlined_call_operand.vmem [shape: bf16[512,128], index: 5, kind: input, shape index: {}]   ;;  %s7104_s6 = inlined_call_operand.vmem [shape: bf16[512,128], index: 6, kind: output, shape index: {}]  }
   0x1   :  { %s5159_s23 = smov 0  }
   0x2 LB: > { %s28_s24 = sadd.s32 1, %s5114_s22  ;;  %p4191_p0 = scmp.ge.s32.totalorder %s5118_s23, 1  ;;  %s5118_s23 = sphi %s5159_s23, %s16_s23   ;;  %s5114_s22 = sphi %s5157_s22, %s7298_s22   ;;  %s5110_s21 = sphi %s5155_s21, %s7297_s21  }
   0x3   : > { %p30_p1 = scmp.ge.s32.totalorder %s28_s24, 2  ;;  %p257_p2 = scmp.lt.s32.totalorder %s5118_s23, 3 }
   0x5   : > { %s7300_s24 = smov (%p30_p1, %s28_s24), 0  ;;  %p258_p3 = pnand %p4191_p0, %p257_p2 }
   0x7   : > { %261 = sbr.rel (%p258_p3) target bundleno = 1669 (0x685), region = 44 }
   0xc   : > { %v4637_v0 = vld [vmem:[%s7099_s1 + $0x38] sm:$0xff]  ;;  %v4636_v1 = vld [vmem:[%s7099_s1 + $0x30] sm:$0xff]  ;;  %v4635_v2 = vld [vmem:[%s7099_s1 + $0x28] sm:$0xff]  ;;  %s4192_s9 = sshll.u32 %s5110_s21, 5 }
   0xd   : > { %565 = vmatpush.bf16.msra.mxu0 %v4637_v0  ;;  %4908 = vmatpush.bf16.msra.mxu1 %v4637_v0  ;;  %v4634_v3 = vld [vmem:[%s7099_s1 + $0x20] sm:$0xff]  ;;  %v4633_v4 = vld [vmem:[%s7099_s1 + $0x18] sm:$0xff]  ;;  %p302_p4 = scmp.lt.s32.totalorder %s4192_s9, 63  ;;  %v4632_v5 = vld [vmem:[%s7099_s1 + $0x10] sm:$0xff] }
   0xe   : > { %4909 = vmatpush.bf16.msra.mxu2 %v4637_v0  ;;  %4910 = vmatpush.bf16.msra.mxu3 %v4637_v0  ;;  %v4631_v6 = vld [vmem:[%s7099_s1 + $0x8] sm:$0xff]  ;;  %v4630_v7 = vld [vmem:[%s7099_s1] sm:$0xff] }
   0xf   : > { %s7302_s9 = smov (!%p302_p4, %s4192_s9), 63  ;;  %v5220_v15 = vld [vmem:[%s7100_s2] ss:$0 sm:$0xff] }
  0x10   : > { %s4193_s16 = sshll.u32 %s7302_s9, 2 }
  0x11   : > { %566 = vmatpush.bf16.msra.mxu0 %v4636_v1  ;;  %4911 = vmatpush.bf16.msra.mxu1 %v4636_v1  ;;  %s5208_s21 = scalar_lea.vmem %s7098_s0, %s4193_s16  ;;  %s6919_s15 = scalar_lea.vmem %s7104_s6, %s4193_s16 }
  0x12   : > { %4912 = vmatpush.bf16.msra.mxu2 %v4636_v1  ;;  %4913 = vmatpush.bf16.msra.mxu3 %v4636_v1  ;;  %v4614_v8 = vld [vmem:[%s5208_s21] sm:$0xff]  ;;  %v4615_v9 = vld [vmem:[%s5208_s21 + $0x8] sm:$0xff]  ;;  %v4616_v10 = vld [vmem:[%s5208_s21 + $0x10] sm:$0xff] }
  0x13   : > { %v4617_v11 = vld [vmem:[%s5208_s21 + $0x18] sm:$0xff]  ;;  %v4618_v12 = vld [vmem:[%s5208_s21 + $0x20] sm:$0xff]  ;;  %v4619_v13 = vld [vmem:[%s5208_s21 + $0x28] sm:$0xff] }
  0x14   : > { %v339_v14 = vld [vmem:[%s5208_s21] sm:$0xff]   ;;  %v4620_v23 = vld [vmem:[%s5208_s21 + $0x30] sm:$0xff]  ;;  %v341_v25 = vld [vmem:[%s5208_s21 + $0x8] sm:$0xff]  }
  0x15   : > { %567 = vmatpush.bf16.msra.mxu0 %v4635_v2  ;;  %4914 = vmatpush.bf16.msra.mxu1 %v4635_v2  ;;  %v371_v16 = vunpack.c.l.bf16 %v339_v14  ;;  %v372_v20 = vunpack.c.h.bf16 %v339_v14  ;;  %v373_v26 = vunpack.c.l.bf16 %v341_v25  ;;  %v374_v30 = vunpack.c.h.bf16 %v341_v25  ;;  %v4621_v31 = vld [vmem:[%s5208_s21 + $0x38] sm:$0xff]  ;;  %v343_v35 = vld [vmem:[%s5208_s21 + $0x10] sm:$0xff]   ;;  %v4622_v49 = vld [vmem:[%s5208_s21 + $0x40] sm:$0xff] }
  0x16   : > { %4915 = vmatpush.bf16.msra.mxu2 %v4635_v2  ;;  %4916 = vmatpush.bf16.msra.mxu3 %v4635_v2  ;;  %v375_v36 = vunpack.c.l.bf16 %v343_v35  ;;  %v376_v40 = vunpack.c.h.bf16 %v343_v35  ;;  %v345_v44 = vld [vmem:[%s5208_s21 + $0x18] sm:$0xff]   ;;  %v4623_v56 = vld [vmem:[%s5208_s21 + $0x48] sm:$0xff]  ;;  %v347_v63 = vld [vmem:[%s5208_s21 + $0x20] sm:$0xff]  }
  0x17   : > { %v377_v45 = vunpack.c.l.bf16 %v345_v44  ;;  %v378_v60 = vunpack.c.h.bf16 %v345_v44  ;;  %v380_v14 = vunpack.c.h.bf16 %v347_v63 }
  0x19   : > { %568 = vmatpush.bf16.msra.mxu0 %v4634_v3  ;;  %4917 = vmatpush.bf16.msra.mxu1 %v4634_v3 }
  0x1a   : > { %4918 = vmatpush.bf16.msra.mxu2 %v4634_v3  ;;  %4919 = vmatpush.bf16.msra.mxu3 %v4634_v3  ;;  %v379_v3 = vunpack.c.l.bf16 %v347_v63  ;;  %v4472_v63 = vld [vmem:[%s7101_s3 + $0xf0] sm:$0xf0] }
  0x1d   : > { %569 = vmatpush.bf16.msra.mxu0 %v4633_v4  ;;  %4920 = vmatpush.bf16.msra.mxu1 %v4633_v4 }
  0x1e   : > { %4921 = vmatpush.bf16.msra.mxu2 %v4633_v4  ;;  %4922 = vmatpush.bf16.msra.mxu3 %v4633_v4 }
  0x21   : > { %570 = vmatpush.bf16.msra.mxu0 %v4632_v5  ;;  %4923 = vmatpush.bf16.msra.mxu1 %v4632_v5 }
  0x22   : > { %4924 = vmatpush.bf16.msra.mxu2 %v4632_v5  ;;  %4925 = vmatpush.bf16.msra.mxu3 %v4632_v5 }
  0x25   : > { %571 = vmatpush.bf16.msra.mxu0 %v4631_v6  ;;  %4926 = vmatpush.bf16.msra.mxu1 %v4631_v6 }
  0x26   : > { %4927 = vmatpush.bf16.msra.mxu2 %v4631_v6  ;;  %4928 = vmatpush.bf16.msra.mxu3 %v4631_v6 }
  0x29   : > { %572 = vmatpush.bf16.msra.mxu0 %v4630_v7  ;;  %4929 = vmatpush.bf16.msra.mxu1 %v4630_v7 }
  0x2a   : > { %4930 = vmatpush.bf16.msra.mxu2 %v4630_v7  ;;  %4931 = vmatpush.bf16.msra.mxu3 %v4630_v7 }
  0x2c   : > { %573 = vmatmul.bf16.vlgmr.msra.gmra.mxu0 %v4614_v8  ;;  %593 = vmatmul.bf16.vlgmr.msra.gmra.mxu1 %v4618_v12 }
  0x2d   : > { %613 = vmatmul.bf16.vlgmr.msra.gmra.mxu2 %v4622_v49 }
  0x3c   : > { %578 = vmatmul.bf16.gmra.mxu0 %v4615_v9  ;;  %598 = vmatmul.bf16.gmra.mxu1 %v4619_v13 }
  0x3d   : > { %618 = vmatmul.bf16.gmra.mxu2 %v4623_v56  ;;  %v4627_v56 = vld [vmem:[%s5208_s21 + $0x68] sm:$0xff] }
  0x4c   : > { %583 = vmatmul.bf16.gmra.mxu0 %v4616_v10  ;;  %603 = vmatmul.bf16.gmra.mxu1 %v4620_v23  ;;  %v4624_v10 = vld [vmem:[%s5208_s21 + $0x50] sm:$0xff] }
  0x4d   : > { %623 = vmatmul.bf16.gmra.mxu2 %v4624_v10  ;;  %v4454_v10 = vld [vmem:[%s7101_s3 + $0xc0] sm:$0xf] }
  0x5c   : > { %588 = vmatmul.bf16.gmra.mxu0 %v4617_v11  ;;  %608 = vmatmul.bf16.gmra.mxu1 %v4621_v31  ;;  %v4626_v31 = vld [vmem:[%s5208_s21 + $0x60] sm:$0xff] }
  0x5d   : > { %633 = vmatmul.bf16.vlgmr.msra.gmra.mxu3 %v4626_v31  ;;  %v4440_v31 = vld [vmem:[%s7101_s3 + $0xb0] sm:$0xf0] }
  0x6d   : > { %638 = vmatmul.bf16.gmra.mxu3 %v4627_v56  ;;  %v4671_v56 = vld [vmem:[%s7101_s3 + $0x8c] sm:$0xf] }
  0xa9   : > { %v574_v17 = vpop.f32.mrf.mxu0  ;;  %v594_v52 = vpop.f32.mrf.mxu1 }
  0xaa   : > { %v575_v18 = vadd.f32 %v5220_v15, %v574_v17  ;;  %v595_v2 = vadd.f32 %v5220_v15, %v594_v52  ;;  %v349_v17 = vld [vmem:[%s5208_s21 + $0x28] sm:$0xff]   ;;  %v5306_v52 = vld [vmem:[%s5208_s21 + $0x38] sm:$0xff]  }
  0xac   : > { %v654_v19 = vadd.f32 %v575_v18, %v371_v16  ;;  %v5258_v7 = vadd.f32 %v595_v2, %v379_v3  ;;  %v4685_v3 = vld [vmem:[%s7101_s3 + $0xf4] sm:$0xf0] }
  0xae   : > { %688 = vadd.xlane.f32.xlu0 %v654_v19 }
  0xb1   : > { %v576_v21 = vpop.f32.mrf.mxu0  ;;  %v596_v62 = vpop.f32.mrf.mxu1 }
  0xb2   : > { %v577_v22 = vadd.f32 %v5220_v15, %v576_v21  ;;  %v597_v12 = vadd.f32 %v5220_v15, %v596_v62  ;;  %v4682_v62 = vld [vmem:[%s7101_s3 + $0xe4] sm:$0xf] }
  0xb3   : > { %v4475_v2 = vor.u32 %v4682_v62, %v4472_v63  ;;  %v4668_v62 = vld [vmem:[%s7101_s3 + $0x6c] sm:$0xf0] }
  0xb4   : > { %v655_v24 = vadd.f32 %v577_v22, %v372_v20  ;;  %v381_v22 = vunpack.c.l.bf16 %v349_v17 }
  0xb5   : > { %1973 = vmatpush.bf16.msrb.mxu2 %v4475_v2  ;;  %v4408_v2 = vld [vmem:[%s7101_s3 + $0x70] sm:$0xf0] }
  0xb6   : > { %690 = vadd.xlane.f32.xlu0 %v655_v24 }
  0xb9   : > { %v579_v27 = vpop.f32.mrf.mxu0  ;;  %v599_v8 = vpop.f32.mrf.mxu1 }
  0xba   : > { %v580_v28 = vadd.f32 %v5220_v15, %v579_v27  ;;  %v600_v21 = vadd.f32 %v5220_v15, %v599_v8 }
  0xbc   : > { %v656_v29 = vadd.f32 %v580_v28, %v373_v26  ;;  %v5276_v26 = vadd.f32 %v600_v21, %v381_v22  ;;  %v4679_v22 = vld [vmem:[%s7101_s3 + $0xcc] sm:$0xf] }
  0xbe   : > { %692 = vadd.xlane.f32.xlu1 %v656_v29 }
  0xc1   : > { %v581_v32 = vpop.f32.mrf.mxu0  ;;  %v601_v20 = vpop.f32.mrf.mxu1 }
  0xc2   : > { %v582_v33 = vadd.f32 %v5220_v15, %v581_v32  ;;  %v602_v28 = vadd.f32 %v5220_v15, %v601_v20 }
  0xc4   : > { %v657_v34 = vadd.f32 %v582_v33, %v374_v30  ;;  %v4625_v30 = vld [vmem:[%s5208_s21 + $0x58] sm:$0xff] }
  0xc5   : > { %628 = vmatmul.bf16.gmra.mxu2 %v4625_v30 }
  0xc6   : > { %694 = vadd.xlane.f32.xlu1 %v657_v34 }
  0xc9   : > { %v584_v37 = vpop.f32.mrf.mxu0  ;;  %v604_v33 = vpop.f32.mrf.mxu1 }
  0xca   : > { %v585_v38 = vadd.f32 %v5220_v15, %v584_v37  ;;  %v351_v37 = vld [vmem:[%s5208_s21 + $0x30] sm:$0xff]  }
  0xcb   : > { %v384_v49 = vunpack.c.h.bf16 %v351_v37 }
  0xcc   : > { %v658_v39 = vadd.f32 %v585_v38, %v375_v36 }
  0xce   : > { %696 = vadd.xlane.f32.xlu2 %v658_v39 }
  0xd1   : > { %v586_v41 = vpop.f32.mrf.mxu0  ;;  %v606_v44 = vpop.f32.mrf.mxu1 }
  0xd2   : > { %v587_v42 = vadd.f32 %v5220_v15, %v586_v41 }
  0xd4   : > { %v5232_v43 = vadd.f32 %v587_v42, %v376_v40  ;;  %v383_v40 = vunpack.c.l.bf16 %v351_v37 }
  0xd6   : > { %698 = vadd.xlane.f32.xlu2 %v5232_v43 }
  0xd9   : > { %v589_v46 = vpop.f32.mrf.mxu0 }
  0xda   : > { %v590_v47 = vadd.f32 %v5220_v15, %v589_v46 }
  0xdc   : > { %v5237_v48 = vadd.f32 %v590_v47, %v377_v45  ;;  %v607_v47 = vadd.f32 %v5220_v15, %v606_v44  ;;  %v4670_v44 = vld [vmem:[%s7101_s3 + $0x84] sm:$0xf] }
  0xde   : > { %700 = vadd.xlane.f32.xlu2 %v5237_v48 }
  0xe1   : > { %v591_v55 = vpop.f32.mrf.mxu0 }
  0xe2   : > { %v592_v58 = vadd.f32 %v5220_v15, %v591_v55 }
  0xe4   : > { %v5250_v0 = vadd.f32 %v592_v58, %v378_v60  ;;  %v4470_v58 = vld [vmem:[%s7101_s3 + $0xe0] sm:$0xf] }
 0x121   : > { %v689_v50 = vpop.xlane.xlu0 %688 }
 0x122   : > { %v752_v51 = vmul.f32 0.0078125, %v689_v50  ;;  %v5303_v50 = vadd.f32 %v607_v47, %v384_v49  ;;  %v4424_v47 = vld [vmem:[%s7101_s3 + $0x90] sm:$0xf0]  ;;  %v4430_v49 = vld [vmem:[%s7101_s3 + $0x88] sm:$0xf] }
 0x124   : > { %v5241_v53 = vsub.f32 %v654_v19, %v752_v51  ;;  %v5270_v19 = vadd.f32 %v597_v12, %v380_v14  ;;  %v609_v51 = vpop.f32.mrf.mxu1  ;;  %v4678_v12 = vld [vmem:[%s7101_s3 + $0xc4] sm:$0xf]  ;;  %v4456_v14 = vld [vmem:[%s7101_s3 + $0xd0] sm:$0xf0] }
 0x125   : > { %v4459_v20 = vor.u32 %v4678_v12, %v4456_v14  ;;  %v4390_v14 = vld [vmem:[%s7101_s3 + $0x40] sm:$0xf] }
 0x126   : > { %v848_v54 = vmul.f32 %v5241_v53, %v5241_v53 }
 0x127   : > { %1974 = vmatpush.bf16.msrb.mxu2 %v4459_v20 }
 0x128   : > { %880 = vadd.xlane.f32.xlu0 %v848_v54  ;;  %v385_v54 = vunpack.c.l.bf16 %v5306_v52 }
 0x129   : > { %v691_v57 = vpop.xlane.xlu0 %690 }
 0x12a   : > { %v753_v59 = vmul.f32 0.0078125, %v691_v57  ;;  %v4628_v57 = vld [vmem:[%s5208_s21 + $0x70] sm:$0xff] }
 0x12b   : > { %643 = vmatmul.bf16.gmra.mxu3 %v4628_v57  ;;  %v4432_v57 = vld [vmem:[%s7101_s3 + $0x98] sm:$0xf0] }
 0x12c   : > { %v5247_v61 = vsub.f32 %v655_v24, %v753_v59  ;;  %v4684_v59 = vld [vmem:[%s7101_s3 + $0xec] sm:$0xf0] }
 0x12d   : > { %v4471_v60 = vor.u32 %v4684_v59, %v4470_v58  ;;  %v4435_v58 = vor.u32 %v4671_v56, %v4432_v57  ;;  %v4629_v59 = vld [vmem:[%s5208_s21 + $0x78] sm:$0xff]  ;;  %v4358_v56 = vld [vmem:[%s7101_s3] sm:$0xf]  ;;  %v4656_v57 = vld [vmem:[%s7101_s3 + $0xc] sm:$0xf0] }
 0x12e   : > { %v849_v1 = vmul.f32 %v5247_v61, %v5247_v61 }
 0x12f   : > { %1884 = vmatpush.bf16.msrb.mxu1 %v4471_v60  ;;  %v4406_v60 = vld [vmem:[%s7101_s3 + $0x60] sm:$0xf] }
 0x130   : > { %702 = vadd.xlane.f32.xlu0 %v5250_v0  ;;  %882 = vadd.xlane.f32.xlu1 %v849_v1  ;;  %v4478_v1 = vld [vmem:[%s7101_s3 + $0xe8] sm:$0xf]  ;;  %v4407_v63 = vor.u32 %v4668_v62, %v4406_v60 }
 0x131   : > { %v693_v4 = vpop.xlane.xlu1 %692  ;;  %v4479_v8 = vor.u32 %v4685_v3, %v4478_v1  ;;  %v4666_v1 = vld [vmem:[%s7101_s3 + $0x64] sm:$0xf]  ;;  %v4414_v3 = vld [vmem:[%s7101_s3 + $0x68] sm:$0xf] }
 0x132   : > { %v754_v5 = vmul.f32 0.0078125, %v693_v4  ;;  %v4683_v4 = vld [vmem:[%s7101_s3 + $0xec] sm:$0xf] }
 0x133   : > { %2062 = vmatpush.bf16.msrb.mxu3 %v4479_v8  ;;  %v4669_v8 = vld [vmem:[%s7101_s3 + $0x74] sm:$0xf0] }
 0x134   : > { %v5256_v6 = vsub.f32 %v656_v29, %v754_v5  ;;  %v382_v29 = vunpack.c.h.bf16 %v349_v17  ;;  %v4480_v5 = vld [vmem:[%s7101_s3 + $0xf8] sm:$0xf0]  ;;  %v4462_v17 = vld [vmem:[%s7101_s3 + $0xc8] sm:$0xf]  ;;  %v4415_v12 = vor.u32 %v4669_v8, %v4414_v3 }
 0x135   : > { %v4368_v8 = vld [vmem:[%s7101_s3 + $0x18] sm:$0xf0] }
 0x136   : > { %v850_v9 = vmul.f32 %v5256_v6, %v5256_v6  ;;  %v5287_v36 = vadd.f32 %v602_v28, %v382_v29  ;;  %v4676_v28 = vld [vmem:[%s7101_s3 + $0xac] sm:$0xf0]  ;;  %v4674_v29 = vld [vmem:[%s7101_s3 + $0xa4] sm:$0xf] }
 0x138   : > { %704 = vadd.xlane.f32.xlu0 %v5258_v7  ;;  %884 = vadd.xlane.f32.xlu1 %v850_v9  ;;  %v4483_v9 = vor.u32 %v4683_v4, %v4480_v5  ;;  %v4411_v5 = vor.u32 %v4666_v1, %v4408_v2  ;;  %v4360_v1 = vld [vmem:[%s7101_s3 + $0x10] sm:$0xf0]  ;;  %v4366_v2 = vld [vmem:[%s7101_s3 + $0x8] sm:$0xf] }
 0x139   : > { %v695_v11 = vpop.xlane.xlu1 %694 }
 0x13a   : > { %v755_v13 = vmul.f32 0.0078125, %v695_v11  ;;  %v4680_v11 = vld [vmem:[%s7101_s3 + $0xcc] sm:$0xf0]  ;;  %2151 = vmatpush.bf16.msrb.mxu0 %v4483_v9  ;;  %v4667_v9 = vld [vmem:[%s7101_s3 + $0x6c] sm:$0xf] }
 0x13b   : > { %648 = vmatmul.bf16.gmra.mxu3 %v4629_v59 }
 0x13c   : > { %v5265_v16 = vsub.f32 %v657_v34, %v755_v13  ;;  %v4455_v13 = vor.u32 %v4680_v11, %v4454_v10  ;;  %v4416_v10 = vld [vmem:[%s7101_s3 + $0x78] sm:$0xf0] }
 0x13e   : > { %v851_v18 = vmul.f32 %v5265_v16, %v5265_v16  ;;  %1885 = vmatpush.bf16.msrb.mxu1 %v4455_v13  ;;  %v4419_v13 = vor.u32 %v4667_v9, %v4416_v10 }
 0x140   : > { %886 = vadd.xlane.f32.xlu2 %v851_v18  ;;  %706 = vadd.xlane.f32.xlu1 %v5270_v19  ;;  %v4681_v18 = vld [vmem:[%s7101_s3 + $0xd4] sm:$0xf0] }
 0x141   : > { %v697_v23 = vpop.xlane.xlu2 %696  ;;  %v4463_v21 = vor.u32 %v4681_v18, %v4462_v17  ;;  %v4664_v17 = vld [vmem:[%s7101_s3 + $0x4c] sm:$0xf0]  ;;  %v4662_v18 = vld [vmem:[%s7101_s3 + $0x44] sm:$0xf] }
 0x142   : > { %v756_v24 = vmul.f32 0.0078125, %v697_v23  ;;  %v4464_v23 = vld [vmem:[%s7101_s3 + $0xd8] sm:$0xf0] }
 0x143   : > { %2063 = vmatpush.bf16.msrb.mxu3 %v4463_v21  ;;  %v4391_v21 = vor.u32 %v4664_v17, %v4390_v14 }
 0x144   : > { %v5274_v25 = vsub.f32 %v658_v39, %v756_v24  ;;  %v605_v39 = vadd.f32 %v5220_v15, %v604_v33  ;;  %v4467_v24 = vor.u32 %v4679_v22, %v4464_v23  ;;  %v4677_v33 = vld [vmem:[%s7101_s3 + $0xb4] sm:$0xf0]  ;;  %v4392_v22 = vld [vmem:[%s7101_s3 + $0x50] sm:$0xf0]  ;;  %v4398_v23 = vld [vmem:[%s7101_s3 + $0x48] sm:$0xf] }
 0x146   : > { %v852_v27 = vmul.f32 %v5274_v25, %v5274_v25  ;;  %v5297_v45 = vadd.f32 %v605_v39, %v383_v40  ;;  %2152 = vmatpush.bf16.msrb.mxu0 %v4467_v24  ;;  %v4448_v39 = vld [vmem:[%s7101_s3 + $0xb8] sm:$0xf0]  ;;  %v4395_v24 = vor.u32 %v4662_v18, %v4392_v22 }
 0x148   : > { %888 = vadd.xlane.f32.xlu2 %v852_v27  ;;  %708 = vadd.xlane.f32.xlu1 %v5276_v26  ;;  %v4438_v27 = vld [vmem:[%s7101_s3 + $0xa0] sm:$0xf] }
 0x149   : > { %v699_v32 = vpop.xlane.xlu2 %698  ;;  %v4439_v30 = vor.u32 %v4676_v28, %v4438_v27  ;;  %v4665_v27 = vld [vmem:[%s7101_s3 + $0x54] sm:$0xf0]  ;;  %v4663_v28 = vld [vmem:[%s7101_s3 + $0x4c] sm:$0xf] }
 0x14a   : > { %v757_v34 = vmul.f32 0.0078125, %v699_v32  ;;  %v4446_v32 = vld [vmem:[%s7101_s3 + $0xa8] sm:$0xf] }
 0x14b   : > { %v4447_v37 = vor.u32 %v4677_v33, %v4446_v32  ;;  %1886 = vmatpush.bf16.msrb.mxu1 %v4439_v30  ;;  %v4399_v30 = vor.u32 %v4665_v27, %v4398_v23  ;;  %v4374_v32 = vld [vmem:[%s7101_s3 + $0x20] sm:$0xf]  ;;  %v4660_v33 = vld [vmem:[%s7101_s3 + $0x2c] sm:$0xf0]  ;;  %v614_v23 = vpop.f32.mrf.mxu2 }
 0x14c   : > { %v5285_v35 = vsub.f32 %v5232_v43, %v757_v34  ;;  %v4443_v34 = vor.u32 %v4674_v29, %v4440_v31  ;;  %v4400_v29 = vld [vmem:[%s7101_s3 + $0x58] sm:$0xf0] }
 0x14d   : > { %2064 = vmatpush.bf16.msrb.mxu3 %v4447_v37  ;;  %v4403_v31 = vor.u32 %v4663_v28, %v4400_v29  ;;  %v4375_v37 = vor.u32 %v4660_v33, %v4374_v32  ;;  %v611_v33 = vpop.f32.mrf.mxu1 }
 0x14e   : > { %v853_v38 = vmul.f32 %v5285_v35, %v5285_v35  ;;  %1975 = vmatpush.bf16.msrb.mxu2 %v4443_v34  ;;  %v4658_v34 = vld [vmem:[%s7101_s3 + $0x24] sm:$0xf] }
 0x150   : > { %710 = vadd.xlane.f32.xlu2 %v5287_v36  ;;  %890 = vadd.xlane.f32.xlu0 %v853_v38  ;;  %v4675_v38 = vld [vmem:[%s7101_s3 + $0xac] sm:$0xf] }
 0x151   : > { %v701_v41 = vpop.xlane.xlu2 %700  ;;  %v4451_v40 = vor.u32 %v4675_v38, %v4448_v39  ;;  %v4376_v38 = vld [vmem:[%s7101_s3 + $0x30] sm:$0xf0]  ;;  %v4382_v39 = vld [vmem:[%s7101_s3 + $0x28] sm:$0xf] }
 0x152   : > { %v758_v42 = vmul.f32 0.0078125, %v701_v41  ;;  %v4422_v41 = vld [vmem:[%s7101_s3 + $0x80] sm:$0xf] }
 0x153   : > { %2153 = vmatpush.bf16.msrb.mxu0 %v4451_v40  ;;  %v4661_v40 = vld [vmem:[%s7101_s3 + $0x34] sm:$0xf0] }
 0x154   : > { %v5295_v43 = vsub.f32 %v5237_v48, %v758_v42  ;;  %v610_v48 = vadd.f32 %v5220_v15, %v609_v51  ;;  %v4672_v42 = vld [vmem:[%s7101_s3 + $0x8c] sm:$0xf0]  ;;  %v4673_v51 = vld [vmem:[%s7101_s3 + $0x94] sm:$0xf0] }
 0x156   : > { %v854_v46 = vmul.f32 %v5295_v43, %v5295_v43  ;;  %v5311_v55 = vadd.f32 %v610_v48, %v385_v54  ;;  %v4427_v48 = vor.u32 %v4670_v44, %v4424_v47  ;;  %v4431_v54 = vor.u32 %v4673_v51, %v4430_v49  ;;  %v4659_v47 = vld [vmem:[%s7101_s3 + $0x2c] sm:$0xf]  ;;  %v4384_v49 = vld [vmem:[%s7101_s3 + $0x38] sm:$0xf0] }
 0x157   : > { %2154 = vmatpush.bf16.msrb.mxu0 %v4435_v58  ;;  %v4379_v44 = vor.u32 %v4658_v34, %v4376_v38  ;;  %v4654_v58 = vld [vmem:[%s7101_s3 + $0x4] sm:$0xf] }
 0x158   : > { %712 = vadd.xlane.f32.xlu2 %v5297_v45  ;;  %892 = vadd.xlane.f32.xlu0 %v854_v46  ;;  %v4423_v46 = vor.u32 %v4672_v42, %v4422_v41 }
 0x159   : > { %1976 = vmatpush.bf16.msrb.mxu2 %v4427_v48  ;;  %2065 = vmatpush.bf16.msrb.mxu3 %v4431_v54  ;;  %v4387_v54 = vor.u32 %v4659_v47, %v4384_v49 }
 0x15a   : > { %1887 = vmatpush.bf16.msrb.mxu1 %v4423_v46  ;;  %v4383_v46 = vor.u32 %v4661_v40, %v4382_v39  ;;  %v612_v39 = vadd.f32 %v5220_v15, %v611_v33 }
 0x15b   : > { %2155 = vmatpush.bf16.msrb.mxu0 %v4419_v13 }
 0x15d   : > { %1977 = vmatpush.bf16.msrb.mxu2 %v4411_v5  ;;  %2066 = vmatpush.bf16.msrb.mxu3 %v4415_v12  ;;  %v4657_v5 = vld [vmem:[%s7101_s3 + $0x14] sm:$0xf0] }
 0x15e   : > { %1888 = vmatpush.bf16.msrb.mxu1 %v4407_v63  ;;  %v4359_v63 = vor.u32 %v4656_v57, %v4358_v56  ;;  %v4367_v10 = vor.u32 %v4657_v5, %v4366_v2  ;;  %v616_v56 = vpop.f32.mrf.mxu2 }
 0x15f   : > { %2156 = vmatpush.bf16.msrb.mxu0 %v4403_v31  ;;  %v617_v33 = vadd.f32 %v5220_v15, %v616_v56 }
 0x160   : > { %714 = vadd.xlane.f32.xlu0 %v5303_v50 }
 0x161   : > { %1978 = vmatpush.bf16.msrb.mxu2 %v4395_v24  ;;  %2067 = vmatpush.bf16.msrb.mxu3 %v4399_v30 }
 0x162   : > { %1889 = vmatpush.bf16.msrb.mxu1 %v4391_v21 }
 0x163   : > { %2157 = vmatpush.bf16.msrb.mxu0 %v4387_v54 }
 0x165   : > { %1979 = vmatpush.bf16.msrb.mxu2 %v4379_v44  ;;  %2068 = vmatpush.bf16.msrb.mxu3 %v4383_v46 }
 0x166   : > { %1890 = vmatpush.bf16.msrb.mxu1 %v4375_v37 }
 0x168   : > { %716 = vadd.xlane.f32.xlu0 %v5311_v55 }
 0x169   : > { %2069 = vmatpush.bf16.msrb.mxu3 %v4367_v10 }
 0x16a   : > { %1891 = vmatpush.bf16.msrb.mxu1 %v4359_v63 }
 0x19b   : > { %v881_v4 = vpop.xlane.xlu0 %880 }
 0x19c   : > { %v944_v11 = vmul.f32 0.0078125, %v881_v4  ;;  %v4363_v4 = vor.u32 %v4654_v58, %v4360_v1 }
 0x19e   : > { %v5446_v20 = vadd.f32 1e-05, %v944_v11  ;;  %1980 = vmatpush.bf16.msrb.mxu2 %v4363_v4 }
 0x1a0   : > { %4962 = vrsqrt.f32 %v5446_v20  ;;  %vm1014_vm1 = vweird.f32 %v5446_v20 }
 0x1a3   : > { %v883_v41 = vpop.xlane.xlu1 %882  ;;  %v703_v42 = vpop.xlane.xlu0 %702 }
 0x1a4   : > { %v945_v51 = vmul.f32 0.0078125, %v883_v41  ;;  %v759_v48 = vmul.f32 0.0078125, %v703_v42  ;;  %v386_v42 = vunpack.c.h.bf16 %v5306_v52 }
 0x1a6   : > { %v4963_v59 = vpop.eup %4962  ;;  %v977_v60 = vadd.f32 1e-05, %v945_v51  ;;  %v5498_v62 = vsub.f32 %v5250_v0, %v759_v48  ;;  %v4655_v0 = vld [vmem:[%s7101_s3 + $0xc] sm:$0xf]  ;;  %v5541_v48 = vld [vmem:[%s5208_s21 + $0x40] sm:$0xff]   ;;  %v5547_v58 = vadd.f32 %v612_v39, %v386_v42 }
 0x1a7   : > { %v1009_v3 = vmul.f32 %v4963_v59, %v5446_v20  ;;  %v4371_v12 = vor.u32 %v4655_v0, %v4368_v8  ;;  %vm1015_vm0 = vweird.f32 %v4963_v59  ;;  %v5532_v20 = vld [vmem:[%s7100_s2 + $0x1] ss:$0 sm:$0xff]  ;;  %v387_v63 = vunpack.c.l.bf16 %v5541_v48 }
 0x1a8   : > { %4964 = vrsqrt.f32 %v977_v60  ;;  %v855_v9 = vmul.f32 %v5498_v62, %v5498_v62  ;;  %vm1016_vm2 = vmor %vm1014_vm1, %vm1015_vm0  ;;  %vm1024_vm4 = vweird.f32 %v977_v60 }
 0x1a9   : > { %v1010_v11 = vmul.f32 %v4963_v59, %v1009_v3  ;;  %2158 = vmatpush.bf16.msrb.mxu0 %v4371_v12 }
 0x1aa   : > { %894 = vadd.xlane.f32.xlu1 %v855_v9 }
 0x1ab   : > { %v1011_v13 = vmul.f32 0.5, %v1010_v11  ;;  %v885_v14 = vpop.xlane.xlu1 %884  ;;  %v705_v17 = vpop.xlane.xlu0 %704 }
 0x1ac   : > { %v946_v18 = vmul.f32 0.0078125, %v885_v14  ;;  %v760_v21 = vmul.f32 0.0078125, %v705_v17 }
 0x1ad   : > { %v1012_v22 = vsub.f32 1.5, %v1011_v13 }
 0x1ae   : > { %v4965_v24 = vpop.eup %4964  ;;  %v5518_v27 = vadd.f32 1e-05, %v946_v18  ;;  %v5521_v28 = vsub.f32 %v5258_v7, %v760_v21 }
 0x1af   : > { %v1013_v29 = vmul.f32 %v4963_v59, %v1012_v22  ;;  %v1019_v30 = vmul.f32 %v4965_v24, %v977_v60  ;;  %vm1025_vm3 = vweird.f32 %v4965_v24  ;;  %v5554_v60 = vld [vmem:[%s7100_s2 + $0x2] ss:$0 sm:$0xff]  ;;  %v619_v22 = vpop.f32.mrf.mxu2 }
 0x1b0   : > { %4966 = vrsqrt.f32 %v5518_v27  ;;  %v856_v31 = vmul.f32 %v5521_v28, %v5521_v28  ;;  %vm1026_vm5 = vmor %vm1024_vm4, %vm1025_vm3  ;;  %vm1034_vm7 = vweird.f32 %v5518_v27 }
 0x1b1   : > { %v1020_v32 = vmul.f32 %v4965_v24, %v1019_v30  ;;  %v1017_v34 = vsel %vm1016_vm2, %v4963_v59, %v1013_v29 }
 0x1b2   : > { %896 = vadd.xlane.f32.xlu1 %v856_v31  ;;  %v1328_v47 = vmul.f32 %v1017_v34, %v5241_v53 }
 0x1b3   : > { %v1021_v37 = vmul.f32 0.5, %v1020_v32  ;;  %v887_v38 = vpop.xlane.xlu2 %886  ;;  %v707_v7 = vpop.xlane.xlu1 %706 }
 0x1b4   : > { %v947_v40 = vmul.f32 0.0078125, %v887_v38  ;;  %v761_v41 = vmul.f32 0.0078125, %v707_v7  ;;  %v1361_v1 = vmul.f32 %v5532_v20, %v1328_v47  ;;  %v388_v38 = vunpack.c.h.bf16 %v5541_v48 }
 0x1b5   : > { %v1022_v44 = vsub.f32 1.5, %v1021_v37 }
 0x1b6   : > { %v4967_v46 = vpop.eup %4966  ;;  %v5535_v49 = vadd.f32 1e-05, %v947_v40  ;;  %v5538_v51 = vsub.f32 %v5270_v19, %v761_v41  ;;  %v615_v19 = vadd.f32 %v5220_v15, %v614_v23  ;;  %v5563_v13 = vadd.f32 %v5554_v60, %v1361_v1 }
 0x1b7   : > { %v1023_v54 = vmul.f32 %v4965_v24, %v1022_v44  ;;  %v1029_v52 = vmul.f32 %v4967_v46, %v5518_v27  ;;  %vm1035_vm6 = vweird.f32 %v4967_v46  ;;  %v5592_v48 = vadd.f32 %v617_v33, %v388_v38  ;;  %v621_v56 = vpop.f32.mrf.mxu2 }
 0x1b8   : > { %4968 = vrsqrt.f32 %v5535_v49  ;;  %v857_v57 = vmul.f32 %v5538_v51, %v5538_v51  ;;  %v5560_v11 = vadd.f32 %v615_v19, %v387_v63  ;;  %7137 = vst [vmem:[#allocation5_spill] sm:$0xff] %v5563_v13  ;;  %vm1036_vm8 = vmor %vm1034_vm7, %vm1035_vm6  ;;  %vm1044_vm10 = vweird.f32 %v5535_v49 }
 0x1b9   : > { %v1027_v53 = vsel %vm1026_vm5, %v4965_v24, %v1023_v54  ;;  %v1030_v59 = vmul.f32 %v4967_v46, %v1029_v52 }
 0x1ba   : > { %v1329_v2 = vmul.f32 %v1027_v53, %v5247_v61  ;;  %898 = vadd.xlane.f32.xlu2 %v857_v57  ;;  %718 = vadd.xlane.f32.xlu1 %v5547_v58 }
 0x1bb   : > { %v1031_v3 = vmul.f32 0.5, %v1030_v59  ;;  %v889_v4 = vpop.xlane.xlu2 %888  ;;  %v709_v5 = vpop.xlane.xlu1 %708 }
 0x1bc   : > { %v1362_v0 = vmul.f32 %v5532_v20, %v1329_v2  ;;  %v948_v8 = vmul.f32 0.0078125, %v889_v4  ;;  %v762_v9 = vmul.f32 0.0078125, %v709_v5 }
 0x1bd   : > { %v1032_v10 = vsub.f32 1.5, %v1031_v3 }
 0x1be   : > { %v4969_v12 = vpop.eup %4968  ;;  %v5566_v14 = vadd.f32 %v5554_v60, %v1362_v0  ;;  %v5568_v61 = vadd.f32 1e-05, %v948_v8  ;;  %v5571_v17 = vsub.f32 %v5276_v26, %v762_v9 }
 0x1bf   : > { %v1033_v18 = vmul.f32 %v4967_v46, %v1032_v10  ;;  %v1039_v21 = vmul.f32 %v4969_v12, %v5535_v49  ;;  %vm1045_vm9 = vweird.f32 %v4969_v12  ;;  %v620_v49 = vadd.f32 %v5220_v15, %v619_v22 }
 0x1c0   : > { %7138 = vst [vmem:[#allocation6_spill] sm:$0xff] %v5566_v14  ;;  %v4721_v23 = vpack.c.bf16 %v5566_v14, %v5563_v13  ;;  %4970 = vrsqrt.f32 %v5568_v61  ;;  %v858_v24 = vmul.f32 %v5571_v17, %v5571_v17  ;;  %vm1046_vm11 = vmor %vm1044_vm10, %vm1045_vm9  ;;  %vm1054_vm13 = vweird.f32 %v5568_v61 }
 0x1c1   : > { %v1040_v29 = vmul.f32 %v4969_v12, %v1039_v21  ;;  %v1037_v26 = vsel %vm1036_vm8, %v4967_v46, %v1033_v18  ;;  %v357_v46 = vld [vmem:[%s5208_s21 + $0x48] sm:$0xff]  }
 0x1c2   : > { %4722 = vst [vmem:[#allocation3 + $0x30] sm:$0xff] %v4721_v23   ;;  %900 = vadd.xlane.f32.xlu2 %v858_v24  ;;  %720 = vadd.xlane.f32.xlu1 %v5560_v11  ;;  %v1330_v39 = vmul.f32 %v1037_v26, %v5256_v6  ;;  %v389_v53 = vunpack.c.l.bf16 %v357_v46  ;;  %v390_v22 = vunpack.c.h.bf16 %v357_v46  ;;  %v624_v26 = vpop.f32.mrf.mxu2 }
 0x1c3   : > { %v1041_v30 = vmul.f32 0.5, %v1040_v29  ;;  %v711_v31 = vpop.xlane.xlu2 %710  ;;  %v891_v32 = vpop.xlane.xlu0 %890 }
 0x1c4   : > { %v763_v34 = vmul.f32 0.0078125, %v711_v31  ;;  %v949_v37 = vmul.f32 0.0078125, %v891_v32  ;;  %v5610_v8 = vadd.f32 %v620_v49, %v389_v53 }
 0x1c5   : > { %v1042_v7 = vsub.f32 1.5, %v1041_v30 }
 0x1c6   : > { %v4971_v27 = vpop.eup %4970  ;;  %v5585_v40 = vsub.f32 %v5287_v36, %v763_v34  ;;  %v981_v41 = vadd.f32 1e-05, %v949_v37  ;;  %v1363_v36 = vmul.f32 %v5532_v20, %v1330_v39  ;;  %v359_v37 = vld [vmem:[%s5208_s21 + $0x50] sm:$0xff]  }
 0x1c7   : > { %v1043_v42 = vmul.f32 %v4969_v12, %v1042_v7  ;;  %v1049_v44 = vmul.f32 %v4971_v27, %v5568_v61  ;;  %vm1055_vm12 = vweird.f32 %v4971_v27  ;;  %v392_v49 = vunpack.c.h.bf16 %v359_v37 }
 0x1c8   : > { %4972 = vrsqrt.f32 %v981_v41  ;;  %v859_v47 = vmul.f32 %v5585_v40, %v5585_v40  ;;  %vm1056_vm14 = vmor %vm1054_vm13, %vm1055_vm12  ;;  %vm1064_vm0 = vweird.f32 %v981_v41 }
 0x1c9   : > { %v1047_v54 = vsel %vm1046_vm11, %v4969_v12, %v1043_v42  ;;  %v1050_v52 = vmul.f32 %v4971_v27, %v1049_v44  ;;  %v4638_v6 = vld [vmem:[#allocation3 + $0x30] sm:$0xff] }
 0x1ca   : > { %v1331_v57 = vmul.f32 %v1047_v54, %v5265_v16  ;;  %902 = vadd.xlane.f32.xlu0 %v859_v47  ;;  %722 = vadd.xlane.f32.xlu2 %v5592_v48  ;;  %v5602_v16 = vadd.f32 %v5554_v60, %v1363_v36  ;;  %v626_v47 = vpop.f32.mrf.mxu2 }
 0x1cb   : > { %v1051_v59 = vmul.f32 0.5, %v1050_v52  ;;  %v713_v19 = vpop.xlane.xlu2 %712  ;;  %v5598_v63 = vpop.xlane.xlu0 %892  ;;  %1892 = vmatmul.bf16.vlgmr.msrb.gmra.mxu1 %v4638_v6  ;;  %1981 = vmatmul.bf16.vlgmr.msrb.gmra.mxu2 %v4638_v6 }
 0x1cc   : > { %v1364_v1 = vmul.f32 %v5532_v20, %v1331_v57  ;;  %v764_v2 = vmul.f32 0.0078125, %v713_v19  ;;  %2070 = vmatmul.bf16.vlgmr.msrb.gmra.mxu3 %v4638_v6  ;;  %2159 = vmatmul.bf16.vlgmr.msrb.gmra.mxu0 %v4638_v6  ;;  %7139 = vst [vmem:[#allocation7_spill] sm:$0xff] %v5602_v16  ;;  %v627_v57 = vadd.f32 %v5220_v15, %v626_v47 }
 0x1cd   : > { %v1052_v3 = vsub.f32 1.5, %v1051_v59 }
 0x1ce   : > { %v4973_v4 = vpop.eup %4972  ;;  %v5605_v5 = vadd.f32 %v5554_v60, %v1364_v1  ;;  %v5608_v0 = vsub.f32 %v5297_v45, %v764_v2  ;;  %v622_v45 = vadd.f32 %v5220_v15, %v621_v56  ;;  %v5650_v53 = vadd.f32 %v627_v57, %v392_v49 }
 0x1cf   : > { %v1053_v9 = vmul.f32 %v4971_v27, %v1052_v3  ;;  %v1059_v10 = vmul.f32 %v4973_v4, %v981_v41  ;;  %vm1065_vm15 = vweird.f32 %v4973_v4 }
 0x1d0   : > { %7140 = vst [vmem:[#allocation8_spill] sm:$0xff] %v5605_v5  ;;  %v4726_v12 = vpack.c.bf16 %v5605_v5, %v5602_v16  ;;  %v860_v18 = vmul.f32 %v5608_v0, %v5608_v0  ;;  %v5623_v33 = vadd.f32 %v622_v45, %v390_v22  ;;  %vm1066_vm1 = vmor %vm1064_vm0, %vm1065_vm15  ;;  %v4702_v16 = vld [vmem:[%s7103_s5 + $0x80] sm:$0xff] }
 0x1d1   : > { %v1060_v21 = vmul.f32 %v4973_v4, %v1059_v10  ;;  %v1057_v23 = vsel %vm1056_vm14, %v4971_v27, %v1053_v9 }
 0x1d2   : > { %4878 = vst [vmem:[#allocation3] sm:$0xff] %v4726_v12   ;;  %904 = vadd.xlane.f32.xlu0 %v860_v18  ;;  %724 = vadd.xlane.f32.xlu2 %v5610_v8  ;;  %v1332_v32 = vmul.f32 %v1057_v23, %v5274_v25  ;;  %v625_v25 = vadd.f32 %v5220_v15, %v624_v26  ;;  %v629_v59 = vpop.f32.mrf.mxu2 }
 0x1d3   : > { %v1061_v24 = vmul.f32 0.5, %v1060_v21  ;;  %v715_v29 = vpop.xlane.xlu0 %714  ;;  %v630_v1 = vadd.f32 %v5220_v15, %v629_v59 }
 0x1d4   : > { %v765_v30 = vmul.f32 0.0078125, %v715_v29  ;;  %v1365_v39 = vmul.f32 %v5532_v20, %v1332_v32 }
 0x1d5   : > { %v1062_v31 = vsub.f32 1.5, %v1061_v24 }
 0x1d6   : > { %v5621_v61 = vsub.f32 %v5303_v50, %v765_v30  ;;  %v391_v50 = vunpack.c.l.bf16 %v359_v37  ;;  %v5634_v54 = vadd.f32 %v5554_v60, %v1365_v39 }
 0x1d7   : > { %v1063_v34 = vmul.f32 %v4973_v4, %v1062_v31 }
 0x1d8   : > { %v861_v38 = vmul.f32 %v5621_v61, %v5621_v61  ;;  %7141 = vst [vmem:[#allocation9_spill] sm:$0xff] %v5634_v54  ;;  %v5642_v6 = vadd.f32 %v625_v25, %v391_v50 }
 0x1d9   : > { %v1067_v7 = vsel %vm1066_vm1, %v4973_v4, %v1063_v34  ;;  %v4639_v27 = vld [vmem:[#allocation3] sm:$0xff]  ;;  %v950_v4 = vmul.f32 0.0078125, %v5598_v63 }
 0x1da   : > { %v1333_v42 = vmul.f32 %v1067_v7, %v5285_v35  ;;  %726 = vadd.xlane.f32.xlu0 %v5623_v33  ;;  %906 = vadd.xlane.f32.xlu1 %v861_v38 }
 0x1db   : > { %v717_v44 = vpop.xlane.xlu0 %716  ;;  %1897 = vmatmul.bf16.gmra.mxu1 %v4639_v27  ;;  %1986 = vmatmul.bf16.gmra.mxu2 %v4639_v27  ;;  %v982_v9 = vadd.f32 1e-05, %v950_v4 }
 0x1dc   : > { %v1366_v41 = vmul.f32 %v5532_v20, %v1333_v42  ;;  %v766_v46 = vmul.f32 0.0078125, %v717_v44  ;;  %2075 = vmatmul.bf16.gmra.mxu3 %v4639_v27  ;;  %2164 = vmatmul.bf16.gmra.mxu0 %v4639_v27 }
 0x1dd   : > { %4974 = vrsqrt.f32 %v982_v9  ;;  %vm1074_vm3 = vweird.f32 %v982_v9 }
 0x1de   : > { %v5637_v35 = vadd.f32 %v5554_v60, %v1366_v41  ;;  %v5640_v52 = vsub.f32 %v5311_v55, %v766_v46  ;;  %v5653_v55 = vld [vmem:[%s5208_s21 + $0x58] sm:$0xff]  }
 0x1df   : > { %v393_v2 = vunpack.c.l.bf16 %v5653_v55 }
 0x1e0   : > { %7142 = vst [vmem:[#allocation10_spill] sm:$0xff] %v5637_v35  ;;  %v4731_v56 = vpack.c.bf16 %v5637_v35, %v5634_v54  ;;  %v862_v36 = vmul.f32 %v5640_v52, %v5640_v52 }
 0x1e1   : > { %v5658_v3 = vadd.f32 %v630_v1, %v393_v2 }
 0x1e2   : > { %4879 = vst [vmem:[#allocation3 + $0x58] sm:$0xff] %v4731_v56   ;;  %728 = vadd.xlane.f32.xlu0 %v5642_v6  ;;  %908 = vadd.xlane.f32.xlu1 %v862_v36 }
 0x1e3   : > { %v4975_v10 = vpop.eup %4974 }
 0x1e4   : > { %v1069_v12 = vmul.f32 %v4975_v10, %v982_v9  ;;  %vm1075_vm2 = vweird.f32 %v4975_v10 }
 0x1e5   : > { %vm1076_vm4 = vmor %vm1074_vm3, %vm1075_vm2 }
 0x1e6   : > { %v1070_v18 = vmul.f32 %v4975_v10, %v1069_v12 }
 0x1e8   : > { %v1071_v22 = vmul.f32 0.5, %v1070_v18 }
 0x1e9   : > { %v4640_v19 = vld [vmem:[#allocation3 + $0x58] sm:$0xff] }
 0x1ea   : > { %730 = vadd.xlane.f32.xlu1 %v5650_v53  ;;  %v1072_v23 = vsub.f32 1.5, %v1071_v22 }
 0x1eb   : > { %1902 = vmatmul.bf16.gmra.mxu1 %v4640_v19  ;;  %1991 = vmatmul.bf16.gmra.mxu2 %v4640_v19 }
 0x1ec   : > { %2080 = vmatmul.bf16.gmra.mxu3 %v4640_v19  ;;  %2169 = vmatmul.bf16.gmra.mxu0 %v4640_v19  ;;  %v1073_v31 = vmul.f32 %v4975_v10, %v1072_v23 }
 0x1ee   : > { %v1077_v34 = vsel %vm1076_vm4, %v4975_v10, %v1073_v31 }
 0x1ef   : > { %v1334_v50 = vmul.f32 %v1077_v34, %v5295_v43  ;;  %v5690_v34 = vld [vmem:[%s7100_s2] ss:$0 sm:$0xff] }
 0x1f1   : > { %v1367_v49 = vmul.f32 %v5532_v20, %v1334_v50 }
 0x1f2   : > { %732 = vadd.xlane.f32.xlu1 %v5658_v3 }
 0x1f3   : > { %v5672_v18 = vadd.f32 %v5554_v60, %v1367_v49 }
 0x1f5   : > { %7143 = vst [vmem:[#allocation11_spill] sm:$0xff] %v5672_v18 }
 0x21d   : > { %v895_v21 = vpop.xlane.xlu1 %894 }
 0x21e   : > { %v951_v45 = vmul.f32 0.0078125, %v895_v21 }
 0x220   : > { %v983_v15 = vadd.f32 1e-05, %v951_v45 }
 0x222   : > { %4976 = vrsqrt.f32 %v983_v15  ;;  %vm1084_vm6 = vweird.f32 %v983_v15 }
 0x225   : > { %v897_v24 = vpop.xlane.xlu1 %896 }
 0x226   : > { %v952_v29 = vmul.f32 0.0078125, %v897_v24 }
 0x228   : > { %v4977_v26 = vpop.eup %4976  ;;  %v984_v30 = vadd.f32 1e-05, %v952_v29 }
 0x229   : > { %v1079_v32 = vmul.f32 %v4977_v26, %v983_v15  ;;  %vm1085_vm5 = vweird.f32 %v4977_v26 }
 0x22a   : > { %4978 = vrsqrt.f32 %v984_v30  ;;  %vm1086_vm7 = vmor %vm1084_vm6, %vm1085_vm5  ;;  %vm1094_vm9 = vweird.f32 %v984_v30 }
 0x22b   : > { %v1080_v63 = vmul.f32 %v4977_v26, %v1079_v32 }
 0x22d   : > { %v1081_v37 = vmul.f32 0.5, %v1080_v63  ;;  %v899_v38 = vpop.xlane.xlu2 %898  ;;  %v719_v7 = vpop.xlane.xlu1 %718 }
 0x22e   : > { %v953_v27 = vmul.f32 0.0078125, %v899_v38  ;;  %v767_v39 = vmul.f32 0.0078125, %v719_v7 }
 0x22f   : > { %v1082_v42 = vsub.f32 1.5, %v1081_v37 }
 0x230   : > { %v4979_v25 = vpop.eup %4978  ;;  %v985_v44 = vadd.f32 1e-05, %v953_v27  ;;  %v5664_v41 = vsub.f32 %v5547_v58, %v767_v39  ;;  %v634_v58 = vpop.f32.mrf.mxu3 }
 0x231   : > { %v1083_v46 = vmul.f32 %v4977_v26, %v1082_v42  ;;  %v1089_v47 = vmul.f32 %v4979_v25, %v984_v30  ;;  %vm1095_vm8 = vweird.f32 %v4979_v25  ;;  %v394_v30 = vunpack.c.h.bf16 %v5653_v55 }
 0x232   : > { %4980 = vrsqrt.f32 %v985_v44  ;;  %v863_v56 = vmul.f32 %v5664_v41, %v5664_v41  ;;  %vm1096_vm10 = vmor %vm1094_vm9, %vm1095_vm8  ;;  %vm1104_vm12 = vweird.f32 %v985_v44 }
 0x233   : > { %v1087_v36 = vsel %vm1086_vm7, %v4977_v26, %v1083_v46  ;;  %v1090_v57 = vmul.f32 %v4979_v25, %v1089_v47  ;;  %v631_v26 = vpop.f32.mrf.mxu2  ;;  %v5703_v47 = vld [vmem:[%s5208_s21 + $0x60] sm:$0xff]  }
 0x234   : > { %v1335_v59 = vmul.f32 %v1087_v36, %v5498_v62  ;;  %910 = vadd.xlane.f32.xlu2 %v863_v56  ;;  %v632_v37 = vadd.f32 %v5690_v34, %v631_v26 }
 0x235   : > { %v1091_v43 = vmul.f32 0.5, %v1090_v57  ;;  %v901_v19 = vpop.xlane.xlu2 %900  ;;  %v721_v1 = vpop.xlane.xlu1 %720 }
 0x236   : > { %v1368_v2 = vmul.f32 %v5532_v20, %v1335_v59  ;;  %v954_v4 = vmul.f32 0.0078125, %v901_v19  ;;  %v768_v9 = vmul.f32 0.0078125, %v721_v1  ;;  %v5710_v57 = vadd.f32 %v632_v37, %v394_v30 }
 0x237   : > { %v1092_v10 = vsub.f32 1.5, %v1091_v43  ;;  %v395_v43 = vunpack.c.l.bf16 %v5703_v47 }
 0x238   : > { %v4981_v12 = vpop.eup %4980  ;;  %v5675_v21 = vadd.f32 %v5554_v60, %v1368_v2  ;;  %v5677_v45 = vadd.f32 1e-05, %v954_v4  ;;  %v5680_v62 = vsub.f32 %v5560_v11, %v768_v9  ;;  %v636_v42 = vpop.f32.mrf.mxu3 }
 0x239   : > { %v1093_v15 = vmul.f32 %v4979_v25, %v1092_v10  ;;  %v1099_v22 = vmul.f32 %v4981_v12, %v985_v44  ;;  %vm1105_vm11 = vweird.f32 %v4981_v12 }
 0x23a   : > { %7144 = vst [vmem:[#allocation12_spill] sm:$0xff] %v5675_v21  ;;  %v4736_v23 = vpack.c.bf16 %v5675_v21, %v5672_v18  ;;  %4982 = vrsqrt.f32 %v5677_v45  ;;  %v864_v24 = vmul.f32 %v5680_v62, %v5680_v62  ;;  %vm1106_vm13 = vmor %vm1104_vm12, %vm1105_vm11  ;;  %vm1114_vm15 = vweird.f32 %v5677_v45 }
 0x23b   : > { %v1100_v29 = vmul.f32 %v4981_v12, %v1099_v22  ;;  %v1097_v31 = vsel %vm1096_vm10, %v4979_v25, %v1093_v15 }
 0x23c   : > { %4880 = vst [vmem:[#allocation3 + $0x18] sm:$0xff] %v4736_v23   ;;  %912 = vadd.xlane.f32.xlu2 %v864_v24  ;;  %v1336_v25 = vmul.f32 %v1097_v31, %v5521_v28  ;;  %v635_v28 = vadd.f32 %v5690_v34, %v634_v58 }
 0x23d   : > { %v1101_v11 = vmul.f32 0.5, %v1100_v29  ;;  %v723_v32 = vpop.xlane.xlu2 %722  ;;  %v903_v63 = vpop.xlane.xlu0 %902 }
 0x23e   : > { %v769_v38 = vmul.f32 0.0078125, %v723_v32  ;;  %v955_v7 = vmul.f32 0.0078125, %v903_v63  ;;  %v1369_v44 = vmul.f32 %v5532_v20, %v1336_v25  ;;  %v5719_v15 = vadd.f32 %v635_v28, %v395_v43  ;;  %v365_v43 = vld [vmem:[%s5208_s21 + $0x68] sm:$0xff]  }
 0x23f   : > { %v1102_v27 = vsub.f32 1.5, %v1101_v11 }
 0x240   : > { %v5694_v39 = vpop.eup %4982  ;;  %v5698_v50 = vsub.f32 %v5592_v48, %v769_v38  ;;  %v5700_v46 = vadd.f32 1e-05, %v955_v7  ;;  %v639_v11 = vpop.f32.mrf.mxu3 }
 0x241   : > { %v1103_v56 = vmul.f32 %v4981_v12, %v1102_v27  ;;  %v1109_v36 = vmul.f32 %v5694_v39, %v5677_v45  ;;  %vm1115_vm14 = vweird.f32 %v5694_v39 }
 0x242   : > { %4984 = vrsqrt.f32 %v5700_v46  ;;  %v865_v55 = vmul.f32 %v5698_v50, %v5698_v50  ;;  %vm1116_vm0 = vmor %vm1114_vm15, %vm1115_vm14  ;;  %vm1124_vm2 = vweird.f32 %v5700_v46 }
 0x243   : > { %v1107_v48 = vsel %vm1106_vm13, %v4981_v12, %v1103_v56  ;;  %v1110_v49 = vmul.f32 %v5694_v39, %v1109_v36  ;;  %v4641_v59 = vld [vmem:[#allocation3 + $0x18] sm:$0xff]  ;;  %v637_v56 = vadd.f32 %v5690_v34, %v636_v42  ;;  %v396_v36 = vunpack.c.h.bf16 %v5703_v47 }
 0x244   : > { %v1337_v19 = vmul.f32 %v1107_v48, %v5538_v51  ;;  %914 = vadd.xlane.f32.xlu0 %v865_v55  ;;  %734 = vadd.xlane.f32.xlu2 %v5710_v57  ;;  %v5722_v51 = vadd.f32 %v5554_v60, %v1369_v44 }
 0x245   : > { %v1111_v1 = vmul.f32 0.5, %v1110_v49  ;;  %v725_v2 = vpop.xlane.xlu2 %724  ;;  %v905_v4 = vpop.xlane.xlu0 %904  ;;  %1907 = vmatmul.bf16.gmra.mxu1 %v4641_v59  ;;  %1996 = vmatmul.bf16.gmra.mxu2 %v4641_v59 }
 0x246   : > { %v1370_v58 = vmul.f32 %v5532_v20, %v1337_v19  ;;  %v770_v9 = vmul.f32 0.0078125, %v725_v2  ;;  %v956_v10 = vmul.f32 0.0078125, %v905_v4  ;;  %2085 = vmatmul.bf16.gmra.mxu3 %v4641_v59  ;;  %2174 = vmatmul.bf16.gmra.mxu0 %v4641_v59  ;;  %7145 = vst [vmem:[#allocation13_spill] sm:$0xff] %v5722_v51  ;;  %v5752_v19 = vadd.f32 %v637_v56, %v396_v36 }
 0x247   : > { %v1112_v12 = vsub.f32 1.5, %v1111_v1  ;;  %v398_v36 = vunpack.c.h.bf16 %v365_v43 }
 0x248   : > { %v4985_v22 = vpop.eup %4984  ;;  %v5725_v23 = vadd.f32 %v5554_v60, %v1370_v58  ;;  %v5728_v24 = vsub.f32 %v5610_v8, %v770_v9  ;;  %v5730_v29 = vadd.f32 1e-05, %v956_v10  ;;  %v641_v1 = vpop.f32.mrf.mxu3  ;;  %v397_v10 = vunpack.c.l.bf16 %v365_v43 }
 0x249   : > { %v1113_v26 = vmul.f32 %v5694_v39, %v1112_v12  ;;  %v1119_v31 = vmul.f32 %v4985_v22, %v5700_v46  ;;  %vm1125_vm1 = vweird.f32 %v4985_v22  ;;  %v640_v46 = vadd.f32 %v5690_v34, %v639_v11 }
 0x24a   : > { %7146 = vst [vmem:[#allocation14_spill] sm:$0xff] %v5725_v23  ;;  %v4741_v32 = vpack.c.bf16 %v5725_v23, %v5722_v51  ;;  %4986 = vrsqrt.f32 %v5730_v29  ;;  %v866_v8 = vmul.f32 %v5728_v24, %v5728_v24  ;;  %vm1126_vm3 = vmor %vm1124_vm2, %vm1125_vm1  ;;  %vm1134_vm5 = vweird.f32 %v5730_v29 }
 0x24b   : > { %v1120_v63 = vmul.f32 %v4985_v22, %v1119_v31  ;;  %v1117_v37 = vsel %vm1116_vm0, %v5694_v39, %v1113_v26  ;;  %v642_v56 = vadd.f32 %v5690_v34, %v641_v1  ;;  %v367_v1 = vld [vmem:[%s5208_s21 + $0x70] sm:$0xff]  }
 0x24c   : > { %4881 = vst [vmem:[#allocation3 + $0x50] sm:$0xff] %v4741_v32   ;;  %736 = vadd.xlane.f32.xlu2 %v5719_v15  ;;  %916 = vadd.xlane.f32.xlu0 %v866_v8  ;;  %v1338_v28 = vmul.f32 %v1117_v37, %v5571_v17  ;;  %v5772_v37 = vadd.f32 %v640_v46, %v397_v10  ;;  %v399_v46 = vunpack.c.l.bf16 %v367_v1 }
 0x24d   : > { %v1121_v38 = vmul.f32 0.5, %v1120_v63  ;;  %v907_v7 = vpop.xlane.xlu1 %906  ;;  %v727_v30 = vpop.xlane.xlu0 %726 }
 0x24e   : > { %v957_v27 = vmul.f32 0.0078125, %v907_v7  ;;  %v771_v25 = vmul.f32 0.0078125, %v727_v30 }
 0x24f   : > { %v1122_v45 = vsub.f32 1.5, %v1121_v38 }
 0x250   : > { %v4987_v55 = vpop.eup %4986  ;;  %v989_v48 = vadd.f32 1e-05, %v957_v27  ;;  %v5747_v49 = vsub.f32 %v5623_v33, %v771_v25  ;;  %v1371_v33 = vmul.f32 %v5532_v20, %v1338_v28  ;;  %v644_v28 = vpop.f32.mrf.mxu3 }
 0x251   : > { %v1123_v39 = vmul.f32 %v4985_v22, %v1122_v45  ;;  %v1129_v59 = vmul.f32 %v4987_v55, %v5730_v29  ;;  %vm1135_vm4 = vweird.f32 %v4987_v55 }
 0x252   : > { %4988 = vrsqrt.f32 %v989_v48  ;;  %v867_v47 = vmul.f32 %v5747_v49, %v5747_v49  ;;  %vm1136_vm6 = vmor %vm1134_vm5, %vm1135_vm4  ;;  %vm1144_vm8 = vweird.f32 %v989_v48 }
 0x253   : > { %v1127_v42 = vsel %vm1126_vm3, %v4985_v22, %v1123_v39  ;;  %v1130_v44 = vmul.f32 %v4987_v55, %v1129_v59  ;;  %v4642_v17 = vld [vmem:[#allocation3 + $0x50] sm:$0xff] }
 0x254   : > { %v1339_v2 = vmul.f32 %v1127_v42, %v5585_v40  ;;  %738 = vadd.xlane.f32.xlu0 %v5752_v19  ;;  %918 = vadd.xlane.f32.xlu1 %v867_v47  ;;  %v5764_v40 = vadd.f32 %v5554_v60, %v1371_v33 }
 0x255   : > { %v1131_v4 = vmul.f32 0.5, %v1130_v44  ;;  %v5760_v58 = vpop.xlane.xlu1 %908  ;;  %v729_v9 = vpop.xlane.xlu0 %728  ;;  %1912 = vmatmul.bf16.gmra.mxu1 %v4642_v17  ;;  %2001 = vmatmul.bf16.gmra.mxu2 %v4642_v17  ;;  %v5787_v44 = vadd.f32 %v642_v56, %v398_v36 }
 0x256   : > { %v1372_v12 = vmul.f32 %v5532_v20, %v1339_v2  ;;  %v772_v22 = vmul.f32 0.0078125, %v729_v9  ;;  %2090 = vmatmul.bf16.gmra.mxu3 %v4642_v17  ;;  %2179 = vmatmul.bf16.gmra.mxu0 %v4642_v17  ;;  %7147 = vst [vmem:[#allocation15_spill] sm:$0xff] %v5764_v40 }
 0x257   : > { %v1132_v26 = vsub.f32 1.5, %v1131_v4 }
 0x258   : > { %v4989_v31 = vpop.eup %4988  ;;  %v5767_v11 = vadd.f32 %v5554_v60, %v1372_v12  ;;  %v5770_v32 = vsub.f32 %v5642_v6, %v772_v22  ;;  %v646_v10 = vpop.f32.mrf.mxu3 }
 0x259   : > { %v1133_v63 = vmul.f32 %v4987_v55, %v1132_v26  ;;  %v1139_v8 = vmul.f32 %v4989_v31, %v989_v48  ;;  %vm1145_vm7 = vweird.f32 %v4989_v31 }
 0x25a   : > { %7148 = vst [vmem:[#allocation16_spill] sm:$0xff] %v5767_v11  ;;  %v4746_v38 = vpack.c.bf16 %v5767_v11, %v5764_v40  ;;  %v868_v30 = vmul.f32 %v5770_v32, %v5770_v32  ;;  %vm1146_vm9 = vmor %vm1144_vm8, %vm1145_vm7 }
 0x25b   : > { %v1140_v7 = vmul.f32 %v4989_v31, %v1139_v8  ;;  %v1137_v27 = vsel %vm1136_vm6, %v4987_v55, %v1133_v63  ;;  %v400_v63 = vunpack.c.h.bf16 %v367_v1 }
 0x25c   : > { %4882 = vst [vmem:[#allocation3 + $0x68] sm:$0xff] %v4746_v38   ;;  %740 = vadd.xlane.f32.xlu0 %v5772_v37  ;;  %920 = vadd.xlane.f32.xlu1 %v868_v30  ;;  %v1340_v29 = vmul.f32 %v1137_v27, %v5608_v0 }
 0x25d   : > { %v1141_v25 = vmul.f32 0.5, %v1140_v7  ;;  %v731_v6 = vpop.xlane.xlu1 %730 }
 0x25e   : > { %v773_v45 = vmul.f32 0.0078125, %v731_v6  ;;  %v1373_v43 = vmul.f32 %v5532_v20, %v1340_v29  ;;  %v958_v6 = vmul.f32 0.0078125, %v5760_v58 }
 0x25f   : > { %v1142_v39 = vsub.f32 1.5, %v1141_v25 }
 0x260   : > { %v5783_v59 = vsub.f32 %v5650_v53, %v773_v45  ;;  %v645_v53 = vadd.f32 %v5690_v34, %v644_v28  ;;  %v5796_v4 = vadd.f32 %v5554_v60, %v1373_v43  ;;  %v649_v38 = vpop.f32.mrf.mxu3  ;;  %v990_v56 = vadd.f32 1e-05, %v958_v6 }
 0x261   : > { %v1143_v42 = vmul.f32 %v4989_v31, %v1142_v39  ;;  %v650_v30 = vadd.f32 %v5690_v34, %v649_v38 }
 0x262   : > { %v869_v55 = vmul.f32 %v5783_v59, %v5783_v59  ;;  %7149 = vst [vmem:[#allocation17_spill] sm:$0xff] %v5796_v4  ;;  %v5808_v26 = vadd.f32 %v645_v53, %v399_v46  ;;  %4990 = vrsqrt.f32 %v990_v56  ;;  %vm1154_vm11 = vweird.f32 %v990_v56 }
 0x263   : > { %v1147_v47 = vsel %vm1146_vm9, %v4989_v31, %v1143_v42  ;;  %v4643_v17 = vld [vmem:[#allocation3 + $0x68] sm:$0xff]  ;;  %v647_v31 = vadd.f32 %v5690_v34, %v646_v10 }
 0x264   : > { %v1341_v33 = vmul.f32 %v1147_v47, %v5621_v61  ;;  %922 = vadd.xlane.f32.xlu2 %v869_v55  ;;  %742 = vadd.xlane.f32.xlu1 %v5787_v44 }
 0x265   : > { %v733_v0 = vpop.xlane.xlu1 %732  ;;  %1917 = vmatmul.bf16.gmra.mxu1 %v4643_v17  ;;  %2006 = vmatmul.bf16.gmra.mxu2 %v4643_v17  ;;  %v5812_v8 = vadd.f32 %v647_v31, %v400_v63 }
 0x266   : > { %v1374_v2 = vmul.f32 %v5532_v20, %v1341_v33  ;;  %v774_v48 = vmul.f32 0.0078125, %v733_v0  ;;  %2095 = vmatmul.bf16.gmra.mxu3 %v4643_v17  ;;  %2184 = vmatmul.bf16.gmra.mxu0 %v4643_v17 }
 0x268   : > { %v5799_v9 = vadd.f32 %v5554_v60, %v1374_v2  ;;  %v5802_v61 = vsub.f32 %v5658_v3, %v774_v48  ;;  %v5815_v3 = vld [vmem:[%s5208_s21 + $0x78] sm:$0xff]   ;;  %v4991_v45 = vpop.eup %4990 }
 0x269   : > { %v401_v27 = vunpack.c.l.bf16 %v5815_v3  ;;  %v1149_v36 = vmul.f32 %v4991_v45, %v990_v56  ;;  %vm1155_vm10 = vweird.f32 %v4991_v45 }
 0x26a   : > { %7150 = vst [vmem:[#allocation18_spill] sm:$0xff] %v5799_v9  ;;  %v4751_v12 = vpack.c.bf16 %v5799_v9, %v5796_v4  ;;  %v870_v22 = vmul.f32 %v5802_v61, %v5802_v61  ;;  %vm1156_vm12 = vmor %vm1154_vm11, %vm1155_vm10 }
 0x26b   : > { %v5820_v25 = vadd.f32 %v650_v30, %v401_v27  ;;  %v1150_v28 = vmul.f32 %v4991_v45, %v1149_v36 }
 0x26c   : > { %4883 = vst [vmem:[#allocation3 + $0x8] sm:$0xff] %v4751_v12   ;;  %924 = vadd.xlane.f32.xlu2 %v870_v22  ;;  %744 = vadd.xlane.f32.xlu1 %v5808_v26 }
 0x26d   : > { %v1151_v55 = vmul.f32 0.5, %v1150_v28 }
 0x26f   : > { %v1152_v47 = vsub.f32 1.5, %v1151_v55 }
 0x271   : > { %v1153_v0 = vmul.f32 %v4991_v45, %v1152_v47 }
 0x273   : > { %v4644_v7 = vld [vmem:[#allocation3 + $0x8] sm:$0xff]  ;;  %v1157_v2 = vsel %vm1156_vm12, %v4991_v45, %v1153_v0 }
 0x274   : > { %746 = vadd.xlane.f32.xlu2 %v5812_v8  ;;  %v1342_v38 = vmul.f32 %v1157_v2, %v5640_v52 }
 0x275   : > { %1922 = vmatmul.bf16.gmra.mxu1 %v4644_v7  ;;  %2011 = vmatmul.bf16.gmra.mxu2 %v4644_v7 }
 0x276   : > { %2100 = vmatmul.bf16.gmra.mxu3 %v4644_v7  ;;  %2189 = vmatmul.bf16.gmra.mxu0 %v4644_v7  ;;  %v1375_v28 = vmul.f32 %v5532_v20, %v1342_v38 }
 0x278   : > { %v5834_v0 = vadd.f32 %v5554_v60, %v1375_v28 }
 0x27a   : > { %7151 = vst [vmem:[#allocation19_spill] sm:$0xff] %v5834_v0 }
 0x27c   : > { %748 = vadd.xlane.f32.xlu2 %v5820_v25 }
 0x2a7   : > { %v911_v39 = vpop.xlane.xlu2 %910 }
 0x2a8   : > { %v959_v29 = vmul.f32 0.0078125, %v911_v39 }
 0x2aa   : > { %v991_v42 = vadd.f32 1e-05, %v959_v29 }
 0x2ac   : > { %4992 = vrsqrt.f32 %v991_v42  ;;  %vm1164_vm14 = vweird.f32 %v991_v42 }
 0x2af   : > { %v913_v17 = vpop.xlane.xlu2 %912 }
 0x2b0   : > { %v960_v1 = vmul.f32 0.0078125, %v913_v17 }
 0x2b2   : > { %v4993_v43 = vpop.eup %4992  ;;  %v992_v33 = vadd.f32 1e-05, %v960_v1 }
 0x2b3   : > { %v1159_v53 = vmul.f32 %v4993_v43, %v991_v42  ;;  %vm1165_vm13 = vweird.f32 %v4993_v43 }
 0x2b4   : > { %4994 = vrsqrt.f32 %v992_v33  ;;  %vm1166_vm15 = vmor %vm1164_vm14, %vm1165_vm13  ;;  %vm1174_vm1 = vweird.f32 %v992_v33 }
 0x2b5   : > { %v1160_v58 = vmul.f32 %v4993_v43, %v1159_v53 }
 0x2b7   : > { %v1161_v48 = vmul.f32 0.5, %v1160_v58  ;;  %v735_v46 = vpop.xlane.xlu2 %734  ;;  %v915_v10 = vpop.xlane.xlu0 %914 }
 0x2b8   : > { %v775_v12 = vmul.f32 0.0078125, %v735_v46  ;;  %v961_v22 = vmul.f32 0.0078125, %v915_v10 }
 0x2b9   : > { %v1162_v31 = vsub.f32 1.5, %v1161_v48 }
 0x2ba   : > { %v4995_v63 = vpop.eup %4994  ;;  %v5826_v7 = vsub.f32 %v5710_v57, %v775_v12  ;;  %v993_v30 = vadd.f32 1e-05, %v961_v22  ;;  %v651_v12 = vpop.f32.mrf.mxu3 }
 0x2bb   : > { %v1163_v27 = vmul.f32 %v4993_v43, %v1162_v31  ;;  %v1169_v6 = vmul.f32 %v4995_v63, %v992_v33  ;;  %vm1175_vm0 = vweird.f32 %v4995_v63  ;;  %v652_v31 = vadd.f32 %v5690_v34, %v651_v12 }
 0x2bc   : > { %4996 = vrsqrt.f32 %v993_v30  ;;  %v871_v56 = vmul.f32 %v5826_v7, %v5826_v7  ;;  %vm1176_vm2 = vmor %vm1174_vm1, %vm1175_vm0  ;;  %vm1184_vm4 = vweird.f32 %v993_v30 }
 0x2bd   : > { %v1167_v45 = vsel %vm1166_vm15, %v4993_v43, %v1163_v27  ;;  %v1170_v36 = vmul.f32 %v4995_v63, %v1169_v6  ;;  %v402_v6 = vunpack.c.h.bf16 %v5815_v3 }
 0x2be   : > { %v1343_v39 = vmul.f32 %v1167_v45, %v5664_v41  ;;  %926 = vadd.xlane.f32.xlu0 %v871_v56 }
 0x2bf   : > { %v1171_v52 = vmul.f32 0.5, %v1170_v36  ;;  %v737_v29 = vpop.xlane.xlu2 %736  ;;  %v917_v47 = vpop.xlane.xlu0 %916  ;;  %v5852_v34 = vadd.f32 %v652_v31, %v402_v6 }
 0x2c0   : > { %v1376_v57 = vmul.f32 %v5532_v20, %v1343_v39  ;;  %v776_v55 = vmul.f32 0.0078125, %v737_v29  ;;  %v962_v17 = vmul.f32 0.0078125, %v917_v47 }
 0x2c1   : > { %v1172_v42 = vsub.f32 1.5, %v1171_v52 }
 0x2c2   : > { %v4997_v1 = vpop.eup %4996  ;;  %v5837_v43 = vadd.f32 %v5554_v60, %v1376_v57  ;;  %v5840_v53 = vsub.f32 %v5719_v15, %v776_v55  ;;  %v994_v2 = vadd.f32 1e-05, %v962_v17 }
 0x2c3   : > { %v1173_v41 = vmul.f32 %v4995_v63, %v1172_v42  ;;  %v1179_v58 = vmul.f32 %v4997_v1, %v993_v30  ;;  %vm1185_vm3 = vweird.f32 %v4997_v1 }
 0x2c4   : > { %7152 = vst [vmem:[#allocation20_spill] sm:$0xff] %v5837_v43  ;;  %v4756_v48 = vpack.c.bf16 %v5837_v43, %v5834_v0  ;;  %v872_v46 = vmul.f32 %v5840_v53, %v5840_v53  ;;  %4998 = vrsqrt.f32 %v994_v2  ;;  %vm1186_vm5 = vmor %vm1184_vm4, %vm1185_vm3  ;;  %vm1194_vm7 = vweird.f32 %v994_v2 }
 0x2c5   : > { %v1180_v10 = vmul.f32 %v4997_v1, %v1179_v58  ;;  %v1177_v22 = vsel %vm1176_vm2, %v4995_v63, %v1173_v41 }
 0x2c6   : > { %4884 = vst [vmem:[#allocation3 + $0x48] sm:$0xff] %v4756_v48   ;;  %928 = vadd.xlane.f32.xlu0 %v872_v46  ;;  %v1344_v33 = vmul.f32 %v1177_v22, %v5680_v62 }
 0x2c7   : > { %v1181_v15 = vmul.f32 0.5, %v1180_v10  ;;  %v919_v38 = vpop.xlane.xlu1 %918  ;;  %v739_v27 = vpop.xlane.xlu0 %738 }
 0x2c8   : > { %v963_v45 = vmul.f32 0.0078125, %v919_v38  ;;  %v777_v36 = vmul.f32 0.0078125, %v739_v27  ;;  %v1377_v55 = vmul.f32 %v5532_v20, %v1344_v33 }
 0x2c9   : > { %v1182_v56 = vsub.f32 1.5, %v1181_v15 }
 0x2ca   : > { %v4999_v28 = vpop.eup %4998  ;;  %v995_v52 = vadd.f32 1e-05, %v963_v45  ;;  %v5850_v29 = vsub.f32 %v5752_v19, %v777_v36  ;;  %v5861_v58 = vadd.f32 %v5554_v60, %v1377_v55 }
 0x2cb   : > { %v1183_v39 = vmul.f32 %v4997_v1, %v1182_v56  ;;  %v1189_v63 = vmul.f32 %v4999_v28, %v994_v2  ;;  %vm1195_vm6 = vweird.f32 %v4999_v28  ;;  %v4701_v2 = vld [vmem:[%s7103_s5 + $0x78] sm:$0xff] }
 0x2cc   : > { %5000 = vrsqrt.f32 %v995_v52  ;;  %v873_v62 = vmul.f32 %v5850_v29, %v5850_v29  ;;  %7153 = vst [vmem:[#allocation21_spill] sm:$0xff] %v5861_v58  ;;  %vm1196_vm8 = vmor %vm1194_vm7, %vm1195_vm6  ;;  %vm1204_vm10 = vweird.f32 %v995_v52  ;;  %2809 = vmatpush.bf16.msra.mxu2 %v4701_v2 }
 0x2cd   : > { %v1187_v57 = vsel %vm1186_vm5, %v4997_v1, %v1183_v39  ;;  %v4645_v3 = vld [vmem:[#allocation3 + $0x48] sm:$0xff]  ;;  %v1190_v42 = vmul.f32 %v4999_v28, %v1189_v63  ;;  %v4709_v63 = vld [vmem:[%s7103_s5 + $0xb8] sm:$0xff] }
 0x2ce   : > { %v1345_v47 = vmul.f32 %v1187_v57, %v5698_v50  ;;  %750 = vadd.xlane.f32.xlu0 %v5852_v34  ;;  %1927 = vmatmul.bf16.gmra.mxu1 %v4645_v3 }
 0x2cf   : > { %2016 = vmatmul.bf16.gmra.mxu2 %v4645_v3  ;;  %v1191_v30 = vmul.f32 0.5, %v1190_v42  ;;  %930 = vadd.xlane.f32.xlu1 %v873_v62  ;;  %v741_v17 = vpop.xlane.xlu0 %740  ;;  %v921_v1 = vpop.xlane.xlu1 %920  ;;  %v4693_v42 = vld [vmem:[%s7103_s5 + $0x38] sm:$0xff] }
 0x2d0   : > { %v1378_v19 = vmul.f32 %v5532_v20, %v1345_v47  ;;  %2105 = vmatmul.bf16.gmra.mxu3 %v4645_v3  ;;  %v778_v41 = vmul.f32 0.0078125, %v741_v17  ;;  %2194 = vmatmul.bf16.gmra.mxu0 %v4645_v3  ;;  %v964_v46 = vmul.f32 0.0078125, %v921_v1 }
 0x2d1   : > { %v1192_v48 = vsub.f32 1.5, %v1191_v30  ;;  %2898 = vmatpush.bf16.msra.mxu3 %v4709_v63  ;;  %2720 = vmatpush.bf16.msra.mxu1 %v4693_v42  ;;  %v4716_v63 = vld [vmem:[%s7103_s5 + $0xf0] sm:$0xff] }
 0x2d2   : > { %v5864_v50 = vadd.f32 %v5554_v60, %v1378_v19  ;;  %v5001_v10 = vpop.eup %5000  ;;  %v5867_v12 = vsub.f32 %v5772_v37, %v778_v41  ;;  %v5871_v31 = vadd.f32 1e-05, %v964_v46  ;;  %v4717_v41 = vld [vmem:[%s7103_s5 + $0xf8] sm:$0xff] }
 0x2d3   : > { %v1193_v22 = vmul.f32 %v4999_v28, %v1192_v48  ;;  %v1199_v15 = vmul.f32 %v5001_v10, %v995_v52  ;;  %vm1205_vm9 = vweird.f32 %v5001_v10  ;;  %2987 = vmatpush.bf16.msra.mxu0 %v4717_v41 }
 0x2d4   : > { %7154 = vst [vmem:[#allocation22_spill] sm:$0xff] %v5864_v50  ;;  %v4761_v20 = vpack.c.bf16 %v5864_v50, %v5861_v58  ;;  %v874_v60 = vmul.f32 %v5867_v12, %v5867_v12  ;;  %5002 = vrsqrt.f32 %v5871_v31  ;;  %vm1206_vm11 = vmor %vm1204_vm10, %vm1205_vm9  ;;  %vm1214_vm13 = vweird.f32 %v5871_v31 }
 0x2d5   : > { %v1200_v38 = vmul.f32 %v5001_v10, %v1199_v15  ;;  %v1197_v37 = vsel %vm1196_vm8, %v4999_v28, %v1193_v22 }
 0x2d6   : > { %4885 = vst [vmem:[#allocation3 + $0x40] sm:$0xff] %v4761_v20   ;;  %v1346_v57 = vmul.f32 %v1197_v37, %v5728_v24 }
 0x2d7   : > { %v923_v27 = vpop.xlane.xlu2 %922  ;;  %v1201_v6 = vmul.f32 0.5, %v1200_v38  ;;  %932 = vadd.xlane.f32.xlu1 %v874_v60  ;;  %v743_v45 = vpop.xlane.xlu1 %742  ;;  %2988 = vmatpush.bf16.msra.mxu0 %v4716_v63  ;;  %v4715_v63 = vld [vmem:[%s7103_s5 + $0xe8] sm:$0xff] }
 0x2d8   : > { %v965_v56 = vmul.f32 0.0078125, %v923_v27  ;;  %v779_v39 = vmul.f32 0.0078125, %v743_v45  ;;  %v4700_v45 = vld [vmem:[%s7103_s5 + $0x70] sm:$0xff] }
 0x2d9   : > { %v1202_v36 = vsub.f32 1.5, %v1201_v6  ;;  %2810 = vmatpush.bf16.msra.mxu2 %v4700_v45  ;;  %v4707_v45 = vld [vmem:[%s7103_s5 + $0xa8] sm:$0xff] }
 0x2da   : > { %v5876_v33 = vadd.f32 1e-05, %v965_v56  ;;  %v5887_v3 = vsub.f32 %v5787_v44, %v779_v39  ;;  %v5003_v55 = vpop.eup %5002  ;;  %v5898_v44 = vld [vmem:[%s7100_s2 + $0x1] ss:$0 sm:$0xff]  ;;  %v4692_v39 = vld [vmem:[%s7103_s5 + $0x30] sm:$0xff] }
 0x2db   : > { %v1203_v28 = vmul.f32 %v5001_v10, %v1202_v36  ;;  %v1209_v19 = vmul.f32 %v5003_v55, %v5871_v31  ;;  %v1379_v52 = vmul.f32 %v5898_v44, %v1346_v57  ;;  %vm1215_vm12 = vweird.f32 %v5003_v55  ;;  %v4708_v36 = vld [vmem:[%s7103_s5 + $0xb0] sm:$0xff]  ;;  %2721 = vmatpush.bf16.msra.mxu1 %v4692_v39  ;;  %2989 = vmatpush.bf16.msra.mxu0 %v4715_v63 }
 0x2dc   : > { %5004 = vrsqrt.f32 %v5876_v33  ;;  %v875_v24 = vmul.f32 %v5887_v3, %v5887_v3  ;;  %vm1216_vm14 = vmor %vm1214_vm13, %vm1215_vm12  ;;  %2899 = vmatpush.bf16.msra.mxu3 %v4708_v36  ;;  %vm1224_vm0 = vweird.f32 %v5876_v33 }
 0x2dd   : > { %v4646_v47 = vld [vmem:[#allocation3 + $0x40] sm:$0xff]  ;;  %v1207_v62 = vsel %vm1206_vm11, %v5001_v10, %v1203_v28  ;;  %v1210_v1 = vmul.f32 %v5003_v55, %v1209_v19 }
 0x2de   : > { %v1347_v30 = vmul.f32 %v1207_v62, %v5747_v49  ;;  %1932 = vmatmul.bf16.gmra.mxu1 %v4646_v47  ;;  %934 = vadd.xlane.f32.xlu2 %v875_v24  ;;  %v5911_v49 = vld [vmem:[%s7100_s2 + $0x2] ss:$0 sm:$0xff] }
 0x2df   : > { %v5902_v17 = vpop.xlane.xlu2 %924  ;;  %2021 = vmatmul.bf16.gmra.mxu2 %v4646_v47  ;;  %v745_v46 = vpop.xlane.xlu1 %744  ;;  %v1211_v20 = vmul.f32 0.5, %v1210_v1  ;;  %v5914_v15 = vadd.f32 %v5911_v49, %v1379_v52 }
 0x2e0   : > { %2110 = vmatmul.bf16.gmra.mxu3 %v4646_v47  ;;  %v1380_v48 = vmul.f32 %v5898_v44, %v1347_v30  ;;  %2199 = vmatmul.bf16.gmra.mxu0 %v4646_v47  ;;  %v780_v22 = vmul.f32 0.0078125, %v745_v46 }
 0x2e1   : > { %7155 = vst [vmem:[#allocation23_spill] sm:$0xff] %v5914_v15  ;;  %v1212_v27 = vsub.f32 1.5, %v1211_v20  ;;  %2900 = vmatpush.bf16.msra.mxu3 %v4707_v45 }
 0x2e2   : > { %v5005_v10 = vpop.eup %5004  ;;  %v5917_v38 = vadd.f32 %v5911_v49, %v1380_v48  ;;  %v5921_v37 = vsub.f32 %v5808_v26, %v780_v22 }
 0x2e3   : > { %v1219_v60 = vmul.f32 %v5005_v10, %v5876_v33  ;;  %v1213_v2 = vmul.f32 %v5003_v55, %v1212_v27  ;;  %vm1225_vm15 = vweird.f32 %v5005_v10 }
 0x2e4   : > { %7156 = vst [vmem:[#allocation24_spill] sm:$0xff] %v5917_v38  ;;  %v4766_v6 = vpack.c.bf16 %v5917_v38, %v5914_v15  ;;  %v876_v26 = vmul.f32 %v5921_v37, %v5921_v37  ;;  %vm1226_vm1 = vmor %vm1224_vm0, %vm1225_vm15 }
 0x2e5   : > { %v1220_v56 = vmul.f32 %v5005_v10, %v1219_v60  ;;  %v1217_v47 = vsel %vm1216_vm14, %v5003_v55, %v1213_v2  ;;  %v966_v60 = vmul.f32 0.0078125, %v5902_v17  ;;  %v4691_v17 = vld [vmem:[%s7103_s5 + $0x28] sm:$0xff] }
 0x2e6   : > { %4886 = vst [vmem:[#allocation3 + $0x20] sm:$0xff] %v4766_v6   ;;  %936 = vadd.xlane.f32.xlu0 %v876_v26  ;;  %v1348_v31 = vmul.f32 %v1217_v47, %v5770_v32  ;;  %2722 = vmatpush.bf16.msra.mxu1 %v4691_v17 }
 0x2e7   : > { %v1221_v57 = vmul.f32 0.5, %v1220_v56  ;;  %v747_v28 = vpop.xlane.xlu2 %746  ;;  %v998_v27 = vadd.f32 1e-05, %v966_v60  ;;  %v4699_v56 = vld [vmem:[%s7103_s5 + $0x68] sm:$0xff] }
 0x2e8   : > { %v781_v42 = vmul.f32 0.0078125, %v747_v28  ;;  %v1381_v55 = vmul.f32 %v5898_v44, %v1348_v31  ;;  %2811 = vmatpush.bf16.msra.mxu2 %v4699_v56  ;;  %v5976_v31 = vpop.f32.mrf.mxu1 }
 0x2e9   : > { %v1222_v62 = vsub.f32 1.5, %v1221_v57  ;;  %5006 = vrsqrt.f32 %v998_v27  ;;  %vm1234_vm3 = vweird.f32 %v998_v27 }
 0x2ea   : > { %v5942_v19 = vsub.f32 %v5812_v8, %v781_v42  ;;  %v5951_v8 = vadd.f32 %v5911_v49, %v1381_v55 }
 0x2eb   : > { %v1223_v24 = vmul.f32 %v5005_v10, %v1222_v62 }
 0x2ec   : > { %v877_v52 = vmul.f32 %v5942_v19, %v5942_v19  ;;  %7157 = vst [vmem:[#allocation25_spill] sm:$0xff] %v5951_v8 }
 0x2ed   : > { %v1227_v30 = vsel %vm1226_vm1, %v5005_v10, %v1223_v24  ;;  %v4647_v41 = vld [vmem:[#allocation3 + $0x20] sm:$0xff] }
 0x2ee   : > { %v1349_v1 = vmul.f32 %v1227_v30, %v5783_v59  ;;  %938 = vadd.xlane.f32.xlu1 %v877_v52  ;;  %1937 = vmatmul.bf16.gmra.mxu1 %v4647_v41  ;;  %v5978_v52 = vpop.f32.mrf.mxu0 }
 0x2ef   : > { %v749_v48 = vpop.xlane.xlu2 %748  ;;  %2026 = vmatmul.bf16.gmra.mxu2 %v4647_v41  ;;  %v5007_v6 = vpop.eup %5006 }
 0x2f0   : > { %v1382_v32 = vmul.f32 %v5898_v44, %v1349_v1  ;;  %v782_v46 = vmul.f32 0.0078125, %v749_v48  ;;  %2115 = vmatmul.bf16.gmra.mxu3 %v4647_v41  ;;  %2204 = vmatmul.bf16.gmra.mxu0 %v4647_v41  ;;  %vm1235_vm2 = vweird.f32 %v5007_v6 }
 0x2f1   : > { %vm1236_vm4 = vmor %vm1234_vm3, %vm1235_vm2 }
 0x2f2   : > { %v5954_v33 = vadd.f32 %v5911_v49, %v1382_v32  ;;  %v5957_v10 = vsub.f32 %v5820_v25, %v782_v46  ;;  %v1229_v25 = vmul.f32 %v5007_v6, %v998_v27  ;;  %v5980_v46 = vpop.f32.mrf.mxu2 }
 0x2f4   : > { %7158 = vst [vmem:[#allocation26_spill] sm:$0xff] %v5954_v33  ;;  %v4771_v59 = vpack.c.bf16 %v5954_v33, %v5951_v8  ;;  %v878_v20 = vmul.f32 %v5957_v10, %v5957_v10  ;;  %v1230_v36 = vmul.f32 %v5007_v6, %v1229_v25 }
 0x2f6   : > { %4887 = vst [vmem:[#allocation3 + $0x10] sm:$0xff] %v4771_v59   ;;  %940 = vadd.xlane.f32.xlu2 %v878_v20  ;;  %v1231_v57 = vmul.f32 0.5, %v1230_v36  ;;  %v5982_v20 = vpop.f32.mrf.mxu3  ;;  %v5992_v63 = vpop.f32.mrf.mxu0 }
 0x2f8   : > { %v1232_v28 = vsub.f32 1.5, %v1231_v57 }
 0x2fa   : > { %v1233_v30 = vmul.f32 %v5007_v6, %v1232_v28 }
 0x2fc   : > { %v1237_v41 = vsel %vm1236_vm4, %v5007_v6, %v1233_v30 }
 0x2fd   : > { %v4648_v22 = vld [vmem:[#allocation3 + $0x10] sm:$0xff]  ;;  %v1350_v56 = vmul.f32 %v1237_v41, %v5802_v61 }
 0x2fe   : > { %1942 = vmatmul.bf16.gmra.mxu1 %v4648_v22 }
 0x2ff   : > { %2031 = vmatmul.bf16.gmra.mxu2 %v4648_v22  ;;  %v1383_v61 = vmul.f32 %v5898_v44, %v1350_v56 }
 0x300   : > { %2120 = vmatmul.bf16.gmra.mxu3 %v4648_v22  ;;  %2209 = vmatmul.bf16.gmra.mxu0 %v4648_v22 }
 0x331   : > { %v927_v39 = vpop.xlane.xlu0 %926 }
 0x332   : > { %v967_v2 = vmul.f32 0.0078125, %v927_v39  ;;  %v5988_v39 = vpop.f32.mrf.mxu1 }
 0x334   : > { %v999_v26 = vadd.f32 1e-05, %v967_v2 }
 0x336   : > { %5008 = vrsqrt.f32 %v999_v26  ;;  %vm1244_vm6 = vweird.f32 %v999_v26 }
 0x339   : > { %v929_v47 = vpop.xlane.xlu0 %928 }
 0x33a   : > { %v968_v42 = vmul.f32 0.0078125, %v929_v47  ;;  %v6011_v56 = vpop.f32.mrf.mxu1 }
 0x33c   : > { %v5009_v62 = vpop.eup %5008  ;;  %v1000_v24 = vadd.f32 1e-05, %v968_v42 }
 0x33d   : > { %v1239_v55 = vmul.f32 %v5009_v62, %v999_v26  ;;  %vm1245_vm5 = vweird.f32 %v5009_v62 }
 0x33e   : > { %5010 = vrsqrt.f32 %v1000_v24  ;;  %vm1246_vm7 = vmor %vm1244_vm6, %vm1245_vm5  ;;  %vm1254_vm9 = vweird.f32 %v1000_v24 }
 0x33f   : > { %v1240_v1 = vmul.f32 %v5009_v62, %v1239_v55  ;;  %v5997_v55 = vpop.f32.mrf.mxu2 }
 0x341   : > { %v1241_v48 = vmul.f32 0.5, %v1240_v1  ;;  %v751_v32 = vpop.xlane.xlu0 %750  ;;  %v6000_v1 = vadd.f32 %v5911_v49, %v1383_v61 }
 0x342   : > { %v783_v59 = vmul.f32 0.0078125, %v751_v32  ;;  %v931_v60 = vpop.xlane.xlu1 %930 }
 0x343   : > { %v1242_v22 = vsub.f32 1.5, %v1241_v48  ;;  %v969_v45 = vmul.f32 0.0078125, %v931_v60  ;;  %7159 = vst [vmem:[#allocation27_spill] sm:$0xff] %v6000_v1  ;;  %v6005_v48 = vpop.f32.mrf.mxu3 }
 0x344   : > { %v5011_v25 = vpop.eup %5010  ;;  %v5986_v36 = vsub.f32 %v5852_v34, %v783_v59 }
 0x345   : > { %v1243_v27 = vmul.f32 %v5009_v62, %v1242_v22  ;;  %v1249_v6 = vmul.f32 %v5011_v25, %v1000_v24  ;;  %v1001_v2 = vadd.f32 1e-05, %v969_v45  ;;  %vm1255_vm8 = vweird.f32 %v5011_v25  ;;  %v6014_v45 = vpop.f32.mrf.mxu0 }
 0x346   : > { %v879_v17 = vmul.f32 %v5986_v36, %v5986_v36  ;;  %vm1256_vm10 = vmor %vm1254_vm9, %vm1255_vm8 }
 0x347   : > { %v1247_v57 = vsel %vm1246_vm7, %v5009_v62, %v1243_v27  ;;  %v1250_v28 = vmul.f32 %v5011_v25, %v1249_v6  ;;  %5012 = vrsqrt.f32 %v1001_v2  ;;  %v4698_v6 = vld [vmem:[%s7103_s5 + $0x60] sm:$0xff]  ;;  %v6022_v24 = vpop.f32.mrf.mxu2  ;;  %vm1264_vm12 = vweird.f32 %v1001_v2 }
 0x348   : > { %v1351_v47 = vmul.f32 %v1247_v57, %v5826_v7  ;;  %942 = vadd.xlane.f32.xlu0 %v879_v17  ;;  %v4706_v17 = vld [vmem:[%s7103_s5 + $0xa0] sm:$0xff]  ;;  %2812 = vmatpush.bf16.msra.mxu2 %v4698_v6 }
 0x349   : > { %v1251_v34 = vmul.f32 0.5, %v1250_v28  ;;  %2901 = vmatpush.bf16.msra.mxu3 %v4706_v17  ;;  %v6037_v17 = vpop.f32.mrf.mxu1 }
 0x34a   : > { %v1384_v26 = vmul.f32 %v5898_v44, %v1351_v47  ;;  %v933_v30 = vpop.xlane.xlu1 %932 }
 0x34b   : > { %v1252_v42 = vsub.f32 1.5, %v1251_v34  ;;  %v970_v62 = vmul.f32 0.0078125, %v933_v30 }
 0x34c   : > { %v6003_v41 = vadd.f32 %v5911_v49, %v1384_v26 }
 0x34d   : > { %v5013_v32 = vpop.eup %5012  ;;  %v6009_v59 = vadd.f32 1e-05, %v970_v62  ;;  %v1253_v22 = vmul.f32 %v5011_v25, %v1252_v42  ;;  %v4690_v62 = vld [vmem:[%s7103_s5 + $0x20] sm:$0xff] }
 0x34e   : > { %7160 = vst [vmem:[#allocation28_spill] sm:$0xff] %v6003_v41  ;;  %v4776_v7 = vpack.c.bf16 %v6003_v41, %v6000_v1  ;;  %v1259_v60 = vmul.f32 %v5013_v32, %v1001_v2  ;;  %vm1265_vm11 = vweird.f32 %v5013_v32  ;;  %2723 = vmatpush.bf16.msra.mxu1 %v4690_v62  ;;  %v6041_v2 = vpop.f32.mrf.mxu0 }
 0x34f   : > { %5014 = vrsqrt.f32 %v6009_v59  ;;  %v1257_v57 = vsel %vm1256_vm10, %v5011_v25, %v1253_v22  ;;  %v4714_v25 = vld [vmem:[%s7103_s5 + $0xe0] sm:$0xff]  ;;  %vm1266_vm13 = vmor %vm1264_vm12, %vm1265_vm11  ;;  %vm1274_vm15 = vweird.f32 %v6009_v59 }
 0x350   : > { %4888 = vst [vmem:[#allocation3 + $0x38] sm:$0xff] %v4776_v7   ;;  %v1260_v27 = vmul.f32 %v5013_v32, %v1259_v60  ;;  %v1352_v42 = vmul.f32 %v1257_v57, %v5840_v53  ;;  %v6033_v7 = vpop.f32.mrf.mxu3  ;;  %2990 = vmatpush.bf16.msra.mxu0 %v4714_v25 }
 0x351   : > { %v935_v61 = vpop.xlane.xlu2 %934 }
 0x352   : > { %v1261_v28 = vmul.f32 0.5, %v1260_v27  ;;  %v971_v47 = vmul.f32 0.0078125, %v935_v61  ;;  %v1385_v57 = vmul.f32 %v5898_v44, %v1352_v42 }
 0x354   : > { %v1262_v34 = vsub.f32 1.5, %v1261_v28  ;;  %v6025_v30 = vadd.f32 1e-05, %v971_v47 }
 0x355   : > { %v5015_v26 = vpop.eup %5014 }
 0x356   : > { %v1263_v22 = vmul.f32 %v5013_v32, %v1262_v34  ;;  %v1269_v60 = vmul.f32 %v5015_v26, %v6009_v59  ;;  %5016 = vrsqrt.f32 %v6025_v30  ;;  %vm1275_vm14 = vweird.f32 %v5015_v26  ;;  %v4689_v59 = vld [vmem:[%s7103_s5 + $0x18] sm:$0xff] }
 0x357   : > { %v4649_v27 = vld [vmem:[#allocation3 + $0x38] sm:$0xff]  ;;  %vm1276_vm0 = vmor %vm1274_vm15, %vm1275_vm14  ;;  %vm1284_vm2 = vweird.f32 %v6025_v30  ;;  %2724 = vmatpush.bf16.msra.mxu1 %v4689_v59 }
 0x358   : > { %v1267_v53 = vsel %vm1266_vm13, %v5013_v32, %v1263_v22  ;;  %v1270_v6 = vmul.f32 %v5015_v26, %v1269_v60  ;;  %1947 = vmatmul.bf16.gmra.mxu1 %v4649_v27  ;;  %2036 = vmatmul.bf16.gmra.mxu2 %v4649_v27  ;;  %v6045_v22 = vadd.f32 %v5911_v49, %v1385_v57 }
 0x359   : > { %v1353_v28 = vmul.f32 %v1267_v53, %v5850_v29  ;;  %2125 = vmatmul.bf16.gmra.mxu3 %v4649_v27  ;;  %2214 = vmatmul.bf16.gmra.mxu0 %v4649_v27  ;;  %v937_v47 = vpop.xlane.xlu0 %936  ;;  %v6053_v53 = vpop.f32.mrf.mxu2 }
 0x35a   : > { %v1271_v61 = vmul.f32 0.5, %v1270_v6  ;;  %v972_v62 = vmul.f32 0.0078125, %v937_v47  ;;  %7161 = vst [vmem:[#allocation29_spill] sm:$0xff] %v6045_v22 }
 0x35b   : > { %v1386_v34 = vmul.f32 %v5898_v44, %v1353_v28  ;;  %v6058_v28 = vpop.f32.mrf.mxu3 }
 0x35c   : > { %v1272_v25 = vsub.f32 1.5, %v1271_v61  ;;  %v5017_v32 = vpop.eup %5016  ;;  %v6050_v42 = vadd.f32 1e-05, %v972_v62 }
 0x35d   : > { %v6048_v60 = vadd.f32 %v5911_v49, %v1386_v34  ;;  %v1279_v27 = vmul.f32 %v5017_v32, %v6025_v30  ;;  %vm1285_vm1 = vweird.f32 %v5017_v32 }
 0x35e   : > { %v1273_v29 = vmul.f32 %v5015_v26, %v1272_v25  ;;  %5018 = vrsqrt.f32 %v6050_v42  ;;  %v6061_v25 = vpop.f32.mrf.mxu1  ;;  %vm1286_vm3 = vmor %vm1284_vm2, %vm1285_vm1  ;;  %vm1294_vm5 = vweird.f32 %v6050_v42 }
 0x35f   : > { %7162 = vst [vmem:[#allocation30_spill] sm:$0xff] %v6048_v60  ;;  %v4781_v6 = vpack.c.bf16 %v6048_v60, %v6045_v22  ;;  %v1280_v57 = vmul.f32 %v5017_v32, %v1279_v27  ;;  %v4697_v60 = vld [vmem:[%s7103_s5 + $0x58] sm:$0xff]  ;;  %v6074_v27 = vpop.f32.mrf.mxu0 }
 0x360   : > { %v1277_v34 = vsel %vm1276_vm0, %v5015_v26, %v1273_v29  ;;  %v4705_v22 = vld [vmem:[%s7103_s5 + $0x98] sm:$0xff]  ;;  %2813 = vmatpush.bf16.msra.mxu2 %v4697_v60 }
 0x361   : > { %v939_v61 = vpop.xlane.xlu1 %938  ;;  %4889 = vst [vmem:[#allocation3 + $0x60] sm:$0xff] %v4781_v6   ;;  %v1281_v62 = vmul.f32 0.5, %v1280_v57  ;;  %v4713_v29 = vld [vmem:[%s7103_s5 + $0xd8] sm:$0xff]  ;;  %v1354_v57 = vmul.f32 %v1277_v34, %v5867_v12  ;;  %2902 = vmatpush.bf16.msra.mxu3 %v4705_v22  ;;  %v6083_v8 = vpop.f32.mrf.mxu2 }
 0x362   : > { %v973_v47 = vmul.f32 0.0078125, %v939_v61  ;;  %2991 = vmatpush.bf16.msra.mxu0 %v4713_v29 }
 0x363   : > { %v1282_v26 = vsub.f32 1.5, %v1281_v62  ;;  %v1387_v38 = vmul.f32 %v5898_v44, %v1354_v57  ;;  %v6087_v34 = vpop.f32.mrf.mxu3 }
 0x364   : > { %v6063_v41 = vadd.f32 1e-05, %v973_v47  ;;  %v5019_v6 = vpop.eup %5018 }
 0x365   : > { %v1283_v61 = vmul.f32 %v5017_v32, %v1282_v26  ;;  %v1289_v47 = vmul.f32 %v5019_v6, %v6050_v42  ;;  %vm1295_vm4 = vweird.f32 %v5019_v6  ;;  %v6094_v29 = vadd.f32 %v5911_v49, %v1387_v38  ;;  %v4688_v38 = vld [vmem:[%s7103_s5 + $0x10] sm:$0xff] }
 0x366   : > { %5020 = vrsqrt.f32 %v6063_v41  ;;  %v6091_v26 = vpop.f32.mrf.mxu1  ;;  %vm1296_vm6 = vmor %vm1294_vm5, %vm1295_vm4  ;;  %v4712_v42 = vld [vmem:[%s7103_s5 + $0xd0] sm:$0xff]  ;;  %2725 = vmatpush.bf16.msra.mxu1 %v4688_v38  ;;  %vm1304_vm8 = vweird.f32 %v6063_v41 }
 0x367   : > { %v1287_v62 = vsel %vm1286_vm3, %v5017_v32, %v1283_v61  ;;  %v1290_v1 = vmul.f32 %v5019_v6, %v1289_v47  ;;  %7163 = vst [vmem:[#allocation31_spill] sm:$0xff] %v6094_v29  ;;  %v4704_v47 = vld [vmem:[%s7103_s5 + $0x90] sm:$0xff]  ;;  %2992 = vmatpush.bf16.msra.mxu0 %v4712_v42 }
 0x368   : > { %v4650_v33 = vld [vmem:[#allocation3 + $0x60] sm:$0xff]  ;;  %v1355_v12 = vmul.f32 %v1287_v62, %v5887_v3  ;;  %2903 = vmatpush.bf16.msra.mxu3 %v4704_v47 }
 0x369   : > { %v1291_v22 = vmul.f32 0.5, %v1290_v1  ;;  %1952 = vmatmul.bf16.gmra.mxu1 %v4650_v33  ;;  %2041 = vmatmul.bf16.gmra.mxu2 %v4650_v33  ;;  %v6099_v1 = vpop.f32.mrf.mxu0  ;;  %v941_v58 = vpop.xlane.xlu2 %940 }
 0x36a   : > { %v1388_v60 = vmul.f32 %v5898_v44, %v1355_v12  ;;  %2130 = vmatmul.bf16.gmra.mxu3 %v4650_v33  ;;  %2219 = vmatmul.bf16.gmra.mxu0 %v4650_v33  ;;  %v4696_v33 = vld [vmem:[%s7103_s5 + $0x50] sm:$0xff]  ;;  %v974_v0 = vmul.f32 0.0078125, %v941_v58  ;;  %v4711_v58 = vld [vmem:[%s7103_s5 + $0xc8] sm:$0xff] }
 0x36b   : > { %v1292_v59 = vsub.f32 1.5, %v1291_v22  ;;  %2814 = vmatpush.bf16.msra.mxu2 %v4696_v33  ;;  %2993 = vmatpush.bf16.msra.mxu0 %v4711_v58 }
 0x36c   : > { %v5021_v30 = vpop.eup %5020  ;;  %v6097_v3 = vadd.f32 %v5911_v49, %v1388_v60  ;;  %v4695_v60 = vld [vmem:[%s7103_s5 + $0x48] sm:$0xff]  ;;  %v1006_v11 = vadd.f32 1e-05, %v974_v0  ;;  %v4694_v0 = vld [vmem:[%s7103_s5 + $0x40] sm:$0xff] }
 0x36d   : > { %v1299_v32 = vmul.f32 %v5021_v30, %v6063_v41  ;;  %v1293_v57 = vmul.f32 %v5019_v6, %v1292_v59  ;;  %v4703_v59 = vld [vmem:[%s7103_s5 + $0x88] sm:$0xff]  ;;  %vm1305_vm7 = vweird.f32 %v5021_v30 }
 0x36e   : > { %7164 = vst [vmem:[#allocation32_spill] sm:$0xff] %v6097_v3  ;;  %v4786_v62 = vpack.c.bf16 %v6097_v3, %v6094_v29  ;;  %2904 = vmatpush.bf16.msra.mxu3 %v4703_v59  ;;  %v6131_v47 = vpop.f32.mrf.mxu1  ;;  %vm1306_vm9 = vmor %vm1304_vm8, %vm1305_vm7  ;;  %5022 = vrsqrt.f32 %v1006_v11  ;;  %vm1314_vm11 = vweird.f32 %v1006_v11 }
 0x36f   : > { %v1300_v61 = vmul.f32 %v5021_v30, %v1299_v32  ;;  %v1297_v12 = vsel %vm1296_vm6, %v5019_v6, %v1293_v57  ;;  %v4687_v32 = vld [vmem:[%s7103_s5 + $0x8] sm:$0xff]  ;;  %v6125_v6 = vpop.f32.mrf.mxu2  ;;  %2815 = vmatpush.bf16.msra.mxu2 %v4695_v60 }
 0x370   : > { %4890 = vst [vmem:[#allocation3 + $0x70] sm:$0xff] %v4786_v62   ;;  %v1356_v57 = vmul.f32 %v1297_v12, %v5921_v37  ;;  %2726 = vmatpush.bf16.msra.mxu1 %v4687_v32 }
 0x371   : > { %v1301_v22 = vmul.f32 0.5, %v1300_v61  ;;  %v6128_v61 = vpop.f32.mrf.mxu3  ;;  %v6133_v38 = vpop.f32.mrf.mxu0 }
 0x372   : > { %v1389_v42 = vmul.f32 %v5898_v44, %v1356_v57  ;;  %2905 = vmatpush.bf16.msra.mxu3 %v4702_v16 }
 0x373   : > { %v1302_v3 = vsub.f32 1.5, %v1301_v22  ;;  %2816 = vmatpush.bf16.msra.mxu2 %v4694_v0 }
 0x374   : > { %v6141_v41 = vadd.f32 %v5911_v49, %v1389_v42  ;;  %v5023_v18 = vpop.eup %5022 }
 0x375   : > { %v1303_v33 = vmul.f32 %v5021_v30, %v1302_v3  ;;  %v1309_v35 = vmul.f32 %v5023_v18, %v1006_v11  ;;  %vm1315_vm10 = vweird.f32 %v5023_v18 }
 0x376   : > { %7165 = vst [vmem:[#allocation33_spill] sm:$0xff] %v6141_v41  ;;  %v6150_v60 = vpop.f32.mrf.mxu1  ;;  %vm1316_vm12 = vmor %vm1314_vm11, %vm1315_vm10 }
 0x377   : > { %v1307_v62 = vsel %vm1306_vm9, %v5021_v30, %v1303_v33  ;;  %v4651_v29 = vld [vmem:[#allocation3 + $0x70] sm:$0xff]  ;;  %v6138_v3 = vpop.f32.mrf.mxu2  ;;  %v1310_v14 = vmul.f32 %v5023_v18, %v1309_v35  ;;  %v4710_v35 = vld [vmem:[%s7103_s5 + $0xc0] sm:$0xff] }
 0x378   : > { %v1357_v22 = vmul.f32 %v1307_v62, %v5942_v19  ;;  %2994 = vmatpush.bf16.msra.mxu0 %v4710_v35 }
 0x379   : > { %1957 = vmatmul.bf16.gmra.mxu1 %v4651_v29  ;;  %2046 = vmatmul.bf16.gmra.mxu2 %v4651_v29  ;;  %v6146_v30 = vpop.f32.mrf.mxu3  ;;  %v6152_v59 = vpop.f32.mrf.mxu0 }
 0x37a   : > { %v1390_v37 = vmul.f32 %v5898_v44, %v1357_v22  ;;  %2135 = vmatmul.bf16.gmra.mxu3 %v4651_v29  ;;  %2224 = vmatmul.bf16.gmra.mxu0 %v4651_v29 }
 0x37c   : > { %v6144_v12 = vadd.f32 %v5911_v49, %v1390_v37 }
 0x37e   : > { %7166 = vst [vmem:[#allocation34_spill] sm:$0xff] %v6144_v12  ;;  %v4791_v19 = vpack.c.bf16 %v6144_v12, %v6141_v41  ;;  %v6158_v62 = vpop.f32.mrf.mxu1 }
 0x37f   : > { %v6154_v32 = vpop.f32.mrf.mxu2 }
 0x380   : > { %4891 = vst [vmem:[#allocation3 + $0x78] sm:$0xff] %v4791_v19  }
 0x381   : > { %v6156_v57 = vpop.f32.mrf.mxu3  ;;  %v6160_v42 = vpop.f32.mrf.mxu0 }
 0x386   : > { %v6166_v37 = vpop.f32.mrf.mxu1 }
 0x387   : > { %v4652_v33 = vld [vmem:[#allocation3 + $0x78] sm:$0xff]  ;;  %v6162_v29 = vpop.f32.mrf.mxu2 }
 0x389   : > { %1962 = vmatmul.bf16.gmra.mxu1 %v4652_v33  ;;  %2051 = vmatmul.bf16.gmra.mxu2 %v4652_v33  ;;  %v6164_v22 = vpop.f32.mrf.mxu3  ;;  %v6168_v19 = vpop.f32.mrf.mxu0 }
 0x38a   : > { %2140 = vmatmul.bf16.gmra.mxu3 %v4652_v33  ;;  %2229 = vmatmul.bf16.gmra.mxu0 %v4652_v33 }
 0x38e   : > { %v6174_v15 = vpop.f32.mrf.mxu1 }
 0x38f   : > { %v6170_v12 = vpop.f32.mrf.mxu2  ;;  %7167 = vst [vmem:[#allocation35_spill] sm:$0xff] %v6174_v15 }
 0x391   : > { %v6172_v41 = vpop.f32.mrf.mxu3  ;;  %v6176_v50 = vpop.f32.mrf.mxu0 }
 0x392   : > { %7168 = vst [vmem:[#allocation36_spill] sm:$0xff] %v6176_v50  ;;  %v1311_v50 = vmul.f32 0.5, %v1310_v14 }
 0x396   : > { %v6182_v9 = vpop.f32.mrf.mxu1 }
 0x397   : > { %v6178_v43 = vpop.f32.mrf.mxu2 }
 0x398   : > { %7169 = vst [vmem:[#allocation37_spill] sm:$0xff] %v6178_v43 }
 0x399   : > { %v6180_v33 = vpop.f32.mrf.mxu3  ;;  %v6184_v4 = vpop.f32.mrf.mxu0 }
 0x39a   : > { %7170 = vst [vmem:[#allocation38_spill] sm:$0xff] %v6180_v33 }
 0x39e   : > { %v6190_v51 = vpop.f32.mrf.mxu1 }
 0x39f   : > { %v6186_v40 = vpop.f32.mrf.mxu2  ;;  %7172 = vst [vmem:[#allocation40_spill] sm:$0xff] %v6190_v51 }
 0x3a1   : > { %v6188_v23 = vpop.f32.mrf.mxu3  ;;  %v6192_v21 = vpop.f32.mrf.mxu0 }
 0x3a2   : > { %7171 = vst [vmem:[#allocation39_spill] sm:$0xff] %v6188_v23 }
 0x3a3   : > { %7173 = vst [vmem:[#allocation41_spill] sm:$0xff] %v6192_v21  ;;  %v4686_v21 = vld [vmem:[%s7103_s5] sm:$0xff] }
 0x3a4   : > { %2727 = vmatpush.bf16.msra.mxu1 %v4686_v21 }
 0x3a7   : > { %v6194_v54 = vpop.f32.mrf.mxu2 }
 0x3a8   : > { %7174 = vst [vmem:[#allocation42_spill] sm:$0xff] %v6194_v54  ;;  %v6210_v54 = vpop.f32.mrf.mxu1 }
 0x3a9   : > { %v6196_v5 = vpop.f32.mrf.mxu3  ;;  %7176 = vst [vmem:[#allocation44_spill] sm:$0xff] %v6210_v54  ;;  %v6212_v51 = vpop.f32.mrf.mxu0  ;;  %v1312_v54 = vsub.f32 1.5, %v1311_v50 }
 0x3aa   : > { %7175 = vst [vmem:[#allocation43_spill] sm:$0xff] %v6196_v5 }
 0x3ab   : > { %7177 = vst [vmem:[#allocation45_spill] sm:$0xff] %v6212_v51  ;;  %v1313_v16 = vmul.f32 %v5023_v18, %v1312_v54 }
 0x3af   : > { %v6217_v43 = vpop.f32.mrf.mxu2 }
 0x3b0   : > { %7178 = vst [vmem:[#allocation46_spill] sm:$0xff] %v6217_v43  ;;  %v1317_v43 = vsel %vm1316_vm12, %v5023_v18, %v1313_v16 }
 0x3b1   : > { %v6219_v15 = vpop.f32.mrf.mxu3  ;;  %v6223_v58 = vpop.f32.mrf.mxu0 }
 0x3b2   : > { %7179 = vst [vmem:[#allocation47_spill] sm:$0xff] %v6219_v15 }
 0x3b3   : > { %7181 = vst [vmem:[#allocation49_spill] sm:$0xff] %v6223_v58 }
 0x3b7   : > { %v6225_v21 = vpop.f32.mrf.mxu2 }
 0x3b8   : > { %7182 = vst [vmem:[#allocation50_spill] sm:$0xff] %v6225_v21 }
 0x3b9   : > { %v6227_v51 = vpop.f32.mrf.mxu3  ;;  %v6232_v58 = vpop.f32.mrf.mxu0 }
 0x3ba   : > { %7183 = vst [vmem:[#allocation51_spill] sm:$0xff] %v6227_v51 }
 0x3bb   : > { %v943_v13 = vpop.xlane.xlu0 %942  ;;  %7185 = vst [vmem:[#allocation53_spill] sm:$0xff] %v6232_v58 }
 0x3bc   : > { %v975_v5 = vmul.f32 0.0078125, %v943_v13  ;;  %v6221_v13 = vpop.f32.mrf.mxu1 }
 0x3bd   : > { %7180 = vst [vmem:[#allocation48_spill] sm:$0xff] %v6221_v13  ;;  %v1358_v13 = vmul.f32 %v1317_v43, %v5957_v10 }
 0x3be   : > { %v1007_v33 = vadd.f32 1e-05, %v975_v5 }
 0x3bf   : > { %v6236_v15 = vpop.f32.mrf.mxu2 }
 0x3c0   : > { %5024 = vrsqrt.f32 %v1007_v33  ;;  %vm1324_vm14 = vweird.f32 %v1007_v33  ;;  %7186 = vst [vmem:[#allocation54_spill] sm:$0xff] %v6236_v15 }
 0x3c1   : > { %v6239_v16 = vpop.f32.mrf.mxu3 }
 0x3c2   : > { %7187 = vst [vmem:[#allocation55_spill] sm:$0xff] %v6239_v16 }
 0x3c4   : > { %v6229_v50 = vpop.f32.mrf.mxu1 }
 0x3c5   : > { %7184 = vst [vmem:[#allocation52_spill] sm:$0xff] %v6229_v50 }
 0x3c6   : > { %v5025_v0 = vpop.eup %5024 }
 0x3c7   : > { %v1319_v5 = vmul.f32 %v5025_v0, %v1007_v33  ;;  %vm1325_vm13 = vweird.f32 %v5025_v0  ;;  %v6251_v33 = vpop.f32.mrf.mxu0 }
 0x3c8   : > { %vm1326_vm15 = vmor %vm1324_vm14, %vm1325_vm13  ;;  %7191 = vst [vmem:[#allocation59_spill] sm:$0xff] %v6251_v33 }
 0x3c9   : > { %v1320_v14 = vmul.f32 %v5025_v0, %v1319_v5  ;;  %v1391_v5 = vmul.f32 %v5898_v44, %v1358_v13  ;;  %v6255_v13 = vpop.f32.mrf.mxu3 }
 0x3ca   : > { %7193 = vst [vmem:[#allocation61_spill] sm:$0xff] %v6255_v13 }
 0x3cb   : > { %v1321_v35 = vmul.f32 0.5, %v1320_v14  ;;  %v6242_v14 = vadd.f32 %v5911_v49, %v1391_v5 }
 0x3cd   : > { %v1322_v23 = vsub.f32 1.5, %v1321_v35  ;;  %7188 = vst [vmem:[#allocation56_spill] sm:$0xff] %v6242_v14 }
 0x3cf   : > { %v1323_v54 = vmul.f32 %v5025_v0, %v1322_v23  ;;  %v6247_v23 = vpop.f32.mrf.mxu1 }
 0x3d0   : > { %7190 = vst [vmem:[#allocation58_spill] sm:$0xff] %v6247_v23 }
 0x3d1   : > { %v1327_v11 = vsel %vm1326_vm15, %v5025_v0, %v1323_v54 }
 0x3d2   : > { %v1359_v21 = vmul.f32 %v1327_v11, %v5986_v36  ;;  %v6253_v36 = vpop.f32.mrf.mxu2 }
 0x3d3   : > { %7192 = vst [vmem:[#allocation60_spill] sm:$0xff] %v6253_v36 }
 0x3d4   : > { %v1392_v18 = vmul.f32 %v5898_v44, %v1359_v21  ;;  %v6259_v21 = vpop.f32.mrf.mxu0 }
 0x3d5   : > { %7195 = vst [vmem:[#allocation63_spill] sm:$0xff] %v6259_v21 }
 0x3d6   : > { %v6245_v43 = vadd.f32 %v5911_v49, %v1392_v18  ;;  %v1618_v49 = vld [vmem:[%s7102_s4] sm:$0xf] }
 0x3d7   : > { %v6257_v0 = vpop.f32.mrf.mxu1  ;;  %v6264_v35 = vperm.slane %v1618_v49, 0  ;;  %v6266_v54 = vperm.slane %v1618_v49, 1  ;;  %v6268_v11 = vperm.slane %v1618_v49, 3  ;;  %v6270_v5 = vperm.slane %v1618_v49, 2 }
 0x3d8   : > { %7189 = vst [vmem:[#allocation57_spill] sm:$0xff] %v6245_v43  ;;  %v4796_v10 = vpack.c.bf16 %v6245_v43, %v6242_v14  ;;  %v6278_v14 = vpop.f32.mrf.mxu3 }
 0x3d9   : > { %7194 = vst [vmem:[#allocation62_spill] sm:$0xff] %v6257_v0  ;;  %v1985_v43 = vadd.f32 %v5997_v55, %v6266_v54  ;;  %v2074_v13 = vadd.f32 %v6005_v48, %v6270_v5  ;;  %v1894_v49 = vadd.f32 %v5976_v31, %v6264_v35  ;;  %v1983_v33 = vadd.f32 %v5980_v46, %v6266_v54 }
 0x3da   : > { %4892 = vst [vmem:[#allocation3 + $0x28] sm:$0xff] %v4796_v10   ;;  %v6272_v18 = vpop.f32.mrf.mxu2  ;;  %v1896_v10 = vadd.f32 %v5988_v39, %v6264_v35  ;;  %v2161_v39 = vadd.f32 %v5978_v52, %v6268_v11  ;;  %v2072_v55 = vadd.f32 %v5982_v20, %v6270_v5 }
 0x3db   : > { %7196 = vst [vmem:[#allocation64_spill] sm:$0xff] %v6272_v18  ;;  %v2246_v48 = vmax.f32 %v2074_v13, 0.0  ;;  %v2240_v18 = vmax.f32 %v1894_v49, 0.0  ;;  %v2241_v0 = vmax.f32 %v1983_v33, 0.0  ;;  %v1901_v33 = vadd.f32 %v6037_v17, %v6264_v35 }
 0x3dc   : > { %7197 = vst [vmem:[#allocation65_spill] sm:$0xff] %v6278_v14  ;;  %v2244_v23 = vmax.f32 %v1896_v10, 0.0  ;;  %v2245_v14 = vmax.f32 %v1985_v43, 0.0  ;;  %v2243_v31 = vmax.f32 %v2161_v39, 0.0  ;;  %v2242_v51 = vmax.f32 %v2072_v55, 0.0 }
 0x3dd   : > { %v2077_v17 = vadd.f32 %v6033_v7, %v6270_v5 }
 0x3de   : > { %v2400_v16 = vpack.c.bf16 %v2244_v23, %v2240_v18  ;;  %v2401_v46 = vpack.c.bf16 %v2245_v14, %v2241_v0  ;;  %v2402_v15 = vpack.c.bf16 %v2246_v48, %v2242_v51  ;;  %v1990_v14 = vadd.f32 %v6053_v53, %v6266_v54 }
 0x3df   : > { %v6292_v36 = vpop.f32.mrf.mxu1  ;;  %v2168_v51 = vadd.f32 %v6041_v2, %v6268_v11  ;;  %v2079_v23 = vadd.f32 %v6058_v28, %v6270_v5  ;;  %v2252_v53 = vmax.f32 %v1901_v33, 0.0  ;;  %v1995_v33 = vadd.f32 %v6125_v6, %v6266_v54 }
 0x3e0   : > { %v6298_v50 = vpop.f32.mrf.mxu3  ;;  %v2253_v0 = vmax.f32 %v1990_v14, 0.0  ;;  %v2173_v14 = vadd.f32 %v6099_v1, %v6268_v11  ;;  %v2082_v6 = vadd.f32 %v6087_v34, %v6270_v5 }
 0x3e1   : > { %v4653_v44 = vld [vmem:[#allocation3 + $0x28] sm:$0xff]  ;;  %v2254_v28 = vmax.f32 %v2079_v23, 0.0 }
 0x3e2   : > { %1967 = vmatmul.bf16.gmra.mxu1 %v4653_v44  ;;  %2056 = vmatmul.bf16.gmra.mxu2 %v4653_v44  ;;  %v6296_v52 = vpop.f32.mrf.mxu2 }
 0x3e3   : > { %2145 = vmatmul.bf16.gmra.mxu3 %v4653_v44  ;;  %2234 = vmatmul.bf16.gmra.mxu0 %v4653_v44  ;;  %v2163_v44 = vadd.f32 %v5992_v63, %v6268_v11  ;;  %v6294_v63 = vpop.f32.mrf.mxu0 }
 0x3e5   : > { %v2247_v21 = vmax.f32 %v2163_v44, 0.0  ;;  %v2250_v44 = vmax.f32 %v2077_v17, 0.0  ;;  %v2261_v17 = vmax.f32 %v1995_v33, 0.0  ;;  %v2178_v33 = vadd.f32 %v6152_v59, %v6268_v11 }
 0x3e7   : > { %v2403_v58 = vpack.c.bf16 %v2247_v21, %v2243_v31  ;;  %v6300_v20 = vpop.f32.mrf.mxu1  ;;  %v2255_v21 = vmax.f32 %v2168_v51, 0.0  ;;  %v2406_v55 = vpack.c.bf16 %v2254_v28, %v2250_v44  ;;  %v2084_v51 = vadd.f32 %v6128_v61, %v6270_v5 }
 0x3e8   : > { %v6322_v2 = vpop.f32.mrf.mxu3 }
 0x3e9   : > { %v2262_v61 = vmax.f32 %v2084_v51, 0.0  ;;  %v1909_v51 = vadd.f32 %v6131_v47, %v6264_v35 }
 0x3ea   : > { %v6320_v13 = vpop.f32.mrf.mxu2 }
 0x3eb   : > { %v6302_v43 = vpop.f32.mrf.mxu0 }
 0x3ef   : > { %v6324_v49 = vpop.f32.mrf.mxu1 }
 0x3f0   : > { %v6330_v31 = vpop.f32.mrf.mxu3 }
 0x3f2   : > { %2728 = vmatmul.bf16.vlgmr.msra.gmra.mxu1 %v2400_v16  ;;  %2817 = vmatmul.bf16.vlgmr.msra.gmra.mxu2 %v2401_v46  ;;  %v2166_v16 = vadd.f32 %v6014_v45, %v6268_v11  ;;  %v6328_v48 = vpop.f32.mrf.mxu2  ;;  %v1906_v46 = vadd.f32 %v6091_v26, %v6264_v35  ;;  %v2171_v26 = vadd.f32 %v6074_v27, %v6268_v11 }
 0x3f3   : > { %2906 = vmatmul.bf16.vlgmr.msra.gmra.mxu3 %v2402_v15  ;;  %2995 = vmatmul.bf16.vlgmr.msra.gmra.mxu0 %v2403_v58  ;;  %v1899_v15 = vadd.f32 %v6011_v56, %v6264_v35  ;;  %v1988_v58 = vadd.f32 %v6022_v24, %v6266_v54  ;;  %v6326_v24 = vpop.f32.mrf.mxu0 }
 0x3f4   : > { %v2251_v56 = vmax.f32 %v2166_v16, 0.0  ;;  %v2260_v1 = vmax.f32 %v1906_v46, 0.0  ;;  %v2259_v28 = vmax.f32 %v2171_v26, 0.0 }
 0x3f5   : > { %v2248_v18 = vmax.f32 %v1899_v15, 0.0  ;;  %v2249_v10 = vmax.f32 %v1988_v58, 0.0  ;;  %v1904_v15 = vadd.f32 %v6061_v25, %v6264_v35  ;;  %v1993_v58 = vadd.f32 %v6083_v8, %v6266_v54 }
 0x3f6   : > { %v2407_v7 = vpack.c.bf16 %v2255_v21, %v2251_v56 }
 0x3f7   : > { %v2404_v45 = vpack.c.bf16 %v2252_v53, %v2248_v18  ;;  %v2405_v39 = vpack.c.bf16 %v2253_v0, %v2249_v10  ;;  %v6340_v23 = vpop.f32.mrf.mxu1  ;;  %v2263_v53 = vmax.f32 %v2173_v14, 0.0  ;;  %v2256_v0 = vmax.f32 %v1904_v15, 0.0 }
 0x3f8   : > { %v2257_v21 = vmax.f32 %v1993_v58, 0.0  ;;  %v2258_v18 = vmax.f32 %v2082_v6, 0.0  ;;  %v6354_v10 = vpop.f32.mrf.mxu3  ;;  %v2089_v14 = vadd.f32 %v6156_v57, %v6270_v5  ;;  %v1998_v15 = vadd.f32 %v6138_v3, %v6266_v54 }
 0x3f9   : > { %v2408_v8 = vpack.c.bf16 %v2260_v1, %v2256_v0  ;;  %v2271_v1 = vmax.f32 %v2178_v33, 0.0  ;;  %v2003_v33 = vadd.f32 %v6162_v29, %v6266_v54 }
 0x3fa   : > { %v6352_v25 = vpop.f32.mrf.mxu2  ;;  %v2409_v56 = vpack.c.bf16 %v2261_v17, %v2257_v21  ;;  %v2410_v27 = vpack.c.bf16 %v2262_v61, %v2258_v18  ;;  %v2270_v57 = vmax.f32 %v2089_v14, 0.0  ;;  %v2264_v17 = vmax.f32 %v1909_v51, 0.0 }
 0x3fb   : > { %v6346_v16 = vpop.f32.mrf.mxu0  ;;  %v2181_v14 = vadd.f32 %v6160_v42, %v6268_v11 }
 0x3ff   : > { %v6356_v44 = vpop.f32.mrf.mxu1 }
 0x400   : > { %v6366_v46 = vpop.f32.mrf.mxu3 }
 0x402   : > { %2733 = vmatmul.bf16.gmra.mxu1 %v2404_v45  ;;  %2822 = vmatmul.bf16.gmra.mxu2 %v2405_v39  ;;  %v2411_v45 = vpack.c.bf16 %v2263_v53, %v2259_v28  ;;  %v6360_v34 = vpop.f32.mrf.mxu2  ;;  %v2265_v53 = vmax.f32 %v1998_v15, 0.0 }
 0x403   : > { %2911 = vmatmul.bf16.gmra.mxu3 %v2406_v55  ;;  %3000 = vmatmul.bf16.gmra.mxu0 %v2407_v7  ;;  %v6358_v39 = vpop.f32.mrf.mxu0  ;;  %v1911_v55 = vadd.f32 %v6150_v60, %v6264_v35  ;;  %v2000_v7 = vadd.f32 %v6154_v32, %v6266_v54  ;;  %v2176_v60 = vadd.f32 %v6133_v38, %v6268_v11 }
 0x404   : > { %v2087_v32 = vadd.f32 %v6146_v30, %v6270_v5 }
 0x405   : > { %v2268_v26 = vmax.f32 %v1911_v55, 0.0  ;;  %v2269_v6 = vmax.f32 %v2000_v7, 0.0  ;;  %v2267_v47 = vmax.f32 %v2176_v60, 0.0  ;;  %v2094_v55 = vadd.f32 %v6172_v41, %v6270_v5 }
 0x406   : > { %v2266_v61 = vmax.f32 %v2087_v32, 0.0  ;;  %v1914_v7 = vadd.f32 %v6158_v62, %v6264_v35  ;;  %v2275_v62 = vmax.f32 %v2181_v14, 0.0 }
 0x407   : > { %v6380_v58 = vpop.f32.mrf.mxu1  ;;  %v2412_v0 = vpack.c.bf16 %v2268_v26, %v2264_v17  ;;  %v2413_v3 = vpack.c.bf16 %v2269_v6, %v2265_v53  ;;  %v2415_v28 = vpack.c.bf16 %v2271_v1, %v2267_v47  ;;  %v2278_v41 = vmax.f32 %v2094_v55, 0.0  ;;  %v7203_v55 = vld [vmem:[#allocation37_spill] sm:$0xff] }
 0x408   : > { %v2414_v38 = vpack.c.bf16 %v2270_v57, %v2266_v61  ;;  %v6386_v18 = vpop.f32.mrf.mxu3  ;;  %v2272_v32 = vmax.f32 %v1914_v7, 0.0  ;;  %v2273_v26 = vmax.f32 %v2003_v33, 0.0  ;;  %v1921_v61 = vadd.f32 %v6182_v9, %v6264_v35  ;;  %v7205_v9 = vld [vmem:[#allocation36_spill] sm:$0xff] }
 0x409   : > { %v2008_v7 = vadd.f32 %v7203_v55, %v6266_v54  ;;  %v2186_v14 = vadd.f32 %v7205_v9, %v6268_v11  ;;  %v7213_v55 = vld [vmem:[#allocation45_spill] sm:$0xff]  ;;  %v7214_v9 = vld [vmem:[#allocation47_spill] sm:$0xff] }
 0x40a   : > { %v6384_v21 = vpop.f32.mrf.mxu2 }
 0x40b   : > { %v6382_v59 = vpop.f32.mrf.mxu0 }
 0x40f   : > { %v6388_v30 = vpop.f32.mrf.mxu1 }
 0x412   : > { %2738 = vmatmul.bf16.gmra.mxu1 %v2408_v8  ;;  %2827 = vmatmul.bf16.gmra.mxu2 %v2409_v56  ;;  %v1916_v56 = vadd.f32 %v6166_v37, %v6264_v35  ;;  %v2092_v37 = vadd.f32 %v6164_v22, %v6270_v5  ;;  %v6408_v51 = vpop.f32.mrf.mxu2 }
 0x413   : > { %2916 = vmatmul.bf16.gmra.mxu3 %v2410_v27  ;;  %3005 = vmatmul.bf16.gmra.mxu0 %v2411_v45  ;;  %v6390_v8 = vpop.f32.mrf.mxu0  ;;  %v2005_v27 = vadd.f32 %v6170_v12, %v6266_v54  ;;  %v2183_v45 = vadd.f32 %v6168_v19, %v6268_v11  ;;  %v6410_v19 = vpop.f32.mrf.mxu3 }
 0x414   : > { %7198 = vst [vmem:[#allocation66_spill] sm:$0xff] %v6390_v8  ;;  %v2276_v12 = vmax.f32 %v1916_v56, 0.0  ;;  %v2274_v6 = vmax.f32 %v2092_v37, 0.0 }
 0x415   : > { %v2277_v15 = vmax.f32 %v2005_v27, 0.0  ;;  %7199 = vst [vmem:[#allocation67_spill] sm:$0xff] %v6410_v19  ;;  %v2279_v60 = vmax.f32 %v2183_v45, 0.0  ;;  %v7202_v27 = vld [vmem:[#allocation35_spill] sm:$0xff] }
 0x416   : > { %v2416_v42 = vpack.c.bf16 %v2276_v12, %v2272_v32  ;;  %v2418_v17 = vpack.c.bf16 %v2278_v41, %v2274_v6  ;;  %v1919_v45 = vadd.f32 %v7202_v27, %v6264_v35  ;;  %v2281_v32 = vmax.f32 %v2008_v7, 0.0 }
 0x417   : > { %v6412_v1 = vpop.f32.mrf.mxu1  ;;  %v2417_v57 = vpack.c.bf16 %v2277_v15, %v2273_v26  ;;  %v2419_v22 = vpack.c.bf16 %v2279_v60, %v2275_v62  ;;  %v2283_v26 = vmax.f32 %v2186_v14, 0.0  ;;  %v2193_v7 = vadd.f32 %v7213_v55, %v6268_v11 }
 0x418   : > { %v2280_v41 = vmax.f32 %v1919_v45, 0.0  ;;  %v2104_v14 = vadd.f32 %v7214_v9, %v6270_v5 }
 0x41a   : > { %v6416_v53 = vpop.f32.mrf.mxu2 }
 0x41b   : > { %v6414_v29 = vpop.f32.mrf.mxu0  ;;  %v6418_v47 = vpop.f32.mrf.mxu3 }
 0x41f   : > { %v6428_v56 = vpop.f32.mrf.mxu1 }
 0x422   : > { %2743 = vmatmul.bf16.gmra.mxu1 %v2412_v0  ;;  %2832 = vmatmul.bf16.gmra.mxu2 %v2413_v3  ;;  %v2010_v0 = vadd.f32 %v6186_v40, %v6266_v54  ;;  %v2188_v3 = vadd.f32 %v6184_v4, %v6268_v11  ;;  %v7206_v40 = vld [vmem:[#allocation38_spill] sm:$0xff]  ;;  %v2284_v4 = vmax.f32 %v1921_v61, 0.0  ;;  %v6440_v6 = vpop.f32.mrf.mxu2 }
 0x423   : > { %2921 = vmatmul.bf16.gmra.mxu3 %v2414_v38  ;;  %3010 = vmatmul.bf16.gmra.mxu0 %v2415_v28  ;;  %v7200_v38 = vld [vmem:[#allocation39_spill] sm:$0xff]  ;;  %v6434_v33 = vpop.f32.mrf.mxu0  ;;  %v2097_v37 = vadd.f32 %v7206_v40, %v6270_v5  ;;  %7207 = vst [vmem:[#allocation37_spill] sm:$0xff] %v6440_v6 }
 0x424   : > { %v2099_v28 = vadd.f32 %v7200_v38, %v6270_v5  ;;  %7201 = vst [vmem:[#allocation39_spill] sm:$0xff] %v6428_v56  ;;  %v2285_v12 = vmax.f32 %v2010_v0, 0.0  ;;  %v2287_v15 = vmax.f32 %v2188_v3, 0.0  ;;  %v7211_v0 = vld [vmem:[#allocation44_spill] sm:$0xff] }
 0x425   : > { %7204 = vst [vmem:[#allocation35_spill] sm:$0xff] %v6434_v33  ;;  %v2282_v62 = vmax.f32 %v2097_v37, 0.0  ;;  %v1926_v3 = vadd.f32 %v7211_v0, %v6264_v35  ;;  %v7216_v37 = vld [vmem:[#allocation40_spill] sm:$0xff] }
 0x426   : > { %v2286_v60 = vmax.f32 %v2099_v28, 0.0  ;;  %v2423_v38 = vpack.c.bf16 %v2287_v15, %v2283_v26  ;;  %v7212_v28 = vld [vmem:[#allocation46_spill] sm:$0xff]  ;;  %v7220_v26 = vld [vmem:[#allocation43_spill] sm:$0xff] }
 0x427   : > { %v6444_v27 = vpop.f32.mrf.mxu1  ;;  %v2015_v45 = vadd.f32 %v7212_v28, %v6266_v54 }
 0x428   : > { %7209 = vst [vmem:[#allocation38_spill] sm:$0xff] %v6444_v27 }
 0x42a   : > { %v6456_v40 = vpop.f32.mrf.mxu2 }
 0x42b   : > { %v6446_v61 = vpop.f32.mrf.mxu0  ;;  %7215 = vst [vmem:[#allocation44_spill] sm:$0xff] %v6456_v40 }
 0x42c   : > { %7210 = vst [vmem:[#allocation68_spill] sm:$0xff] %v6446_v61 }
 0x42f   : > { %v6468_v0 = vpop.f32.mrf.mxu1 }
 0x430   : > { %7221 = vst [vmem:[#allocation45_spill] sm:$0xff] %v6468_v0 }
 0x432   : > { %2748 = vmatmul.bf16.gmra.mxu1 %v2416_v42  ;;  %2837 = vmatmul.bf16.gmra.mxu2 %v2417_v57  ;;  %v6442_v42 = vpop.f32.mrf.mxu3  ;;  %v2420_v57 = vpack.c.bf16 %v2284_v4, %v2280_v41  ;;  %v1924_v4 = vadd.f32 %v7216_v37, %v6264_v35  ;;  %v7219_v41 = vld [vmem:[#allocation41_spill] sm:$0xff] }
 0x433   : > { %2926 = vmatmul.bf16.gmra.mxu3 %v2418_v17  ;;  %3015 = vmatmul.bf16.gmra.mxu0 %v2419_v22  ;;  %7208 = vst [vmem:[#allocation36_spill] sm:$0xff] %v6442_v42  ;;  %v2421_v17 = vpack.c.bf16 %v2285_v12, %v2281_v32  ;;  %v2422_v22 = vpack.c.bf16 %v2286_v60, %v2282_v62  ;;  %v7217_v12 = vld [vmem:[#allocation42_spill] sm:$0xff]  ;;  %v6470_v9 = vpop.f32.mrf.mxu0 }
 0x434   : > { %v2013_v15 = vadd.f32 %v7217_v12, %v6266_v54  ;;  %v2191_v32 = vadd.f32 %v7219_v41, %v6268_v11  ;;  %v2102_v62 = vadd.f32 %v7220_v26, %v6270_v5  ;;  %v2288_v28 = vmax.f32 %v1924_v4, 0.0  ;;  %7222 = vst [vmem:[#allocation47_spill] sm:$0xff] %v6470_v9  ;;  %v6472_v41 = vpop.f32.mrf.mxu2  ;;  %v7227_v4 = vld [vmem:[#allocation54_spill] sm:$0xff]  ;;  %v7229_v26 = vld [vmem:[#allocation53_spill] sm:$0xff] }
 0x435   : > { %7223 = vst [vmem:[#allocation40_spill] sm:$0xff] %v6472_v41 }
 0x436   : > { %v2289_v55 = vmax.f32 %v2013_v15, 0.0  ;;  %v2291_v37 = vmax.f32 %v2191_v32, 0.0  ;;  %v2290_v12 = vmax.f32 %v2102_v62, 0.0  ;;  %v2020_v15 = vadd.f32 %v7227_v4, %v6266_v54 }
 0x43a   : > { %v6462_v60 = vpop.f32.mrf.mxu3 }
 0x43b   : > { %7218 = vst [vmem:[#allocation46_spill] sm:$0xff] %v6462_v60  ;;  %v6482_v32 = vpop.f32.mrf.mxu0 }
 0x43c   : > { %7228 = vst [vmem:[#allocation43_spill] sm:$0xff] %v6482_v32 }
 0x442   : > { %2753 = vmatmul.bf16.gmra.mxu1 %v2420_v57  ;;  %2842 = vmatmul.bf16.gmra.mxu2 %v2421_v17  ;;  %v2292_v57 = vmax.f32 %v1926_v3, 0.0  ;;  %v2293_v17 = vmax.f32 %v2015_v45, 0.0  ;;  %v6474_v3 = vpop.f32.mrf.mxu3  ;;  %v6476_v45 = vpop.f32.mrf.mxu1 }
 0x443   : > { %2931 = vmatmul.bf16.gmra.mxu3 %v2422_v22  ;;  %3020 = vmatmul.bf16.gmra.mxu0 %v2423_v38  ;;  %v2295_v22 = vmax.f32 %v2193_v7, 0.0  ;;  %v2294_v38 = vmax.f32 %v2104_v14, 0.0  ;;  %7224 = vst [vmem:[#allocation42_spill] sm:$0xff] %v6474_v3  ;;  %v7226_v7 = vld [vmem:[#allocation52_spill] sm:$0xff] }
 0x444   : > { %v2424_v42 = vpack.c.bf16 %v2292_v57, %v2288_v28  ;;  %v2425_v33 = vpack.c.bf16 %v2293_v17, %v2289_v55  ;;  %7225 = vst [vmem:[#allocation41_spill] sm:$0xff] %v6476_v45  ;;  %v1931_v14 = vadd.f32 %v7226_v7, %v6264_v35  ;;  %v7232_v57 = vld [vmem:[#allocation50_spill] sm:$0xff]  ;;  %v7234_v28 = vld [vmem:[#allocation51_spill] sm:$0xff] }
 0x445   : > { %v2426_v6 = vpack.c.bf16 %v2294_v38, %v2290_v12  ;;  %v2427_v56 = vpack.c.bf16 %v2295_v22, %v2291_v37  ;;  %v2018_v17 = vadd.f32 %v7232_v57, %v6266_v54  ;;  %v7233_v22 = vld [vmem:[#allocation49_spill] sm:$0xff]  ;;  %v2107_v55 = vadd.f32 %v7234_v28, %v6270_v5  ;;  %v7238_v28 = vld [vmem:[#allocation64_spill] sm:$0xff] }
 0x446   : > { %v2196_v38 = vadd.f32 %v7233_v22, %v6268_v11  ;;  %v2300_v37 = vmax.f32 %v1931_v14, 0.0  ;;  %v2301_v12 = vmax.f32 %v2020_v15, 0.0 }
 0x447   : > { %v2298_v41 = vmax.f32 %v2107_v55, 0.0 }
 0x44a   : > { %v6498_v9 = vpop.f32.mrf.mxu3 }
 0x44b   : > { %7236 = vst [vmem:[#allocation54_spill] sm:$0xff] %v6498_v9 }
 0x452   : > { %2758 = vmatmul.bf16.gmra.mxu1 %v2424_v42  ;;  %2847 = vmatmul.bf16.gmra.mxu2 %v2425_v33  ;;  %v2198_v42 = vadd.f32 %v7229_v26, %v6268_v11  ;;  %v7230_v33 = vld [vmem:[#allocation55_spill] sm:$0xff]  ;;  %v6496_v26 = vpop.f32.mrf.mxu2 }
 0x453   : > { %2936 = vmatmul.bf16.gmra.mxu3 %v2426_v6  ;;  %3025 = vmatmul.bf16.gmra.mxu0 %v2427_v56  ;;  %v2109_v62 = vadd.f32 %v7230_v33, %v6270_v5  ;;  %v7231_v56 = vld [vmem:[#allocation48_spill] sm:$0xff]  ;;  %7235 = vst [vmem:[#allocation52_spill] sm:$0xff] %v6496_v26  ;;  %v2297_v33 = vmax.f32 %v2018_v17, 0.0  ;;  %v7237_v17 = vld [vmem:[#allocation62_spill] sm:$0xff] }
 0x454   : > { %v1929_v6 = vadd.f32 %v7231_v56, %v6264_v35  ;;  %v2303_v7 = vmax.f32 %v2198_v42, 0.0  ;;  %v2299_v56 = vmax.f32 %v2196_v38, 0.0  ;;  %v1936_v38 = vadd.f32 %v7237_v17, %v6264_v35  ;;  %v7244_v17 = vld [vmem:[#allocation61_spill] sm:$0xff] }
 0x455   : > { %v2302_v4 = vmax.f32 %v2109_v62, 0.0  ;;  %v2429_v45 = vpack.c.bf16 %v2301_v12, %v2297_v33  ;;  %v7241_v12 = vld [vmem:[#allocation58_spill] sm:$0xff] }
 0x456   : > { %v2296_v3 = vmax.f32 %v1929_v6, 0.0  ;;  %v2431_v60 = vpack.c.bf16 %v2303_v7, %v2299_v56  ;;  %v1934_v7 = vadd.f32 %v7241_v12, %v6264_v35  ;;  %v2308_v26 = vmax.f32 %v1936_v38, 0.0 }
 0x457   : > { %v2430_v22 = vpack.c.bf16 %v2302_v4, %v2298_v41  ;;  %v7242_v4 = vld [vmem:[#allocation60_spill] sm:$0xff] }
 0x458   : > { %v2428_v32 = vpack.c.bf16 %v2300_v37, %v2296_v3  ;;  %v2025_v3 = vadd.f32 %v7238_v28, %v6266_v54  ;;  %v2023_v33 = vadd.f32 %v7242_v4, %v6266_v54  ;;  %v2112_v28 = vadd.f32 %v7244_v17, %v6270_v5 }
 0x459   : > { %v2304_v27 = vmax.f32 %v1934_v7, 0.0 }
 0x45f   : > { %v1968_v0 = vpop.f32.mrf.mxu1 }
 0x460   : > { %v2235_v57 = vpop.f32.mrf.mxu0  ;;  %v1969_v15 = vadd.f32 %v1968_v0, %v6264_v35 }
 0x461   : > { %v2236_v62 = vadd.f32 %v2235_v57, %v6268_v11 }
 0x462   : > { %2763 = vmatmul.bf16.gmra.mxu1 %v2428_v32  ;;  %2852 = vmatmul.bf16.gmra.mxu2 %v2429_v45  ;;  %v7239_v45 = vld [vmem:[#allocation63_spill] sm:$0xff]  ;;  %v2360_v56 = vmax.f32 %v1969_v15, 0.0 }
 0x463   : > { %2941 = vmatmul.bf16.gmra.mxu3 %v2430_v22  ;;  %3030 = vmatmul.bf16.gmra.mxu0 %v2431_v60  ;;  %v2203_v32 = vadd.f32 %v7239_v45, %v6268_v11  ;;  %v7240_v60 = vld [vmem:[#allocation65_spill] sm:$0xff]  ;;  %v7243_v22 = vld [vmem:[#allocation59_spill] sm:$0xff]  ;;  %v2363_v45 = vmax.f32 %v2236_v62, 0.0 }
 0x464   : > { %v2114_v37 = vadd.f32 %v7240_v60, %v6270_v5  ;;  %v2309_v60 = vmax.f32 %v2025_v3, 0.0 }
 0x465   : > { %v2057_v14 = vpop.f32.mrf.mxu2  ;;  %v2311_v12 = vmax.f32 %v2203_v32, 0.0  ;;  %v2432_v32 = vpack.c.bf16 %v2308_v26, %v2304_v27  ;;  %v2030_v27 = vadd.f32 %v6320_v13, %v6266_v54 }
 0x466   : > { %v2146_v42 = vpop.f32.mrf.mxu3  ;;  %v2310_v40 = vmax.f32 %v2114_v37, 0.0 }
 0x467   : > { %v1970_v6 = vpop.f32.mrf.mxu1  ;;  %v2147_v4 = vadd.f32 %v2146_v42, %v6270_v5 }
 0x468   : > { %v1971_v41 = vadd.f32 %v1970_v6, %v6264_v35  ;;  %v2237_v55 = vpop.f32.mrf.mxu0  ;;  %v2201_v6 = vadd.f32 %v7243_v22, %v6268_v11  ;;  %v2305_v22 = vmax.f32 %v2023_v33, 0.0 }
 0x469   : > { %v2238_v0 = vadd.f32 %v2237_v55, %v6268_v11  ;;  %v2058_v55 = vadd.f32 %v2057_v14, %v6266_v54 }
 0x46a   : > { %v2364_v57 = vmax.f32 %v1971_v41, 0.0  ;;  %v2307_v62 = vmax.f32 %v2201_v6, 0.0  ;;  %v2433_v37 = vpack.c.bf16 %v2309_v60, %v2305_v22  ;;  %v6539_v60 = vld [vmem:[%s7100_s2 + $0x3] ss:$0 sm:$0xff] }
 0x46b   : > { %v2367_v9 = vmax.f32 %v2238_v0, 0.0  ;;  %v2306_v0 = vmax.f32 %v2112_v28, 0.0  ;;  %v2361_v14 = vmax.f32 %v2058_v55, 0.0 }
 0x46c   : > { %v6521_v61 = vpack.c.bf16 %v2364_v57, %v2360_v56 }
 0x46d   : > { %v2059_v15 = vpop.f32.mrf.mxu2  ;;  %v6524_v41 = vpack.c.bf16 %v2367_v9, %v2363_v45  ;;  %v2434_v8 = vpack.c.bf16 %v2310_v40, %v2306_v0  ;;  %v2435_v9 = vpack.c.bf16 %v2311_v12, %v2307_v62  ;;  %v1939_v12 = vadd.f32 %v6292_v36, %v6264_v35 }
 0x46e   : > { %7245 = vst [vmem:[#allocation53_spill] sm:$0xff] %v6521_v61  ;;  %v2060_v19 = vadd.f32 %v2059_v15, %v6266_v54  ;;  %v2148_v17 = vpop.f32.mrf.mxu3  ;;  %v2362_v61 = vmax.f32 %v2147_v4, 0.0  ;;  %v2206_v4 = vadd.f32 %v6294_v63, %v6268_v11  ;;  %v2117_v15 = vadd.f32 %v6298_v50, %v6270_v5 }
 0x46f   : > { %v2149_v38 = vadd.f32 %v2148_v17, %v6270_v5  ;;  %v2729_v3 = vpop.f32.mrf.mxu1  ;;  %v2317_v17 = vmax.f32 %v2030_v27, 0.0 }
 0x470   : > { %v2365_v56 = vmax.f32 %v2060_v19, 0.0  ;;  %v2996_v57 = vpop.f32.mrf.mxu0  ;;  %v1941_v19 = vadd.f32 %v6300_v20, %v6264_v35  ;;  %v2028_v20 = vadd.f32 %v6296_v52, %v6266_v54 }
 0x471   : > { %v2366_v42 = vmax.f32 %v2149_v38, 0.0  ;;  %v2312_v38 = vmax.f32 %v1939_v12, 0.0 }
 0x472   : > { %2768 = vmatmul.bf16.gmra.mxu1 %v2432_v32  ;;  %2857 = vmatmul.bf16.gmra.mxu2 %v2433_v37  ;;  %v6528_v7 = vpack.c.bf16 %v2365_v56, %v2361_v14  ;;  %v2316_v22 = vmax.f32 %v1941_v19, 0.0  ;;  %v7246_v56 = vld [vmem:[#allocation5_spill] sm:$0xff]  ;;  %v2314_v32 = vmax.f32 %v2117_v15, 0.0  ;;  %v2213_v15 = vadd.f32 %v6346_v16, %v6268_v11 }
 0x473   : > { %2946 = vmatmul.bf16.gmra.mxu3 %v2434_v8  ;;  %3035 = vmatmul.bf16.gmra.mxu0 %v2435_v9  ;;  %v6530_v33 = vpack.c.bf16 %v2366_v42, %v2362_v61  ;;  %v2208_v8 = vadd.f32 %v6302_v43, %v6268_v11  ;;  %v2119_v61 = vadd.f32 %v6322_v2, %v6270_v5 }
 0x474   : > { %v2436_v50 = vpack.c.bf16 %v2316_v22, %v2312_v38  ;;  %v2124_v22 = vadd.f32 %v6354_v10, %v6270_v5  ;;  %v2327_v38 = vmax.f32 %v2213_v15, 0.0  ;;  %v2218_v15 = vadd.f32 %v6382_v59, %v6268_v11 }
 0x475   : > { %v2818_v6 = vpop.f32.mrf.mxu2  ;;  %v2319_v62 = vmax.f32 %v2208_v8, 0.0  ;;  %v2318_v0 = vmax.f32 %v2119_v61, 0.0  ;;  %v7247_v8 = vld [vmem:[#allocation6_spill] sm:$0xff] }
 0x476   : > { %v2819_v28 = vadd.f32 %v2818_v6, %v2729_v3  ;;  %v2907_v45 = vpop.f32.mrf.mxu3  ;;  %v2313_v3 = vmax.f32 %v2028_v20, 0.0  ;;  %v1946_v20 = vadd.f32 %v6340_v23, %v6264_v35 }
 0x477   : > { %v2731_v55 = vpop.f32.mrf.mxu1  ;;  %v2438_v6 = vpack.c.bf16 %v2318_v0, %v2314_v32 }
 0x478   : > { %v2908_v40 = vadd.f32 %v2907_v45, %v2819_v28  ;;  %v2998_v26 = vpop.f32.mrf.mxu0  ;;  %v2437_v9 = vpack.c.bf16 %v2317_v17, %v2313_v3  ;;  %v1944_v17 = vadd.f32 %v6324_v49, %v6264_v35  ;;  %v2324_v0 = vmax.f32 %v1946_v20, 0.0 }
 0x479   : > { %v2326_v3 = vmax.f32 %v2124_v22, 0.0  ;;  %v1951_v20 = vadd.f32 %v6380_v58, %v6264_v35  ;;  %v2129_v22 = vadd.f32 %v6386_v18, %v6270_v5 }
 0x47a   : > { %v2997_v13 = vadd.f32 %v2996_v57, %v2908_v40  ;;  %v2315_v57 = vmax.f32 %v2206_v4, 0.0 }
 0x47c   : > { %v3177_v43 = vadd.f32 %v6539_v60, %v2997_v13  ;;  %v2439_v28 = vpack.c.bf16 %v2319_v62, %v2315_v57  ;;  %v2035_v13 = vadd.f32 %v6352_v25, %v6266_v54  ;;  %v2211_v25 = vadd.f32 %v6326_v24, %v6268_v11  ;;  %v7248_v57 = vld [vmem:[#allocation7_spill] sm:$0xff] }
 0x47d   : > { %v2820_v2 = vpop.f32.mrf.mxu2  ;;  %v2122_v62 = vadd.f32 %v6330_v31, %v6270_v5 }
 0x47e   : > { %v2821_v36 = vadd.f32 %v2820_v2, %v2731_v55  ;;  %v2909_v14 = vpop.f32.mrf.mxu3  ;;  %v6555_v52 = vadd.f32 %v3177_v43, %v7246_v56  ;;  %v2033_v43 = vadd.f32 %v6328_v48, %v6266_v54  ;;  %v2325_v2 = vmax.f32 %v2035_v13, 0.0 }
 0x47f   : > { %v2734_v63 = vpop.f32.mrf.mxu1  ;;  %v2323_v32 = vmax.f32 %v2211_v25, 0.0  ;;  %v2040_v13 = vadd.f32 %v6384_v21, %v6266_v54  ;;  %v2216_v21 = vadd.f32 %v6358_v39, %v6268_v11  ;;  %v2332_v25 = vmax.f32 %v1951_v20, 0.0 }
 0x480   : > { %v2910_v37 = vadd.f32 %v2909_v14, %v2821_v36  ;;  %v3001_v42 = vpop.f32.mrf.mxu0  ;;  %3275 = vadd.xlane.f32.xlu1 %v6555_v52  ;;  %v2320_v36 = vmax.f32 %v1944_v17, 0.0  ;;  %v2321_v14 = vmax.f32 %v2033_v43, 0.0  ;;  %v1949_v17 = vadd.f32 %v6356_v44, %v6264_v35 }
 0x481   : > { %v2038_v43 = vadd.f32 %v6360_v34, %v6266_v54  ;;  %v1954_v20 = vadd.f32 %v6388_v30, %v6264_v35 }
 0x482   : > { %v2999_v45 = vadd.f32 %v2998_v26, %v2910_v37  ;;  %2773 = vmatmul.bf16.gmra.mxu1 %v2436_v50  ;;  %2862 = vmatmul.bf16.gmra.mxu2 %v2437_v9  ;;  %v2440_v31 = vpack.c.bf16 %v2324_v0, %v2320_v36  ;;  %v2441_v50 = vpack.c.bf16 %v2325_v2, %v2321_v14  ;;  %v2335_v0 = vmax.f32 %v2218_v15, 0.0 }
 0x483   : > { %2951 = vmatmul.bf16.gmra.mxu3 %v2438_v6  ;;  %3040 = vmatmul.bf16.gmra.mxu0 %v2439_v28  ;;  %v2443_v6 = vpack.c.bf16 %v2327_v38, %v2323_v32  ;;  %v2334_v2 = vmax.f32 %v2129_v22, 0.0  ;;  %v2329_v38 = vmax.f32 %v2038_v43, 0.0  ;;  %v2331_v36 = vmax.f32 %v2216_v21, 0.0 }
 0x484   : > { %v3178_v55 = vadd.f32 %v6539_v60, %v2999_v45  ;;  %v2336_v21 = vmax.f32 %v1954_v20, 0.0 }
 0x485   : > { %v2823_v19 = vpop.f32.mrf.mxu2 }
 0x486   : > { %v2824_v27 = vadd.f32 %v2823_v19, %v2734_v63  ;;  %v2912_v40 = vpop.f32.mrf.mxu3  ;;  %v6560_v61 = vadd.f32 %v3178_v55, %v7247_v8  ;;  %v2322_v63 = vmax.f32 %v2122_v62, 0.0  ;;  %v2333_v62 = vmax.f32 %v2040_v13, 0.0 }
 0x487   : > { %v2736_v12 = vpop.f32.mrf.mxu1  ;;  %v2043_v13 = vadd.f32 %v6408_v51, %v6266_v54 }
 0x488   : > { %v2913_v26 = vadd.f32 %v2912_v40, %v2824_v27  ;;  %v3003_v4 = vpop.f32.mrf.mxu0  ;;  %3277 = vadd.xlane.f32.xlu2 %v6560_v61  ;;  %v2442_v9 = vpack.c.bf16 %v2326_v3, %v2322_v63  ;;  %v7249_v40 = vld [vmem:[#allocation8_spill] sm:$0xff]  ;;  %v2447_v63 = vpack.c.bf16 %v2335_v0, %v2331_v36 }
 0x48a   : > { %v3002_v23 = vadd.f32 %v3001_v42, %v2913_v26 }
 0x48c   : > { %v3179_v16 = vadd.f32 %v6539_v60, %v3002_v23  ;;  %v2127_v23 = vadd.f32 %v6366_v46, %v6270_v5 }
 0x48d   : > { %v2825_v10 = vpop.f32.mrf.mxu2 }
 0x48e   : > { %v2826_v49 = vadd.f32 %v2825_v10, %v2736_v12  ;;  %v2914_v56 = vpop.f32.mrf.mxu3  ;;  %v6581_v48 = vadd.f32 %v3179_v16, %v7248_v57  ;;  %v2328_v16 = vmax.f32 %v1949_v17, 0.0  ;;  %v7250_v10 = vld [vmem:[#allocation9_spill] sm:$0xff]  ;;  %v2330_v14 = vmax.f32 %v2127_v23, 0.0 }
 0x48f   : > { %v2739_v24 = vpop.f32.mrf.mxu1  ;;  %v2445_v57 = vpack.c.bf16 %v2333_v62, %v2329_v38  ;;  %v2337_v23 = vmax.f32 %v2043_v13, 0.0  ;;  %v7254_v62 = vld [vmem:[#allocation11_spill] sm:$0xff] }
 0x490   : > { %v2915_v37 = vadd.f32 %v2914_v56, %v2826_v49  ;;  %v3006_v42 = vpop.f32.mrf.mxu0  ;;  %3279 = vadd.xlane.f32.xlu0 %v6581_v48  ;;  %v2444_v46 = vpack.c.bf16 %v2332_v25, %v2328_v16  ;;  %v2446_v32 = vpack.c.bf16 %v2334_v2, %v2330_v14  ;;  %v7262_v13 = vld [vmem:[#allocation35_spill] sm:$0xff] }
 0x492   : > { %v3004_v28 = vadd.f32 %v3003_v4, %v2915_v37  ;;  %2778 = vmatmul.bf16.gmra.mxu1 %v2440_v31  ;;  %2867 = vmatmul.bf16.gmra.mxu2 %v2441_v50 }
 0x493   : > { %2956 = vmatmul.bf16.gmra.mxu3 %v2442_v9  ;;  %3045 = vmatmul.bf16.gmra.mxu0 %v2443_v6  ;;  %v7251_v9 = vld [vmem:[#allocation10_spill] sm:$0xff] }
 0x494   : > { %v3180_v45 = vadd.f32 %v6539_v60, %v3004_v28 }
 0x495   : > { %v2828_v55 = vpop.f32.mrf.mxu2 }
 0x496   : > { %v2829_v19 = vadd.f32 %v2828_v55, %v2739_v24  ;;  %v2917_v27 = vpop.f32.mrf.mxu3  ;;  %v6586_v8 = vadd.f32 %v3180_v45, %v7249_v40  ;;  %v1956_v45 = vadd.f32 %v6412_v1, %v6264_v35  ;;  %v2045_v55 = vadd.f32 %v6416_v53, %v6266_v54 }
 0x497   : > { %v2741_v12 = vpop.f32.mrf.mxu1  ;;  %v2223_v40 = vadd.f32 %v6414_v29, %v6268_v11 }
 0x498   : > { %v2918_v26 = vadd.f32 %v2917_v27, %v2829_v19  ;;  %v3008_v4 = vpop.f32.mrf.mxu0  ;;  %3281 = vadd.xlane.f32.xlu1 %v6586_v8  ;;  %v2340_v22 = vmax.f32 %v1956_v45, 0.0  ;;  %v2341_v17 = vmax.f32 %v2045_v55, 0.0  ;;  %v7259_v45 = vld [vmem:[#allocation46_spill] sm:$0xff] }
 0x499   : > { %v2343_v43 = vmax.f32 %v2223_v40, 0.0  ;;  %v2139_v55 = vadd.f32 %v7259_v45, %v6270_v5  ;;  %v7261_v40 = vld [vmem:[#allocation37_spill] sm:$0xff]  ;;  %v7269_v45 = vld [vmem:[#allocation54_spill] sm:$0xff] }
 0x49a   : > { %v3007_v58 = vadd.f32 %v3006_v42, %v2918_v26  ;;  %v7252_v26 = vld [vmem:[#allocation66_spill] sm:$0xff]  ;;  %v2448_v38 = vpack.c.bf16 %v2340_v22, %v2336_v21 }
 0x49b   : > { %v2221_v53 = vadd.f32 %v7252_v26, %v6268_v11  ;;  %v7263_v26 = vld [vmem:[#allocation36_spill] sm:$0xff] }
 0x49c   : > { %v3181_v59 = vadd.f32 %v6539_v60, %v3007_v58 }
 0x49d   : > { %v2830_v18 = vpop.f32.mrf.mxu2 }
 0x49e   : > { %v2831_v44 = vadd.f32 %v2830_v18, %v2741_v12  ;;  %v2919_v3 = vpop.f32.mrf.mxu3  ;;  %v6607_v34 = vadd.f32 %v3181_v59, %v7250_v10  ;;  %v2134_v12 = vadd.f32 %v6418_v47, %v6270_v5  ;;  %v2339_v59 = vmax.f32 %v2221_v53, 0.0 }
 0x49f   : > { %v2744_v39 = vpop.f32.mrf.mxu1  ;;  %v2137_v53 = vadd.f32 %v7263_v26, %v6270_v5  ;;  %v7273_v26 = vld [vmem:[#allocation42_spill] sm:$0xff] }
 0x4a0   : > { %v2920_v49 = vadd.f32 %v2919_v3, %v2831_v44  ;;  %v3011_v56 = vpop.f32.mrf.mxu0  ;;  %3283 = vadd.xlane.f32.xlu2 %v6607_v34  ;;  %v2342_v58 = vmax.f32 %v2134_v12, 0.0  ;;  %v2449_v44 = vpack.c.bf16 %v2341_v17, %v2337_v23  ;;  %v2451_v10 = vpack.c.bf16 %v2343_v43, %v2339_v59 }
 0x4a1   : > { %v2048_v12 = vadd.f32 %v7261_v40, %v6266_v54  ;;  %v2346_v59 = vmax.f32 %v2137_v53, 0.0  ;;  %v7271_v40 = vld [vmem:[#allocation40_spill] sm:$0xff]  ;;  %v2142_v53 = vadd.f32 %v7273_v26, %v6270_v5 }
 0x4a2   : > { %v3009_v24 = vadd.f32 %v3008_v4, %v2920_v49  ;;  %2783 = vmatmul.bf16.gmra.mxu1 %v2444_v46  ;;  %2872 = vmatmul.bf16.gmra.mxu2 %v2445_v57  ;;  %v7253_v4 = vld [vmem:[#allocation67_spill] sm:$0xff]  ;;  %v7255_v46 = vld [vmem:[#allocation12_spill] sm:$0xff] }
 0x4a3   : > { %2961 = vmatmul.bf16.gmra.mxu3 %v2446_v32  ;;  %3050 = vmatmul.bf16.gmra.mxu0 %v2447_v63  ;;  %v2132_v15 = vadd.f32 %v7253_v4, %v6270_v5  ;;  %v7256_v63 = vld [vmem:[#allocation38_spill] sm:$0xff] }
 0x4a4   : > { %v3182_v37 = vadd.f32 %v6539_v60, %v3009_v24  ;;  %v1961_v24 = vadd.f32 %v7256_v63, %v6264_v35  ;;  %v7266_v63 = vld [vmem:[#allocation41_spill] sm:$0xff] }
 0x4a5   : > { %v2833_v42 = vpop.f32.mrf.mxu2  ;;  %v2338_v0 = vmax.f32 %v2132_v15, 0.0 }
 0x4a6   : > { %v2834_v31 = vadd.f32 %v2833_v42, %v2744_v39  ;;  %v2922_v50 = vpop.f32.mrf.mxu3  ;;  %v6612_v6 = vadd.f32 %v3182_v37, %v7251_v9  ;;  %v7257_v37 = vld [vmem:[#allocation44_spill] sm:$0xff]  ;;  %v2348_v4 = vmax.f32 %v1961_v24, 0.0  ;;  %v1966_v24 = vadd.f32 %v7266_v63, %v6264_v35 }
 0x4a7   : > { %v2746_v28 = vpop.f32.mrf.mxu1  ;;  %v2450_v3 = vpack.c.bf16 %v2342_v58, %v2338_v0  ;;  %v2050_v42 = vadd.f32 %v7257_v37, %v6266_v54  ;;  %v7258_v9 = vld [vmem:[#allocation68_spill] sm:$0xff] }
 0x4a8   : > { %v2923_v19 = vadd.f32 %v2922_v50, %v2834_v31  ;;  %v3013_v27 = vpop.f32.mrf.mxu0  ;;  %3285 = vadd.xlane.f32.xlu0 %v6612_v6  ;;  %v7267_v37 = vld [vmem:[#allocation52_spill] sm:$0xff] }
 0x4a9   : > { %v2349_v15 = vmax.f32 %v2050_v42, 0.0  ;;  %v2055_v42 = vadd.f32 %v7267_v37, %v6266_v54 }
 0x4aa   : > { %v3012_v1 = vadd.f32 %v3011_v56, %v2923_v19  ;;  %v7260_v19 = vld [vmem:[#allocation39_spill] sm:$0xff] }
 0x4ac   : > { %v3183_v29 = vadd.f32 %v6539_v60, %v3012_v1  ;;  %v2226_v1 = vadd.f32 %v7262_v13, %v6268_v11  ;;  %v7272_v13 = vld [vmem:[#allocation47_spill] sm:$0xff] }
 0x4ad   : > { %v2835_v47 = vpop.f32.mrf.mxu2 }
 0x4ae   : > { %v2836_v30 = vadd.f32 %v2835_v47, %v2746_v28  ;;  %v2924_v25 = vpop.f32.mrf.mxu3  ;;  %v6633_v51 = vadd.f32 %v3183_v29, %v7254_v62  ;;  %v2228_v28 = vadd.f32 %v7258_v9, %v6268_v11  ;;  %v2350_v29 = vmax.f32 %v2139_v55, 0.0  ;;  %v7268_v9 = vld [vmem:[#allocation43_spill] sm:$0xff] }
 0x4af   : > { %v2749_v2 = vpop.f32.mrf.mxu1  ;;  %v2345_v47 = vmax.f32 %v2048_v12, 0.0  ;;  %v2347_v62 = vmax.f32 %v2226_v1, 0.0  ;;  %v2144_v55 = vadd.f32 %v7269_v45, %v6270_v5  ;;  %v2053_v12 = vadd.f32 %v7271_v40, %v6266_v54 }
 0x4b0   : > { %v2925_v18 = vadd.f32 %v2924_v25, %v2836_v30  ;;  %v3016_v16 = vpop.f32.mrf.mxu0  ;;  %3287 = vadd.xlane.f32.xlu1 %v6633_v51  ;;  %v2351_v17 = vmax.f32 %v2228_v28, 0.0  ;;  %v7264_v30 = vld [vmem:[#allocation13_spill] sm:$0xff]  ;;  %v2233_v28 = vadd.f32 %v7268_v9, %v6268_v11  ;;  %v2231_v1 = vadd.f32 %v7272_v13, %v6268_v11 }
 0x4b2   : > { %v3014_v36 = vadd.f32 %v3013_v27, %v2925_v18  ;;  %2788 = vmatmul.bf16.gmra.mxu1 %v2448_v38  ;;  %2877 = vmatmul.bf16.gmra.mxu2 %v2449_v44  ;;  %v1959_v27 = vadd.f32 %v7260_v19, %v6264_v35  ;;  %v2453_v38 = vpack.c.bf16 %v2349_v15, %v2345_v47  ;;  %v7270_v19 = vld [vmem:[#allocation45_spill] sm:$0xff]  ;;  %v2357_v15 = vmax.f32 %v2055_v42, 0.0 }
 0x4b3   : > { %2966 = vmatmul.bf16.gmra.mxu3 %v2450_v3  ;;  %3055 = vmatmul.bf16.gmra.mxu0 %v2451_v10  ;;  %v2454_v44 = vpack.c.bf16 %v2350_v29, %v2346_v59  ;;  %v2455_v3 = vpack.c.bf16 %v2351_v17, %v2347_v62  ;;  %v2359_v17 = vmax.f32 %v2233_v28, 0.0  ;;  %v2358_v29 = vmax.f32 %v2144_v55, 0.0 }
 0x4b4   : > { %v3184_v14 = vadd.f32 %v6539_v60, %v3014_v36  ;;  %v2344_v58 = vmax.f32 %v1959_v27, 0.0  ;;  %v1964_v27 = vadd.f32 %v7270_v19, %v6264_v35  ;;  %v2353_v47 = vmax.f32 %v2053_v12, 0.0 }
 0x4b5   : > { %v2838_v39 = vpop.f32.mrf.mxu2  ;;  %v2354_v62 = vmax.f32 %v2142_v53, 0.0 }
 0x4b6   : > { %v2839_v49 = vadd.f32 %v2838_v39, %v2749_v2  ;;  %v2927_v56 = vpop.f32.mrf.mxu3  ;;  %v6638_v57 = vadd.f32 %v3184_v14, %v7255_v46 }
 0x4b7   : > { %v2751_v32 = vpop.f32.mrf.mxu1 }
 0x4b8   : > { %v2928_v31 = vadd.f32 %v2927_v56, %v2839_v49  ;;  %v3018_v50 = vpop.f32.mrf.mxu0  ;;  %3289 = vadd.xlane.f32.xlu2 %v6638_v57  ;;  %v7265_v56 = vld [vmem:[#allocation14_spill] sm:$0xff] }
 0x4ba   : > { %v3017_v20 = vadd.f32 %v3016_v16, %v2928_v31  ;;  %v2452_v16 = vpack.c.bf16 %v2348_v4, %v2344_v58  ;;  %v2356_v4 = vmax.f32 %v1966_v24, 0.0  ;;  %v2352_v58 = vmax.f32 %v1964_v27, 0.0  ;;  %v7277_v27 = vld [vmem:[#allocation53_spill] sm:$0xff] }
 0x4bc   : > { %v3185_v22 = vadd.f32 %v6539_v60, %v3017_v20  ;;  %v2456_v5 = vpack.c.bf16 %v2356_v4, %v2352_v58 }
 0x4bd   : > { %v2840_v43 = vpop.f32.mrf.mxu2 }
 0x4be   : > { %v2841_v21 = vadd.f32 %v2840_v43, %v2751_v32  ;;  %v2929_v23 = vpop.f32.mrf.mxu3  ;;  %v6659_v25 = vadd.f32 %v3185_v22, %v7264_v30  ;;  %v2355_v30 = vmax.f32 %v2231_v1, 0.0  ;;  %v7278_v1 = vld [vmem:[#allocation18_spill] sm:$0xff] }
 0x4bf   : > { %v2754_v0 = vpop.f32.mrf.mxu1 }
 0x4c0   : > { %v2930_v2 = vadd.f32 %v2929_v23, %v2841_v21  ;;  %v3021_v18 = vpop.f32.mrf.mxu0  ;;  %3291 = vadd.xlane.f32.xlu0 %v6659_v25  ;;  %v7274_v23 = vld [vmem:[#allocation15_spill] sm:$0xff] }
 0x4c2   : > { %v3019_v10 = vadd.f32 %v3018_v50, %v2930_v2  ;;  %2793 = vmatmul.bf16.gmra.mxu1 %v2452_v16  ;;  %2882 = vmatmul.bf16.gmra.mxu2 %v2453_v38  ;;  %v2457_v2 = vpack.c.bf16 %v2357_v15, %v2353_v47  ;;  %v2459_v16 = vpack.c.bf16 %v2359_v17, %v2355_v30 }
 0x4c3   : > { %2971 = vmatmul.bf16.gmra.mxu3 %v2454_v44  ;;  %3060 = vmatmul.bf16.gmra.mxu0 %v2455_v3 }
 0x4c4   : > { %v3186_v36 = vadd.f32 %v6539_v60, %v3019_v10 }
 0x4c5   : > { %v2843_v14 = vpop.f32.mrf.mxu2 }
 0x4c6   : > { %v2844_v39 = vadd.f32 %v2843_v14, %v2754_v0  ;;  %v2932_v49 = vpop.f32.mrf.mxu3  ;;  %v6664_v46 = vadd.f32 %v3186_v36, %v7265_v56  ;;  %v7275_v14 = vld [vmem:[#allocation16_spill] sm:$0xff] }
 0x4c7   : > { %v2756_v32 = vpop.f32.mrf.mxu1 }
 0x4c8   : > { %v2933_v31 = vadd.f32 %v2932_v49, %v2844_v39  ;;  %v3023_v50 = vpop.f32.mrf.mxu0  ;;  %3293 = vadd.xlane.f32.xlu1 %v6664_v46 }
 0x4ca   : > { %v3022_v20 = vadd.f32 %v3021_v18, %v2933_v31  ;;  %v2458_v18 = vpack.c.bf16 %v2358_v29, %v2354_v62 }
 0x4cc   : > { %v3187_v22 = vadd.f32 %v6539_v60, %v3022_v20 }
 0x4cd   : > { %v2845_v43 = vpop.f32.mrf.mxu2 }
 0x4ce   : > { %v2846_v35 = vadd.f32 %v2845_v43, %v2756_v32  ;;  %v2934_v21 = vpop.f32.mrf.mxu3  ;;  %v6685_v54 = vadd.f32 %v3187_v22, %v7274_v23 }
 0x4cf   : > { %v2759_v11 = vpop.f32.mrf.mxu1 }
 0x4d0   : > { %v2935_v59 = vadd.f32 %v2934_v21, %v2846_v35  ;;  %v3026_v0 = vpop.f32.mrf.mxu0  ;;  %3295 = vadd.xlane.f32.xlu2 %v6685_v54 }
 0x4d2   : > { %v3024_v38 = vadd.f32 %v3023_v50, %v2935_v59  ;;  %2798 = vmatmul.bf16.gmra.mxu1 %v2456_v5  ;;  %2887 = vmatmul.bf16.gmra.mxu2 %v2457_v2  ;;  %v7276_v50 = vld [vmem:[#allocation17_spill] sm:$0xff]  ;;  %v7280_v2 = vld [vmem:[#allocation20_spill] sm:$0xff] }
 0x4d3   : > { %2976 = vmatmul.bf16.gmra.mxu3 %v2458_v18  ;;  %3065 = vmatmul.bf16.gmra.mxu0 %v2459_v16 }
 0x4d4   : > { %v3188_v44 = vadd.f32 %v6539_v60, %v3024_v38 }
 0x4d5   : > { %v2848_v3 = vpop.f32.mrf.mxu2 }
 0x4d6   : > { %v2849_v10 = vadd.f32 %v2848_v3, %v2759_v11  ;;  %v2937_v36 = vpop.f32.mrf.mxu3  ;;  %v6690_v39 = vadd.f32 %v3188_v44, %v7275_v14 }
 0x4d7   : > { %v2761_v49 = vpop.f32.mrf.mxu1 }
 0x4d8   : > { %v2938_v56 = vadd.f32 %v2937_v36, %v2849_v10  ;;  %v3028_v32 = vpop.f32.mrf.mxu0  ;;  %3297 = vadd.xlane.f32.xlu0 %v6690_v39 }
 0x4da   : > { %v3027_v63 = vadd.f32 %v3026_v0, %v2938_v56 }
 0x4dc   : > { %v3189_v24 = vadd.f32 %v6539_v60, %v3027_v63 }
 0x4dd   : > { %v2850_v37 = vpop.f32.mrf.mxu2 }
 0x4de   : > { %v2851_v42 = vadd.f32 %v2850_v37, %v2761_v49  ;;  %v2939_v31 = vpop.f32.mrf.mxu3  ;;  %v6695_v9 = vadd.f32 %v3189_v24, %v7276_v50  ;;  %v7281_v24 = vld [vmem:[#allocation21_spill] sm:$0xff] }
 0x4df   : > { %v2764_v28 = vpop.f32.mrf.mxu1 }
 0x4e0   : > { %v2940_v45 = vadd.f32 %v2939_v31, %v2851_v42  ;;  %v3031_v55 = vpop.f32.mrf.mxu0  ;;  %3299 = vadd.xlane.f32.xlu1 %v6695_v9 }
 0x4e2   : > { %v3029_v19 = vadd.f32 %v3028_v32, %v2940_v45  ;;  %2803 = vmatmul.bf16.gmra.mxu1 %v7277_v27  ;;  %2892 = vmatmul.bf16.gmra.mxu2 %v6528_v7 }
 0x4e3   : > { %2981 = vmatmul.bf16.gmra.mxu3 %v6530_v33  ;;  %3070 = vmatmul.bf16.gmra.mxu0 %v6524_v41  ;;  %v7279_v41 = vld [vmem:[#allocation19_spill] sm:$0xff] }
 0x4e4   : > { %v3190_v40 = vadd.f32 %v6539_v60, %v3029_v19 }
 0x4e5   : > { %v2853_v12 = vpop.f32.mrf.mxu2 }
 0x4e6   : > { %v2854_v20 = vadd.f32 %v2853_v12, %v2764_v28  ;;  %v2942_v13 = vpop.f32.mrf.mxu3  ;;  %v6704_v26 = vadd.f32 %v3190_v40, %v7278_v1 }
 0x4e7   : > { %v2766_v53 = vpop.f32.mrf.mxu1 }
 0x4e8   : > { %v2943_v4 = vadd.f32 %v2942_v13, %v2854_v20  ;;  %v3033_v15 = vpop.f32.mrf.mxu0  ;;  %3301 = vadd.xlane.f32.xlu2 %v6704_v26  ;;  %v7282_v13 = vld [vmem:[#allocation22_spill] sm:$0xff] }
 0x4ea   : > { %v3032_v22 = vadd.f32 %v3031_v55, %v2943_v4 }
 0x4ec   : > { %v3191_v7 = vadd.f32 %v6539_v60, %v3032_v22 }
 0x4ed   : > { %v2855_v17 = vpop.f32.mrf.mxu2 }
 0x4ee   : > { %v2856_v33 = vadd.f32 %v2855_v17, %v2766_v53  ;;  %v2944_v29 = vpop.f32.mrf.mxu3  ;;  %v6709_v43 = vadd.f32 %v3191_v7, %v7279_v41 }
 0x4ef   : > { %v2769_v58 = vpop.f32.mrf.mxu1 }
 0x4f0   : > { %v2945_v47 = vadd.f32 %v2944_v29, %v2856_v33  ;;  %v3036_v35 = vpop.f32.mrf.mxu0  ;;  %3303 = vadd.xlane.f32.xlu0 %v6709_v43 }
 0x4f2   : > { %v3034_v21 = vadd.f32 %v3033_v15, %v2945_v47 }
 0x4f3   : > { %v3276_v23 = vpop.xlane.xlu1 %3275 }
 0x4f4   : > { %v3339_v30 = vmul.f32 0.0078125, %v3276_v23  ;;  %v3192_v62 = vadd.f32 %v6539_v60, %v3034_v21 }
 0x4f5   : > { %v2858_v11 = vpop.f32.mrf.mxu2 }
 0x4f6   : > { %v6714_v59 = vsub.f32 %v6555_v52, %v3339_v30  ;;  %v2859_v0 = vadd.f32 %v2858_v11, %v2769_v58  ;;  %v2947_v5 = vpop.f32.mrf.mxu3  ;;  %v6717_v18 = vadd.f32 %v3192_v62, %v7280_v2 }
 0x4f7   : > { %v2771_v16 = vpop.f32.mrf.mxu1 }
 0x4f8   : > { %v2948_v38 = vadd.f32 %v2947_v5, %v2859_v0  ;;  %v3038_v44 = vpop.f32.mrf.mxu0  ;;  %3305 = vadd.xlane.f32.xlu1 %v6717_v18  ;;  %v3435_v3 = vmul.f32 %v6714_v59, %v6714_v59 }
 0x4fa   : > { %v3037_v10 = vadd.f32 %v3036_v35, %v2948_v38  ;;  %3467 = vadd.xlane.f32.xlu0 %v3435_v3  ;;  %v7283_v35 = vld [vmem:[#allocation23_spill] sm:$0xff] }
 0x4fb   : > { %v3278_v36 = vpop.xlane.xlu2 %3277 }
 0x4fc   : > { %v3340_v14 = vmul.f32 0.0078125, %v3278_v36  ;;  %v3193_v52 = vadd.f32 %v6539_v60, %v3037_v10  ;;  %v7284_v10 = vld [vmem:[#allocation24_spill] sm:$0xff] }
 0x4fd   : > { %v2860_v49 = vpop.f32.mrf.mxu2 }
 0x4fe   : > { %v6724_v56 = vsub.f32 %v6560_v61, %v3340_v14  ;;  %v2861_v32 = vadd.f32 %v2860_v49, %v2771_v16  ;;  %v2949_v63 = vpop.f32.mrf.mxu3  ;;  %v6727_v37 = vadd.f32 %v3193_v52, %v7281_v24 }
 0x4ff   : > { %v2774_v42 = vpop.f32.mrf.mxu1 }
 0x500   : > { %v2950_v31 = vadd.f32 %v2949_v63, %v2861_v32  ;;  %v3041_v50 = vpop.f32.mrf.mxu0  ;;  %3307 = vadd.xlane.f32.xlu2 %v6727_v37  ;;  %v3436_v28 = vmul.f32 %v6724_v56, %v6724_v56 }
 0x502   : > { %v3039_v45 = vadd.f32 %v3038_v44, %v2950_v31  ;;  %3469 = vadd.xlane.f32.xlu1 %v3436_v28 }
 0x503   : > { %v3280_v55 = vpop.xlane.xlu0 %3279 }
 0x504   : > { %v3341_v19 = vmul.f32 0.0078125, %v3280_v55  ;;  %v3194_v61 = vadd.f32 %v6539_v60, %v3039_v45  ;;  %v7285_v55 = vld [vmem:[#allocation25_spill] sm:$0xff] }
 0x505   : > { %v2863_v27 = vpop.f32.mrf.mxu2 }
 0x506   : > { %v6734_v40 = vsub.f32 %v6581_v48, %v3341_v19  ;;  %v2864_v12 = vadd.f32 %v2863_v27, %v2774_v42  ;;  %v2952_v20 = vpop.f32.mrf.mxu3  ;;  %v6737_v1 = vadd.f32 %v3194_v61, %v7282_v13 }
 0x507   : > { %v2776_v53 = vpop.f32.mrf.mxu1 }
 0x508   : > { %v2953_v4 = vadd.f32 %v2952_v20, %v2864_v12  ;;  %v3043_v15 = vpop.f32.mrf.mxu0  ;;  %3309 = vadd.xlane.f32.xlu0 %v6737_v1  ;;  %v3437_v22 = vmul.f32 %v6734_v40, %v6734_v40 }
 0x50a   : > { %v3042_v7 = vadd.f32 %v3041_v50, %v2953_v4  ;;  %3471 = vadd.xlane.f32.xlu2 %v3437_v22 }
 0x50b   : > { %v3282_v17 = vpop.xlane.xlu1 %3281 }
 0x50c   : > { %v3342_v33 = vmul.f32 0.0078125, %v3282_v17  ;;  %v3195_v48 = vadd.f32 %v6539_v60, %v3042_v7 }
 0x50d   : > { %v2865_v29 = vpop.f32.mrf.mxu2 }
 0x50e   : > { %v6744_v41 = vsub.f32 %v6586_v8, %v3342_v33  ;;  %v2866_v58 = vadd.f32 %v2865_v29, %v2776_v53  ;;  %v2954_v47 = vpop.f32.mrf.mxu3  ;;  %v6747_v21 = vadd.f32 %v3195_v48, %v7283_v35  ;;  %v7286_v33 = vld [vmem:[#allocation26_spill] sm:$0xff] }
 0x50f   : > { %v2779_v23 = vpop.f32.mrf.mxu1 }
 0x510   : > { %v2955_v30 = vadd.f32 %v2954_v47, %v2866_v58  ;;  %v3046_v62 = vpop.f32.mrf.mxu0  ;;  %3311 = vadd.xlane.f32.xlu1 %v6747_v21  ;;  %v3438_v11 = vmul.f32 %v6744_v41, %v6744_v41 }
 0x512   : > { %v3044_v0 = vadd.f32 %v3043_v15, %v2955_v30  ;;  %3473 = vadd.xlane.f32.xlu0 %v3438_v11 }
 0x513   : > { %v3284_v5 = vpop.xlane.xlu2 %3283 }
 0x514   : > { %v3343_v2 = vmul.f32 0.0078125, %v3284_v5  ;;  %v3196_v8 = vadd.f32 %v6539_v60, %v3044_v0 }
 0x515   : > { %v2868_v16 = vpop.f32.mrf.mxu2 }
 0x516   : > { %v6754_v38 = vsub.f32 %v6607_v34, %v3343_v2  ;;  %v2869_v44 = vadd.f32 %v2868_v16, %v2779_v23  ;;  %v2957_v3 = vpop.f32.mrf.mxu3  ;;  %v6757_v36 = vadd.f32 %v3196_v8, %v7284_v10  ;;  %v7287_v8 = vld [vmem:[#allocation27_spill] sm:$0xff] }
 0x517   : > { %v2781_v14 = vpop.f32.mrf.mxu1 }
 0x518   : > { %v2958_v52 = vadd.f32 %v2957_v3, %v2869_v44  ;;  %v3048_v49 = vpop.f32.mrf.mxu0  ;;  %3313 = vadd.xlane.f32.xlu2 %v6757_v36  ;;  %v3439_v32 = vmul.f32 %v6754_v38, %v6754_v38 }
 0x51a   : > { %v3047_v63 = vadd.f32 %v3046_v62, %v2958_v52  ;;  %3475 = vadd.xlane.f32.xlu1 %v3439_v32 }
 0x51b   : > { %v3286_v24 = vpop.xlane.xlu0 %3285 }
 0x51c   : > { %v3344_v42 = vmul.f32 0.0078125, %v3286_v24  ;;  %v3197_v34 = vadd.f32 %v6539_v60, %v3047_v63 }
 0x51d   : > { %v2870_v31 = vpop.f32.mrf.mxu2 }
 0x51e   : > { %v6764_v50 = vsub.f32 %v6612_v6, %v3344_v42  ;;  %v2871_v28 = vadd.f32 %v2870_v31, %v2781_v14  ;;  %v2959_v45 = vpop.f32.mrf.mxu3  ;;  %v6767_v19 = vadd.f32 %v3197_v34, %v7285_v55  ;;  %v7288_v31 = vld [vmem:[#allocation28_spill] sm:$0xff] }
 0x51f   : > { %v2784_v61 = vpop.f32.mrf.mxu1 }
 0x520   : > { %v2960_v27 = vadd.f32 %v2959_v45, %v2871_v28  ;;  %v3051_v12 = vpop.f32.mrf.mxu0  ;;  %3315 = vadd.xlane.f32.xlu0 %v6767_v19  ;;  %v3440_v20 = vmul.f32 %v6764_v50, %v6764_v50 }
 0x522   : > { %v3049_v13 = vadd.f32 %v3048_v49, %v2960_v27  ;;  %3477 = vadd.xlane.f32.xlu2 %v3440_v20 }
 0x523   : > { %v3288_v53 = vpop.xlane.xlu1 %3287 }
 0x524   : > { %v3345_v4 = vmul.f32 0.0078125, %v3288_v53  ;;  %v3198_v6 = vadd.f32 %v6539_v60, %v3049_v13 }
 0x525   : > { %v2873_v15 = vpop.f32.mrf.mxu2 }
 0x526   : > { %v6774_v22 = vsub.f32 %v6633_v51, %v3345_v4  ;;  %v2874_v7 = vadd.f32 %v2873_v15, %v2784_v61  ;;  %v2962_v17 = vpop.f32.mrf.mxu3  ;;  %v6777_v48 = vadd.f32 %v3198_v6, %v7286_v33 }
 0x527   : > { %v2786_v29 = vpop.f32.mrf.mxu1 }
 0x528   : > { %v2963_v58 = vadd.f32 %v2962_v17, %v2874_v7  ;;  %v3053_v47 = vpop.f32.mrf.mxu0  ;;  %3317 = vadd.xlane.f32.xlu1 %v6777_v48  ;;  %v3441_v35 = vmul.f32 %v6774_v22, %v6774_v22  ;;  %v7289_v7 = vld [vmem:[#allocation29_spill] sm:$0xff] }
 0x52a   : > { %v3052_v23 = vadd.f32 %v3051_v12, %v2963_v58  ;;  %3479 = vadd.xlane.f32.xlu0 %v3441_v35 }
 0x52b   : > { %v3290_v30 = vpop.xlane.xlu2 %3289 }
 0x52c   : > { %v3346_v62 = vmul.f32 0.0078125, %v3290_v30  ;;  %v3199_v51 = vadd.f32 %v6539_v60, %v3052_v23 }
 0x52d   : > { %v2875_v11 = vpop.f32.mrf.mxu2 }
 0x52e   : > { %v6784_v0 = vsub.f32 %v6638_v57, %v3346_v62  ;;  %v2876_v5 = vadd.f32 %v2875_v11, %v2786_v29  ;;  %v2964_v2 = vpop.f32.mrf.mxu3  ;;  %v6787_v16 = vadd.f32 %v3199_v51, %v7287_v8 }
 0x52f   : > { %v2789_v44 = vpop.f32.mrf.mxu1 }
 0x530   : > { %v2965_v3 = vadd.f32 %v2964_v2, %v2876_v5  ;;  %v3056_v10 = vpop.f32.mrf.mxu0  ;;  %3319 = vadd.xlane.f32.xlu2 %v6787_v16  ;;  %v3442_v14 = vmul.f32 %v6784_v0, %v6784_v0  ;;  %v7290_v2 = vld [vmem:[#allocation30_spill] sm:$0xff] }
 0x532   : > { %v3054_v52 = vadd.f32 %v3053_v47, %v2965_v3  ;;  %3481 = vadd.xlane.f32.xlu1 %v3442_v14 }
 0x533   : > { %v3292_v49 = vpop.xlane.xlu0 %3291 }
 0x534   : > { %v3347_v32 = vmul.f32 0.0078125, %v3292_v49  ;;  %v3200_v57 = vadd.f32 %v6539_v60, %v3054_v52 }
 0x535   : > { %v2878_v63 = vpop.f32.mrf.mxu2 }
 0x536   : > { %v6794_v24 = vsub.f32 %v6659_v25, %v3347_v32  ;;  %v2879_v42 = vadd.f32 %v2878_v63, %v2789_v44  ;;  %v2967_v34 = vpop.f32.mrf.mxu3  ;;  %v6797_v28 = vadd.f32 %v3200_v57, %v7288_v31  ;;  %v7291_v31 = vld [vmem:[#allocation31_spill] sm:$0xff] }
 0x537   : > { %v2791_v45 = vpop.f32.mrf.mxu1 }
 0x538   : > { %v2968_v55 = vadd.f32 %v2967_v34, %v2879_v42  ;;  %v3058_v61 = vpop.f32.mrf.mxu0  ;;  %3321 = vadd.xlane.f32.xlu0 %v6797_v28  ;;  %v3443_v27 = vmul.f32 %v6794_v24, %v6794_v24 }
 0x53a   : > { %v3057_v12 = vadd.f32 %v3056_v10, %v2968_v55  ;;  %3483 = vadd.xlane.f32.xlu2 %v3443_v27 }
 0x53b   : > { %v3294_v20 = vpop.xlane.xlu1 %3293 }
 0x53c   : > { %v3348_v13 = vmul.f32 0.0078125, %v3294_v20  ;;  %v3201_v25 = vadd.f32 %v6539_v60, %v3057_v12 }
 0x53d   : > { %v2880_v53 = vpop.f32.mrf.mxu2 }
 0x53e   : > { %v6804_v4 = vsub.f32 %v6664_v46, %v3348_v13  ;;  %v2881_v6 = vadd.f32 %v2880_v53, %v2791_v45  ;;  %v2969_v15 = vpop.f32.mrf.mxu3  ;;  %v6807_v17 = vadd.f32 %v3201_v25, %v7289_v7 }
 0x53f   : > { %v2794_v33 = vpop.f32.mrf.mxu1 }
 0x540   : > { %v2970_v29 = vadd.f32 %v2969_v15, %v2881_v6  ;;  %v3061_v58 = vpop.f32.mrf.mxu0  ;;  %3323 = vadd.xlane.f32.xlu1 %v6807_v17  ;;  %v3444_v47 = vmul.f32 %v6804_v4, %v6804_v4 }
 0x542   : > { %v3059_v35 = vadd.f32 %v3058_v61, %v2970_v29  ;;  %3485 = vadd.xlane.f32.xlu0 %v3444_v47 }
 0x543   : > { %v3296_v23 = vpop.xlane.xlu2 %3295 }
 0x544   : > { %v3349_v30 = vmul.f32 0.0078125, %v3296_v23  ;;  %v3202_v46 = vadd.f32 %v6539_v60, %v3059_v35 }
 0x545   : > { %v2883_v62 = vpop.f32.mrf.mxu2 }
 0x546   : > { %v6814_v51 = vsub.f32 %v6685_v54, %v3349_v30  ;;  %v2884_v11 = vadd.f32 %v2883_v62, %v2794_v33  ;;  %v2972_v5 = vpop.f32.mrf.mxu3  ;;  %v6817_v8 = vadd.f32 %v3202_v46, %v7290_v2  ;;  %v7292_v33 = vld [vmem:[#allocation32_spill] sm:$0xff] }
 0x547   : > { %v2796_v44 = vpop.f32.mrf.mxu1 }
 0x548   : > { %v2973_v3 = vadd.f32 %v2972_v5, %v2884_v11  ;;  %3325 = vadd.xlane.f32.xlu2 %v6817_v8  ;;  %v3445_v10 = vmul.f32 %v6814_v51, %v6814_v51  ;;  %v3063_v14 = vpop.f32.mrf.mxu0 }
 0x54a   : > { %v3062_v52 = vadd.f32 %v3061_v58, %v2973_v3  ;;  %3487 = vadd.xlane.f32.xlu1 %v3445_v10  ;;  %v7293_v3 = vld [vmem:[#allocation33_spill] sm:$0xff] }
 0x54b   : > { %v3298_v49 = vpop.xlane.xlu0 %3297 }
 0x54c   : > { %v3350_v32 = vmul.f32 0.0078125, %v3298_v49  ;;  %v3203_v54 = vadd.f32 %v6539_v60, %v3062_v52 }
 0x54d   : > { %v2885_v57 = vpop.f32.mrf.mxu2 }
 0x54e   : > { %v6824_v63 = vsub.f32 %v6690_v39, %v3350_v32  ;;  %v2886_v42 = vadd.f32 %v2885_v57, %v2796_v44  ;;  %v2974_v34 = vpop.f32.mrf.mxu3  ;;  %v6827_v45 = vadd.f32 %v3203_v54, %v7291_v31  ;;  %v7294_v31 = vld [vmem:[#allocation34_spill] sm:$0xff] }
 0x54f   : > { %v2799_v55 = vpop.f32.mrf.mxu1 }
 0x550   : > { %v2975_v61 = vadd.f32 %v2974_v34, %v2886_v42  ;;  %3327 = vadd.xlane.f32.xlu0 %v6827_v45  ;;  %v3446_v27 = vmul.f32 %v6824_v63, %v6824_v63  ;;  %v3066_v20 = vpop.f32.mrf.mxu0 }
 0x552   : > { %v3064_v12 = vadd.f32 %v3063_v14, %v2975_v61  ;;  %3489 = vadd.xlane.f32.xlu2 %v3446_v27 }
 0x553   : > { %v3300_v13 = vpop.xlane.xlu1 %3299 }
 0x554   : > { %v3351_v25 = vmul.f32 0.0078125, %v3300_v13  ;;  %v3204_v39 = vadd.f32 %v6539_v60, %v3064_v12 }
 0x555   : > { %v2888_v53 = vpop.f32.mrf.mxu2 }
 0x556   : > { %v6834_v6 = vsub.f32 %v6695_v9, %v3351_v25  ;;  %v2889_v15 = vadd.f32 %v2888_v53, %v2799_v55  ;;  %v2977_v7 = vpop.f32.mrf.mxu3  ;;  %v6837_v29 = vadd.f32 %v3204_v39, %v7292_v33  ;;  %v5093_v39 = vld [vmem:[%s7100_s2 + $0x3] ss:$0 sm:$0xff] }
 0x557   : > { %v2801_v47 = vpop.f32.mrf.mxu1 }
 0x558   : > { %v2978_v58 = vadd.f32 %v2977_v7, %v2889_v15  ;;  %3329 = vadd.xlane.f32.xlu1 %v6837_v29  ;;  %v3447_v35 = vmul.f32 %v6834_v6, %v6834_v6  ;;  %v3068_v9 = vpop.f32.mrf.mxu0 }
 0x55a   : > { %v3067_v23 = vadd.f32 %v3066_v20, %v2978_v58  ;;  %3491 = vadd.xlane.f32.xlu0 %v3447_v35 }
 0x55b   : > { %v3302_v30 = vpop.xlane.xlu2 %3301 }
 0x55c   : > { %v3352_v46 = vmul.f32 0.0078125, %v3302_v30  ;;  %v3205_v62 = vadd.f32 %v6539_v60, %v3067_v23 }
 0x55d   : > { %v2890_v11 = vpop.f32.mrf.mxu2 }
 0x55e   : > { %v6844_v5 = vsub.f32 %v6704_v26, %v3352_v46  ;;  %v2891_v2 = vadd.f32 %v2890_v11, %v2801_v47  ;;  %v2979_v44 = vpop.f32.mrf.mxu3  ;;  %v6847_v10 = vadd.f32 %v3205_v62, %v7293_v3  ;;  %v7295_v47 = vld [vmem:[#allocation56_spill] sm:$0xff] }
 0x55f   : > { %v2804_v32 = vpop.f32.mrf.mxu1 }
 0x560   : > { %v2980_v14 = vadd.f32 %v2979_v44, %v2891_v2  ;;  %3331 = vadd.xlane.f32.xlu2 %v6847_v10  ;;  %v3448_v52 = vmul.f32 %v6844_v5, %v6844_v5  ;;  %v3071_v61 = vpop.f32.mrf.mxu0 }
 0x562   : > { %v3069_v49 = vadd.f32 %v3068_v9, %v2980_v14  ;;  %3493 = vadd.xlane.f32.xlu1 %v3448_v52 }
 0x563   : > { %v3304_v57 = vpop.xlane.xlu0 %3303 }
 0x564   : > { %v3206_v54 = vadd.f32 %v6539_v60, %v3069_v49  ;;  %v3353_v14 = vmul.f32 0.0078125, %v3304_v57 }
 0x565   : > { %v2893_v42 = vpop.f32.mrf.mxu2 }
 0x566   : > { %v2894_v26 = vadd.f32 %v2893_v42, %v2804_v32  ;;  %v2982_v34 = vpop.f32.mrf.mxu3  ;;  %v6854_v55 = vadd.f32 %v3206_v54, %v7294_v31  ;;  %v7296_v32 = vld [vmem:[#allocation57_spill] sm:$0xff] }
 0x567   : > { %v2806_v13 = vpop.f32.mrf.mxu1 }
 0x568   : > { %v2983_v27 = vadd.f32 %v2982_v34, %v2894_v26  ;;  %3333 = vadd.xlane.f32.xlu0 %v6854_v55  ;;  %v3073_v9 = vpop.f32.mrf.mxu0 }
 0x56a   : > { %v3072_v12 = vadd.f32 %v3071_v61, %v2983_v27  ;;  %v6879_v61 = vsub.f32 %v6709_v43, %v3353_v14 }
 0x56b   : > { %v3306_v20 = vpop.xlane.xlu1 %3305 }
 0x56c   : > { %v3354_v25 = vmul.f32 0.0078125, %v3306_v20  ;;  %v3207_v60 = vadd.f32 %v5093_v39, %v3072_v12 }
 0x56d   : > { %v2895_v53 = vpop.f32.mrf.mxu2  ;;  %v3468_v15 = vpop.xlane.xlu0 %3467 }
 0x56e   : > { %v6861_v7 = vsub.f32 %v6717_v18, %v3354_v25  ;;  %v2896_v33 = vadd.f32 %v2895_v53, %v2806_v13  ;;  %v3531_v58 = vmul.f32 0.0078125, %v3468_v15  ;;  %v6864_v35 = vadd.f32 %v3207_v60, %v7295_v47  ;;  %v2984_v23 = vpop.f32.mrf.mxu3 }
 0x56f   : > { %v3449_v25 = vmul.f32 %v6879_v61, %v6879_v61 }
 0x570   : > { %v2985_v30 = vadd.f32 %v2984_v23, %v2896_v33  ;;  %v3563_v46 = vadd.f32 1e-05, %v3531_v58  ;;  %3335 = vadd.xlane.f32.xlu1 %v6864_v35  ;;  %v3450_v62 = vmul.f32 %v6861_v7, %v6861_v7 }
 0x572   : > { %v3074_v11 = vadd.f32 %v3073_v9, %v2985_v30  ;;  %5026 = vrsqrt.f32 %v3563_v46  ;;  %3497 = vadd.xlane.f32.xlu0 %v3450_v62  ;;  %vm3601_vm1 = vweird.f32 %v3563_v46 }
 0x573   : > { %v3308_v2 = vpop.xlane.xlu2 %3307 }
 0x574   : > { %v3355_v18 = vmul.f32 0.0078125, %v3308_v2  ;;  %v3208_v44 = vadd.f32 %v5093_v39, %v3074_v11 }
 0x575   : > { %v3470_v3 = vpop.xlane.xlu1 %3469 }
 0x576   : > { %v6870_v52 = vsub.f32 %v6727_v37, %v3355_v18  ;;  %v3532_v49 = vmul.f32 0.0078125, %v3470_v3  ;;  %v6873_v54 = vadd.f32 %v3208_v44, %v7296_v32 }
 0x578   : > { %v5027_v42 = vpop.eup %5026  ;;  %v3564_v26 = vadd.f32 1e-05, %v3532_v49  ;;  %3337 = vadd.xlane.f32.xlu2 %v6873_v54  ;;  %v3451_v34 = vmul.f32 %v6870_v52, %v6870_v52 }
 0x579   : > { %v3596_v31 = vmul.f32 %v5027_v42, %v3563_v46  ;;  %vm3602_vm0 = vweird.f32 %v5027_v42  ;;  %v6894_v46 = vld [vmem:[%s7100_s2 + $0x4] ss:$0 sm:$0xff] }
 0x57a   : > { %5028 = vrsqrt.f32 %v3564_v26  ;;  %3499 = vadd.xlane.f32.xlu1 %v3451_v34  ;;  %vm3603_vm2 = vmor %vm3601_vm1, %vm3602_vm0  ;;  %vm3611_vm4 = vweird.f32 %v3564_v26 }
 0x57b   : > { %v3597_v57 = vmul.f32 %v5027_v42, %v3596_v31  ;;  %v3310_v37 = vpop.xlane.xlu0 %3309 }
 0x57c   : > { %v3356_v20 = vmul.f32 0.0078125, %v3310_v37 }
 0x57d   : > { %v3598_v27 = vmul.f32 0.5, %v3597_v57  ;;  %v3472_v12 = vpop.xlane.xlu2 %3471  ;;  %v6902_v57 = vld [vmem:[%s7100_s2 + $0x5] ss:$0 sm:$0xff] }
 0x57e   : > { %v3533_v13 = vmul.f32 0.0078125, %v3472_v12  ;;  %v6884_v43 = vsub.f32 %v6737_v1, %v3356_v20 }
 0x57f   : > { %v3599_v39 = vsub.f32 1.5, %v3598_v27 }
 0x580   : > { %v5029_v60 = vpop.eup %5028  ;;  %v3565_v53 = vadd.f32 1e-05, %v3533_v13  ;;  %3495 = vadd.xlane.f32.xlu2 %v3449_v25  ;;  %v3452_v18 = vmul.f32 %v6884_v43, %v6884_v43 }
 0x581   : > { %v3600_v15 = vmul.f32 %v5027_v42, %v3599_v39  ;;  %v3606_v33 = vmul.f32 %v5029_v60, %v3564_v26  ;;  %vm3612_vm3 = vweird.f32 %v5029_v60 }
 0x582   : > { %5030 = vrsqrt.f32 %v3565_v53  ;;  %vm3613_vm5 = vmor %vm3611_vm4, %vm3612_vm3  ;;  %vm3621_vm7 = vweird.f32 %v3565_v53 }
 0x583   : > { %v3607_v58 = vmul.f32 %v5029_v60, %v3606_v33  ;;  %v3312_v47 = vpop.xlane.xlu1 %3311  ;;  %v3604_v30 = vsel %vm3603_vm2, %v5027_v42, %v3600_v15 }
 0x584   : > { %v3357_v23 = vmul.f32 0.0078125, %v3312_v47  ;;  %v3915_v3 = vmul.f32 %v3604_v30, %v6714_v59 }
 0x585   : > { %v3608_v62 = vmul.f32 0.5, %v3607_v58  ;;  %v3474_v9 = vpop.xlane.xlu0 %3473 }
 0x586   : > { %v6887_v11 = vsub.f32 %v6747_v21, %v3357_v23  ;;  %v3534_v2 = vmul.f32 0.0078125, %v3474_v9  ;;  %v3948_v59 = vmul.f32 %v6894_v46, %v3915_v3 }
 0x587   : > { %v3609_v44 = vsub.f32 1.5, %v3608_v62 }
 0x588   : > { %v5031_v1 = vpop.eup %5030  ;;  %v3566_v14 = vadd.f32 1e-05, %v3534_v2  ;;  %3501 = vadd.xlane.f32.xlu2 %v3452_v18  ;;  %v3453_v21 = vmul.f32 %v6887_v11, %v6887_v11  ;;  %v3981_v15 = vadd.f32 %v6902_v57, %v3948_v59 }
 0x589   : > { %v3610_v49 = vmul.f32 %v5029_v60, %v3609_v44  ;;  %v3616_v32 = vmul.f32 %v5031_v1, %v3565_v53  ;;  %vm3622_vm6 = vweird.f32 %v5031_v1 }
 0x58a   : > { %5032 = vrsqrt.f32 %v3566_v14  ;;  %3503 = vadd.xlane.f32.xlu0 %v3453_v21  ;;  %vm3623_vm8 = vmor %vm3621_vm7, %vm3622_vm6  ;;  %vm3631_vm10 = vweird.f32 %v3566_v14 }
 0x58b   : > { %v3614_v42 = vsel %vm3613_vm5, %v5029_v60, %v3610_v49  ;;  %v3617_v34 = vmul.f32 %v5031_v1, %v3616_v32  ;;  %v3314_v31 = vpop.xlane.xlu2 %3313 }
 0x58c   : > { %v3916_v37 = vmul.f32 %v3614_v42, %v6724_v56  ;;  %v3358_v27 = vmul.f32 0.0078125, %v3314_v31 }
 0x58d   : > { %v3618_v12 = vmul.f32 0.5, %v3617_v34  ;;  %v3476_v26 = vpop.xlane.xlu1 %3475 }
 0x58e   : > { %v3949_v20 = vmul.f32 %v6894_v46, %v3916_v37  ;;  %v6908_v13 = vsub.f32 %v6757_v36, %v3358_v27  ;;  %v3535_v25 = vmul.f32 0.0078125, %v3476_v26 }
 0x58f   : > { %v3619_v39 = vsub.f32 1.5, %v3618_v12 }
 0x590   : > { %v5033_v60 = vpop.eup %5032  ;;  %v3982_v33 = vadd.f32 %v6902_v57, %v3949_v20  ;;  %v3567_v58 = vadd.f32 1e-05, %v3535_v25  ;;  %v3454_v47 = vmul.f32 %v6908_v13, %v6908_v13 }
 0x591   : > { %v3620_v56 = vmul.f32 %v5031_v1, %v3619_v39  ;;  %v3626_v36 = vmul.f32 %v5033_v60, %v3566_v14  ;;  %vm3632_vm9 = vweird.f32 %v5033_v60 }
 0x592   : > { %v4801_v23 = vpack.c.bf16 %v3982_v33, %v3981_v15  ;;  %5034 = vrsqrt.f32 %v3567_v58  ;;  %3505 = vadd.xlane.f32.xlu1 %v3454_v47  ;;  %vm3633_vm11 = vmor %vm3631_vm10, %vm3632_vm9  ;;  %vm3641_vm13 = vweird.f32 %v3567_v58 }
 0x593   : > { %v3627_v30 = vmul.f32 %v5033_v60, %v3626_v36  ;;  %v3316_v62 = vpop.xlane.xlu0 %3315  ;;  %v3624_v2 = vsel %vm3623_vm8, %v5031_v1, %v3620_v56 }
 0x594   : > { %4802 = vst [vmem:[%s6919_s15] sm:$0xff] %v4801_v23   ;;  %v3359_v9 = vmul.f32 0.0078125, %v3316_v62  ;;  %v3917_v42 = vmul.f32 %v3624_v2, %v6734_v40 }
 0x595   : > { %v3628_v18 = vmul.f32 0.5, %v3627_v30  ;;  %v3478_v44 = vpop.xlane.xlu2 %3477 }
 0x596   : > { %v6923_v3 = vsub.f32 %v6767_v19, %v3359_v9  ;;  %v3536_v21 = vmul.f32 0.0078125, %v3478_v44  ;;  %v3950_v27 = vmul.f32 %v6894_v46, %v3917_v42 }
 0x597   : > { %v3629_v49 = vsub.f32 1.5, %v3628_v18 }
 0x598   : > { %v5035_v32 = vpop.eup %5034  ;;  %v3568_v34 = vadd.f32 1e-05, %v3536_v21  ;;  %v3455_v53 = vmul.f32 %v6923_v3, %v6923_v3 }
 0x599   : > { %v3630_v31 = vmul.f32 %v5033_v60, %v3629_v49  ;;  %v3636_v59 = vmul.f32 %v5035_v32, %v3567_v58  ;;  %vm3642_vm12 = vweird.f32 %v5035_v32 }
 0x59a   : > { %5036 = vrsqrt.f32 %v3568_v34  ;;  %3507 = vadd.xlane.f32.xlu2 %v3455_v53  ;;  %vm3643_vm14 = vmor %vm3641_vm13, %vm3642_vm12  ;;  %vm3651_vm0 = vweird.f32 %v3568_v34 }
 0x59b   : > { %v3634_v1 = vsel %vm3633_vm11, %v5033_v60, %v3630_v31  ;;  %v3637_v37 = vmul.f32 %v5035_v32, %v3636_v59  ;;  %v3318_v19 = vpop.xlane.xlu1 %3317  ;;  %v3983_v60 = vadd.f32 %v6902_v57, %v3950_v27 }
 0x59c   : > { %v3918_v12 = vmul.f32 %v3634_v1, %v6744_v41  ;;  %v3360_v26 = vmul.f32 0.0078125, %v3318_v19 }
 0x59d   : > { %v3638_v20 = vmul.f32 0.5, %v3637_v37  ;;  %v3480_v40 = vpop.xlane.xlu0 %3479 }
 0x59e   : > { %v3951_v25 = vmul.f32 %v6894_v46, %v3918_v12  ;;  %v6932_v39 = vsub.f32 %v6777_v48, %v3360_v26  ;;  %v3537_v14 = vmul.f32 0.0078125, %v3480_v40 }
 0x59f   : > { %v3639_v15 = vsub.f32 1.5, %v3638_v20 }
 0x5a0   : > { %v5037_v33 = vpop.eup %5036  ;;  %v3984_v47 = vadd.f32 %v6902_v57, %v3951_v25  ;;  %v3569_v56 = vadd.f32 1e-05, %v3537_v14  ;;  %v3456_v41 = vmul.f32 %v6932_v39, %v6932_v39 }
 0x5a1   : > { %v3640_v36 = vmul.f32 %v5035_v32, %v3639_v15  ;;  %v3646_v23 = vmul.f32 %v5037_v33, %v3568_v34  ;;  %vm3652_vm15 = vweird.f32 %v5037_v33 }
 0x5a2   : > { %v4806_v30 = vpack.c.bf16 %v3984_v47, %v3983_v60  ;;  %5038 = vrsqrt.f32 %v3569_v56  ;;  %3509 = vadd.xlane.f32.xlu0 %v3456_v41  ;;  %vm3653_vm1 = vmor %vm3651_vm0, %vm3652_vm15  ;;  %vm3661_vm3 = vweird.f32 %v3569_v56 }
 0x5a3   : > { %v3647_v48 = vmul.f32 %v5037_v33, %v3646_v23  ;;  %v3320_v62 = vpop.xlane.xlu2 %3319  ;;  %v3644_v2 = vsel %vm3643_vm14, %v5035_v32, %v3640_v36 }
 0x5a4   : > { %4893 = vst [vmem:[%s6919_s15 + $0x8] sm:$0xff] %v4806_v30   ;;  %v3361_v9 = vmul.f32 0.0078125, %v3320_v62  ;;  %v3919_v31 = vmul.f32 %v3644_v2, %v6754_v38 }
 0x5a5   : > { %v3648_v18 = vmul.f32 0.5, %v3647_v48  ;;  %v3482_v44 = vpop.xlane.xlu1 %3481 }
 0x5a6   : > { %v6940_v21 = vsub.f32 %v6787_v16, %v3361_v9  ;;  %v3538_v49 = vmul.f32 0.0078125, %v3482_v44  ;;  %v3952_v27 = vmul.f32 %v6894_v46, %v3919_v31 }
 0x5a7   : > { %v3649_v42 = vsub.f32 1.5, %v3648_v18 }
 0x5a8   : > { %v5039_v53 = vpop.eup %5038  ;;  %v3570_v59 = vadd.f32 1e-05, %v3538_v49  ;;  %v3457_v58 = vmul.f32 %v6940_v21, %v6940_v21 }
 0x5a9   : > { %v3650_v1 = vmul.f32 %v5037_v33, %v3649_v42  ;;  %v3656_v37 = vmul.f32 %v5039_v53, %v3569_v56  ;;  %vm3662_vm2 = vweird.f32 %v5039_v53 }
 0x5aa   : > { %5040 = vrsqrt.f32 %v3570_v59  ;;  %3511 = vadd.xlane.f32.xlu1 %v3457_v58  ;;  %vm3663_vm4 = vmor %vm3661_vm3, %vm3662_vm2  ;;  %vm3671_vm6 = vweird.f32 %v3570_v59 }
 0x5ab   : > { %v3654_v32 = vsel %vm3653_vm1, %v5037_v33, %v3650_v1  ;;  %v3657_v19 = vmul.f32 %v5039_v53, %v3656_v37  ;;  %v3322_v16 = vpop.xlane.xlu0 %3321  ;;  %v3985_v33 = vadd.f32 %v6902_v57, %v3952_v27 }
 0x5ac   : > { %v3920_v12 = vmul.f32 %v3654_v32, %v6764_v50  ;;  %v3362_v26 = vmul.f32 0.0078125, %v3322_v16 }
 0x5ad   : > { %v3658_v20 = vmul.f32 0.5, %v3657_v19  ;;  %v3484_v38 = vpop.xlane.xlu2 %3483 }
 0x5ae   : > { %v3953_v40 = vmul.f32 %v6894_v46, %v3920_v12  ;;  %v6949_v25 = vsub.f32 %v6797_v28, %v3362_v26  ;;  %v3539_v34 = vmul.f32 0.0078125, %v3484_v38 }
 0x5af   : > { %v3659_v14 = vsub.f32 1.5, %v3658_v20 }
 0x5b0   : > { %v5041_v15 = vpop.eup %5040  ;;  %v3986_v60 = vadd.f32 %v6902_v57, %v3953_v40  ;;  %v3571_v47 = vadd.f32 1e-05, %v3539_v34  ;;  %v3458_v50 = vmul.f32 %v6949_v25, %v6949_v25 }
 0x5b1   : > { %v3660_v41 = vmul.f32 %v5039_v53, %v3659_v14  ;;  %v3666_v36 = vmul.f32 %v5041_v15, %v3570_v59  ;;  %vm3672_vm5 = vweird.f32 %v5041_v15 }
 0x5b2   : > { %v4811_v23 = vpack.c.bf16 %v3986_v60, %v3985_v33  ;;  %5042 = vrsqrt.f32 %v3571_v47  ;;  %3513 = vadd.xlane.f32.xlu2 %v3458_v50  ;;  %vm3673_vm7 = vmor %vm3671_vm6, %vm3672_vm5  ;;  %vm3681_vm9 = vweird.f32 %v3571_v47 }
 0x5b3   : > { %v3667_v28 = vmul.f32 %v5041_v15, %v3666_v36  ;;  %v3324_v30 = vpop.xlane.xlu1 %3323  ;;  %v3664_v62 = vsel %vm3663_vm4, %v5039_v53, %v3660_v41 }
 0x5b4   : > { %4894 = vst [vmem:[%s6919_s15 + $0x10] sm:$0xff] %v4811_v23   ;;  %v3363_v48 = vmul.f32 0.0078125, %v3324_v30  ;;  %v3921_v31 = vmul.f32 %v3664_v62, %v6774_v22 }
 0x5b5   : > { %v3668_v9 = vmul.f32 0.5, %v3667_v28  ;;  %v3486_v2 = vpop.xlane.xlu0 %3485 }
 0x5b6   : > { %v6957_v18 = vsub.f32 %v6807_v17, %v3363_v48  ;;  %v3540_v44 = vmul.f32 0.0078125, %v3486_v2  ;;  %v3954_v19 = vmul.f32 %v6894_v46, %v3921_v31 }
 0x5b7   : > { %v3669_v49 = vsub.f32 1.5, %v3668_v9 }
 0x5b8   : > { %v5043_v42 = vpop.eup %5042  ;;  %v3572_v58 = vadd.f32 1e-05, %v3540_v44  ;;  %v3459_v56 = vmul.f32 %v6957_v18, %v6957_v18  ;;  %v3987_v34 = vadd.f32 %v6902_v57, %v3954_v19 }
 0x5b9   : > { %v3670_v1 = vmul.f32 %v5041_v15, %v3669_v49  ;;  %v3676_v37 = vmul.f32 %v5043_v42, %v3571_v47  ;;  %vm3682_vm8 = vweird.f32 %v5043_v42 }
 0x5ba   : > { %5044 = vrsqrt.f32 %v3572_v58  ;;  %3515 = vadd.xlane.f32.xlu0 %v3459_v56  ;;  %vm3683_vm10 = vmor %vm3681_vm9, %vm3682_vm8  ;;  %vm3691_vm12 = vweird.f32 %v3572_v58 }
 0x5bb   : > { %v3674_v53 = vsel %vm3673_vm7, %v5041_v15, %v3670_v1  ;;  %v3677_v32 = vmul.f32 %v5043_v42, %v3676_v37  ;;  %v3326_v17 = vpop.xlane.xlu2 %3325 }
 0x5bc   : > { %v3922_v16 = vmul.f32 %v3674_v53, %v6784_v0  ;;  %v3364_v27 = vmul.f32 0.0078125, %v3326_v17 }
 0x5bd   : > { %v3678_v12 = vmul.f32 0.5, %v3677_v32  ;;  %v3488_v22 = vpop.xlane.xlu1 %3487 }
 0x5be   : > { %v3955_v26 = vmul.f32 %v6894_v46, %v3922_v16  ;;  %v6966_v20 = vsub.f32 %v6817_v8, %v3364_v27  ;;  %v3541_v59 = vmul.f32 0.0078125, %v3488_v22 }
 0x5bf   : > { %v3679_v38 = vsub.f32 1.5, %v3678_v12 }
 0x5c0   : > { %v5045_v40 = vpop.eup %5044  ;;  %v3988_v14 = vadd.f32 %v6902_v57, %v3955_v26  ;;  %v3573_v15 = vadd.f32 1e-05, %v3541_v59  ;;  %v3460_v0 = vmul.f32 %v6966_v20, %v6966_v20 }
 0x5c1   : > { %v3680_v33 = vmul.f32 %v5043_v42, %v3679_v38  ;;  %v3686_v60 = vmul.f32 %v5045_v40, %v3572_v58  ;;  %vm3692_vm11 = vweird.f32 %v5045_v40 }
 0x5c2   : > { %v4816_v50 = vpack.c.bf16 %v3988_v14, %v3987_v34  ;;  %5046 = vrsqrt.f32 %v3573_v15  ;;  %3517 = vadd.xlane.f32.xlu1 %v3460_v0  ;;  %vm3693_vm13 = vmor %vm3691_vm12, %vm3692_vm11  ;;  %vm3701_vm15 = vweird.f32 %v3573_v15 }
 0x5c3   : > { %v3687_v8 = vmul.f32 %v5045_v40, %v3686_v60  ;;  %v3328_v41 = vpop.xlane.xlu0 %3327  ;;  %v3684_v23 = vsel %vm3683_vm10, %v5043_v42, %v3680_v33 }
 0x5c4   : > { %4895 = vst [vmem:[%s6919_s15 + $0x18] sm:$0xff] %v4816_v50   ;;  %v3365_v36 = vmul.f32 0.0078125, %v3328_v41  ;;  %v3923_v44 = vmul.f32 %v3684_v23, %v6794_v24 }
 0x5c5   : > { %v3688_v28 = vmul.f32 0.5, %v3687_v8  ;;  %v3490_v30 = vpop.xlane.xlu2 %3489 }
 0x5c6   : > { %v6974_v48 = vsub.f32 %v6827_v45, %v3365_v36  ;;  %v3542_v62 = vmul.f32 0.0078125, %v3490_v30  ;;  %v3956_v37 = vmul.f32 %v6894_v46, %v3923_v44 }
 0x5c7   : > { %v3689_v9 = vsub.f32 1.5, %v3688_v28 }
 0x5c8   : > { %v5047_v2 = vpop.eup %5046  ;;  %v3574_v49 = vadd.f32 1e-05, %v3542_v62  ;;  %v3461_v47 = vmul.f32 %v6974_v48, %v6974_v48  ;;  %v3989_v22 = vadd.f32 %v6902_v57, %v3956_v37 }
 0x5c9   : > { %v3690_v31 = vmul.f32 %v5045_v40, %v3689_v9  ;;  %v3696_v56 = vmul.f32 %v5047_v2, %v3573_v15  ;;  %vm3702_vm14 = vweird.f32 %v5047_v2 }
 0x5ca   : > { %5048 = vrsqrt.f32 %v3574_v49  ;;  %3519 = vadd.xlane.f32.xlu2 %v3461_v47  ;;  %vm3703_vm0 = vmor %vm3701_vm15, %vm3702_vm14  ;;  %vm3711_vm2 = vweird.f32 %v3574_v49 }
 0x5cb   : > { %v3694_v42 = vsel %vm3693_vm13, %v5045_v40, %v3690_v31  ;;  %v3697_v1 = vmul.f32 %v5047_v2, %v3696_v56  ;;  %v3330_v45 = vpop.xlane.xlu1 %3329 }
 0x5cc   : > { %v3924_v53 = vmul.f32 %v3694_v42, %v6804_v4  ;;  %v3366_v32 = vmul.f32 0.0078125, %v3330_v45 }
 0x5cd   : > { %v3698_v17 = vmul.f32 0.5, %v3697_v1  ;;  %v3492_v24 = vpop.xlane.xlu0 %3491 }
 0x5ce   : > { %v3957_v19 = vmul.f32 %v6894_v46, %v3924_v53  ;;  %v6983_v16 = vsub.f32 %v6837_v29, %v3366_v32  ;;  %v3543_v58 = vmul.f32 0.0078125, %v3492_v24 }
 0x5cf   : > { %v3699_v27 = vsub.f32 1.5, %v3698_v17 }
 0x5d0   : > { %v5049_v12 = vpop.eup %5048  ;;  %v3990_v26 = vadd.f32 %v6902_v57, %v3957_v19  ;;  %v3575_v59 = vadd.f32 1e-05, %v3543_v58  ;;  %v3462_v4 = vmul.f32 %v6983_v16, %v6983_v16 }
 0x5d1   : > { %v3700_v38 = vmul.f32 %v5047_v2, %v3699_v27  ;;  %v3706_v40 = vmul.f32 %v5049_v12, %v3574_v49  ;;  %vm3712_vm1 = vweird.f32 %v5049_v12 }
 0x5d2   : > { %v4821_v34 = vpack.c.bf16 %v3990_v26, %v3989_v22  ;;  %5050 = vrsqrt.f32 %v3575_v59  ;;  %3521 = vadd.xlane.f32.xlu0 %v3462_v4  ;;  %vm3713_vm3 = vmor %vm3711_vm2, %vm3712_vm1  ;;  %vm3721_vm5 = vweird.f32 %v3575_v59 }
 0x5d3   : > { %v3707_v29 = vmul.f32 %v5049_v12, %v3706_v40  ;;  %v3332_v14 = vpop.xlane.xlu2 %3331  ;;  %v3704_v33 = vsel %vm3703_vm0, %v5047_v2, %v3700_v38 }
 0x5d4   : > { %4896 = vst [vmem:[%s6919_s15 + $0x20] sm:$0xff] %v4821_v34   ;;  %v3367_v0 = vmul.f32 0.0078125, %v3332_v14  ;;  %v3925_v28 = vmul.f32 %v3704_v33, %v6814_v51 }
 0x5d5   : > { %v3708_v60 = vmul.f32 0.5, %v3707_v29  ;;  %v3494_v50 = vpop.xlane.xlu1 %3493 }
 0x5d6   : > { %v6991_v8 = vsub.f32 %v6847_v10, %v3367_v0  ;;  %v3544_v41 = vmul.f32 0.0078125, %v3494_v50  ;;  %v3958_v47 = vmul.f32 %v6894_v46, %v3925_v28 }
 0x5d7   : > { %v3709_v36 = vsub.f32 1.5, %v3708_v60 }
 0x5d8   : > { %v5051_v23 = vpop.eup %5050  ;;  %v3576_v30 = vadd.f32 1e-05, %v3544_v41  ;;  %v3463_v15 = vmul.f32 %v6991_v8, %v6991_v8  ;;  %v3991_v37 = vadd.f32 %v6902_v57, %v3958_v47 }
 0x5d9   : > { %v3710_v62 = vmul.f32 %v5049_v12, %v3709_v36  ;;  %v3716_v9 = vmul.f32 %v5051_v23, %v3575_v59  ;;  %vm3722_vm4 = vweird.f32 %v5051_v23 }
 0x5da   : > { %5052 = vrsqrt.f32 %v3576_v30  ;;  %3523 = vadd.xlane.f32.xlu1 %v3463_v15  ;;  %vm3723_vm6 = vmor %vm3721_vm5, %vm3722_vm4  ;;  %vm3731_vm8 = vweird.f32 %v3576_v30 }
 0x5db   : > { %v3714_v2 = vsel %vm3713_vm3, %v5049_v12, %v3710_v62  ;;  %v3717_v44 = vmul.f32 %v5051_v23, %v3716_v9  ;;  %v3334_v10 = vpop.xlane.xlu0 %3333 }
 0x5dc   : > { %v3926_v31 = vmul.f32 %v3714_v2, %v6824_v63  ;;  %v3368_v56 = vmul.f32 0.0078125, %v3334_v10 }
 0x5dd   : > { %v3718_v42 = vmul.f32 0.5, %v3717_v44 }
 0x5de   : > { %v3959_v51 = vmul.f32 %v6894_v46, %v3926_v31  ;;  %v7000_v1 = vsub.f32 %v6854_v55, %v3368_v56 }
 0x5df   : > { %v3719_v49 = vsub.f32 1.5, %v3718_v42 }
 0x5e0   : > { %v5053_v45 = vpop.eup %5052  ;;  %v3992_v53 = vadd.f32 %v6902_v57, %v3959_v51  ;;  %v3464_v32 = vmul.f32 %v7000_v1, %v7000_v1 }
 0x5e1   : > { %v3720_v17 = vmul.f32 %v5051_v23, %v3719_v49  ;;  %v3726_v63 = vmul.f32 %v5053_v45, %v3576_v30  ;;  %vm3732_vm7 = vweird.f32 %v5053_v45 }
 0x5e2   : > { %v4826_v24 = vpack.c.bf16 %v3992_v53, %v3991_v37  ;;  %3525 = vadd.xlane.f32.xlu2 %v3464_v32  ;;  %vm3733_vm9 = vmor %vm3731_vm8, %vm3732_vm7 }
 0x5e3   : > { %v3727_v19 = vmul.f32 %v5053_v45, %v3726_v63  ;;  %v3336_v58 = vpop.xlane.xlu1 %3335  ;;  %v3724_v27 = vsel %vm3723_vm6, %v5051_v23, %v3720_v17 }
 0x5e4   : > { %4897 = vst [vmem:[%s6919_s15 + $0x28] sm:$0xff] %v4826_v24   ;;  %v3369_v55 = vmul.f32 0.0078125, %v3336_v58  ;;  %v3927_v40 = vmul.f32 %v3724_v27, %v6834_v6 }
 0x5e5   : > { %v3728_v12 = vmul.f32 0.5, %v3727_v19  ;;  %v3498_v22 = vpop.xlane.xlu0 %3497 }
 0x5e6   : > { %v7008_v26 = vsub.f32 %v6864_v35, %v3369_v55  ;;  %v3546_v4 = vmul.f32 0.0078125, %v3498_v22  ;;  %v3960_v33 = vmul.f32 %v6894_v46, %v3927_v40 }
 0x5e7   : > { %v3729_v38 = vsub.f32 1.5, %v3728_v12 }
 0x5e8   : > { %v3578_v34 = vadd.f32 1e-05, %v3546_v4  ;;  %v3465_v59 = vmul.f32 %v7008_v26, %v7008_v26  ;;  %v3993_v28 = vadd.f32 %v6902_v57, %v3960_v33 }
 0x5e9   : > { %v3730_v29 = vmul.f32 %v5053_v45, %v3729_v38 }
 0x5ea   : > { %5054 = vrsqrt.f32 %v3578_v34  ;;  %3527 = vadd.xlane.f32.xlu0 %v3465_v59  ;;  %vm3751_vm11 = vweird.f32 %v3578_v34 }
 0x5eb   : > { %v3734_v14 = vsel %vm3733_vm9, %v5053_v45, %v3730_v29  ;;  %v3338_v0 = vpop.xlane.xlu2 %3337 }
 0x5ec   : > { %v3928_v35 = vmul.f32 %v3734_v14, %v6844_v5  ;;  %v3370_v60 = vmul.f32 0.0078125, %v3338_v0 }
 0x5ed   : > { %v3500_v50 = vpop.xlane.xlu1 %3499 }
 0x5ee   : > { %v3961_v6 = vmul.f32 %v6894_v46, %v3928_v35  ;;  %v7017_v41 = vsub.f32 %v6873_v54, %v3370_v60  ;;  %v3547_v36 = vmul.f32 0.0078125, %v3500_v50 }
 0x5f0   : > { %v5055_v23 = vpop.eup %5054  ;;  %v3994_v30 = vadd.f32 %v6902_v57, %v3961_v6  ;;  %v3579_v15 = vadd.f32 1e-05, %v3547_v36  ;;  %v3466_v62 = vmul.f32 %v7017_v41, %v7017_v41 }
 0x5f1   : > { %v3746_v9 = vmul.f32 %v5055_v23, %v3578_v34  ;;  %vm3752_vm10 = vweird.f32 %v5055_v23 }
 0x5f2   : > { %v4831_v5 = vpack.c.bf16 %v3994_v30, %v3993_v28  ;;  %5056 = vrsqrt.f32 %v3579_v15  ;;  %3529 = vadd.xlane.f32.xlu1 %v3466_v62  ;;  %vm3753_vm12 = vmor %vm3751_vm11, %vm3752_vm10  ;;  %vm3761_vm1 = vweird.f32 %v3579_v15 }
 0x5f3   : > { %v3747_v2 = vmul.f32 %v5055_v23, %v3746_v9  ;;  %v3496_v44 = vpop.xlane.xlu2 %3495 }
 0x5f4   : > { %4898 = vst [vmem:[%s6919_s15 + $0x30] sm:$0xff] %v4831_v5   ;;  %v3545_v10 = vmul.f32 0.0078125, %v3496_v44 }
 0x5f5   : > { %v3748_v47 = vmul.f32 0.5, %v3747_v2 }
 0x5f6   : > { %v3577_v54 = vadd.f32 1e-05, %v3545_v10 }
 0x5f7   : > { %v3749_v42 = vsub.f32 1.5, %v3748_v47 }
 0x5f8   : > { %v5057_v31 = vpop.eup %5056  ;;  %5058 = vrsqrt.f32 %v3577_v54  ;;  %vm3741_vm14 = vweird.f32 %v3577_v54 }
 0x5f9   : > { %v3756_v56 = vmul.f32 %v5057_v31, %v3579_v15  ;;  %v3750_v63 = vmul.f32 %v5055_v23, %v3749_v42  ;;  %vm3762_vm15 = vweird.f32 %v5057_v31 }
 0x5fa   : > { %vm3763_vm2 = vmor %vm3761_vm1, %vm3762_vm15 }
 0x5fb   : > { %v3757_v51 = vmul.f32 %v5057_v31, %v3756_v56  ;;  %v3502_v49 = vpop.xlane.xlu2 %3501  ;;  %v3754_v27 = vsel %vm3753_vm12, %v5055_v23, %v3750_v63 }
 0x5fc   : > { %v3548_v45 = vmul.f32 0.0078125, %v3502_v49  ;;  %v3930_v59 = vmul.f32 %v3754_v27, %v6861_v7 }
 0x5fd   : > { %v3504_v37 = vpop.xlane.xlu0 %3503  ;;  %v3758_v24 = vmul.f32 0.5, %v3757_v51 }
 0x5fe   : > { %v5059_v53 = vpop.eup %5058  ;;  %v3580_v32 = vadd.f32 1e-05, %v3548_v45  ;;  %v3549_v17 = vmul.f32 0.0078125, %v3504_v37  ;;  %v3963_v36 = vmul.f32 %v6894_v46, %v3930_v59 }
 0x5ff   : > { %v3736_v19 = vmul.f32 %v5059_v53, %v3577_v54  ;;  %v3759_v12 = vsub.f32 1.5, %v3758_v24  ;;  %vm3742_vm13 = vweird.f32 %v5059_v53 }
 0x600   : > { %5060 = vrsqrt.f32 %v3580_v32  ;;  %v3581_v58 = vadd.f32 1e-05, %v3549_v17  ;;  %vm3743_vm0 = vmor %vm3741_vm14, %vm3742_vm13  ;;  %v3996_v15 = vadd.f32 %v6902_v57, %v3963_v36  ;;  %vm3771_vm4 = vweird.f32 %v3580_v32 }
 0x601   : > { %v3737_v55 = vmul.f32 %v5059_v53, %v3736_v19  ;;  %v3760_v14 = vmul.f32 %v5057_v31, %v3759_v12 }
 0x602   : > { %5062 = vrsqrt.f32 %v3581_v58  ;;  %vm3781_vm7 = vweird.f32 %v3581_v58 }
 0x603   : > { %v3738_v22 = vmul.f32 0.5, %v3737_v55  ;;  %v3764_v7 = vsel %vm3763_vm2, %v5057_v31, %v3760_v14 }
 0x604   : > { %v3931_v44 = vmul.f32 %v3764_v7, %v6870_v52 }
 0x605   : > { %v3739_v4 = vsub.f32 1.5, %v3738_v22  ;;  %v3506_v38 = vpop.xlane.xlu1 %3505 }
 0x606   : > { %v5061_v40 = vpop.eup %5060  ;;  %v3550_v29 = vmul.f32 0.0078125, %v3506_v38  ;;  %v3964_v37 = vmul.f32 %v6894_v46, %v3931_v44 }
 0x607   : > { %v3740_v0 = vmul.f32 %v5059_v53, %v3739_v4  ;;  %v3766_v33 = vmul.f32 %v5061_v40, %v3580_v32  ;;  %vm3772_vm3 = vweird.f32 %v5061_v40 }
 0x608   : > { %v5063_v35 = vpop.eup %5062  ;;  %v3582_v34 = vadd.f32 1e-05, %v3550_v29  ;;  %vm3773_vm5 = vmor %vm3771_vm4, %vm3772_vm3  ;;  %v3997_v19 = vadd.f32 %v6902_v57, %v3964_v37 }
 0x609   : > { %v3744_v60 = vsel %vm3743_vm0, %v5059_v53, %v3740_v0  ;;  %v3767_v50 = vmul.f32 %v5061_v40, %v3766_v33  ;;  %v3776_v6 = vmul.f32 %v5063_v35, %v3581_v58  ;;  %vm3782_vm6 = vweird.f32 %v5063_v35 }
 0x60a   : > { %v3929_v23 = vmul.f32 %v3744_v60, %v6879_v61  ;;  %5064 = vrsqrt.f32 %v3582_v34  ;;  %vm3783_vm8 = vmor %vm3781_vm7, %vm3782_vm6  ;;  %vm3791_vm10 = vweird.f32 %v3582_v34 }
 0x60b   : > { %v3768_v28 = vmul.f32 0.5, %v3767_v50  ;;  %v3777_v30 = vmul.f32 %v5063_v35, %v3776_v6 }
 0x60c   : > { %v3962_v62 = vmul.f32 %v6894_v46, %v3929_v23 }
 0x60d   : > { %v3769_v9 = vsub.f32 1.5, %v3768_v28  ;;  %v3778_v5 = vmul.f32 0.5, %v3777_v30  ;;  %v3508_v2 = vpop.xlane.xlu2 %3507 }
 0x60e   : > { %v3995_v10 = vadd.f32 %v6902_v57, %v3962_v62  ;;  %v3551_v54 = vmul.f32 0.0078125, %v3508_v2 }
 0x60f   : > { %v3770_v47 = vmul.f32 %v5061_v40, %v3769_v9  ;;  %v3779_v61 = vsub.f32 1.5, %v3778_v5 }
 0x610   : > { %v5065_v31 = vpop.eup %5064  ;;  %v4836_v56 = vpack.c.bf16 %v3996_v15, %v3995_v10  ;;  %v3583_v42 = vadd.f32 1e-05, %v3551_v54 }
 0x611   : > { %v3774_v51 = vsel %vm3773_vm5, %v5061_v40, %v3770_v47  ;;  %v3780_v49 = vmul.f32 %v5063_v35, %v3779_v61  ;;  %v3786_v45 = vmul.f32 %v5065_v31, %v3582_v34  ;;  %vm3792_vm9 = vweird.f32 %v5065_v31 }
 0x612   : > { %4899 = vst [vmem:[%s6919_s15 + $0x38] sm:$0xff] %v4836_v56   ;;  %v3932_v53 = vmul.f32 %v3774_v51, %v6884_v43  ;;  %5066 = vrsqrt.f32 %v3583_v42  ;;  %vm3793_vm11 = vmor %vm3791_vm10, %vm3792_vm9  ;;  %vm3801_vm13 = vweird.f32 %v3583_v42 }
 0x613   : > { %v3787_v52 = vmul.f32 %v5065_v31, %v3786_v45  ;;  %v3784_v32 = vsel %vm3783_vm8, %v5063_v35, %v3780_v49 }
 0x614   : > { %v3965_v17 = vmul.f32 %v6894_v46, %v3932_v53  ;;  %v3933_v43 = vmul.f32 %v3784_v32, %v6887_v11 }
 0x615   : > { %v3788_v63 = vmul.f32 0.5, %v3787_v52  ;;  %v3510_v24 = vpop.xlane.xlu0 %3509 }
 0x616   : > { %v3998_v55 = vadd.f32 %v6902_v57, %v3965_v17  ;;  %v3552_v27 = vmul.f32 0.0078125, %v3510_v24  ;;  %v3966_v14 = vmul.f32 %v6894_v46, %v3933_v43 }
 0x617   : > { %v3789_v12 = vsub.f32 1.5, %v3788_v63 }
 0x618   : > { %v5067_v22 = vpop.eup %5066  ;;  %v4841_v4 = vpack.c.bf16 %v3998_v55, %v3997_v19  ;;  %v3584_v58 = vadd.f32 1e-05, %v3552_v27  ;;  %v3999_v34 = vadd.f32 %v6902_v57, %v3966_v14 }
 0x619   : > { %v3790_v38 = vmul.f32 %v5065_v31, %v3789_v12  ;;  %v3796_v40 = vmul.f32 %v5067_v22, %v3583_v42  ;;  %vm3802_vm12 = vweird.f32 %v5067_v22 }
 0x61a   : > { %4900 = vst [vmem:[%s6919_s15 + $0x40] sm:$0xff] %v4841_v4   ;;  %5068 = vrsqrt.f32 %v3584_v58  ;;  %vm3803_vm14 = vmor %vm3801_vm13, %vm3802_vm12  ;;  %vm3811_vm0 = vweird.f32 %v3584_v58 }
 0x61b   : > { %v3794_v59 = vsel %vm3793_vm11, %v5065_v31, %v3790_v38  ;;  %v3797_v29 = vmul.f32 %v5067_v22, %v3796_v40 }
 0x61c   : > { %v3934_v0 = vmul.f32 %v3794_v59, %v6908_v13 }
 0x61d   : > { %v3798_v33 = vmul.f32 0.5, %v3797_v29  ;;  %v3512_v35 = vpop.xlane.xlu1 %3511 }
 0x61e   : > { %v3967_v60 = vmul.f32 %v6894_v46, %v3934_v0  ;;  %v3553_v50 = vmul.f32 0.0078125, %v3512_v35 }
 0x61f   : > { %v3799_v11 = vsub.f32 1.5, %v3798_v33 }
 0x620   : > { %v5069_v6 = vpop.eup %5068  ;;  %v4000_v36 = vadd.f32 %v6902_v57, %v3967_v60  ;;  %v3585_v23 = vadd.f32 1e-05, %v3553_v50 }
 0x621   : > { %v3800_v7 = vmul.f32 %v5067_v22, %v3799_v11  ;;  %v3806_v28 = vmul.f32 %v5069_v6, %v3584_v58  ;;  %vm3812_vm15 = vweird.f32 %v5069_v6 }
 0x622   : > { %v4846_v30 = vpack.c.bf16 %v4000_v36, %v3999_v34  ;;  %5070 = vrsqrt.f32 %v3585_v23  ;;  %vm3813_vm1 = vmor %vm3811_vm0, %vm3812_vm15  ;;  %vm3821_vm3 = vweird.f32 %v3585_v23 }
 0x623   : > { %v3807_v13 = vmul.f32 %v5069_v6, %v3806_v28  ;;  %v3804_v62 = vsel %vm3803_vm14, %v5067_v22, %v3800_v7 }
 0x624   : > { %4901 = vst [vmem:[%s6919_s15 + $0x48] sm:$0xff] %v4846_v30   ;;  %v3935_v10 = vmul.f32 %v3804_v62, %v6923_v3 }
 0x625   : > { %v3808_v9 = vmul.f32 0.5, %v3807_v13  ;;  %v3514_v5 = vpop.xlane.xlu2 %3513 }
 0x626   : > { %v3554_v2 = vmul.f32 0.0078125, %v3514_v5  ;;  %v3968_v42 = vmul.f32 %v6894_v46, %v3935_v10 }
 0x627   : > { %v3809_v15 = vsub.f32 1.5, %v3808_v9 }
 0x628   : > { %v5071_v44 = vpop.eup %5070  ;;  %v3586_v54 = vadd.f32 1e-05, %v3554_v2  ;;  %v4001_v17 = vadd.f32 %v6902_v57, %v3968_v42 }
 0x629   : > { %v3810_v47 = vmul.f32 %v5069_v6, %v3809_v15  ;;  %v3816_v61 = vmul.f32 %v5071_v44, %v3585_v23  ;;  %vm3822_vm2 = vweird.f32 %v5071_v44 }
 0x62a   : > { %5072 = vrsqrt.f32 %v3586_v54  ;;  %vm3823_vm4 = vmor %vm3821_vm3, %vm3822_vm2  ;;  %vm3831_vm6 = vweird.f32 %v3586_v54 }
 0x62b   : > { %v3814_v31 = vsel %vm3813_vm1, %v5069_v6, %v3810_v47  ;;  %v3817_v56 = vmul.f32 %v5071_v44, %v3816_v61 }
 0x62c   : > { %v3936_v51 = vmul.f32 %v3814_v31, %v6932_v39 }
 0x62d   : > { %v3818_v49 = vmul.f32 0.5, %v3817_v56  ;;  %v3516_v45 = vpop.xlane.xlu0 %3515  ;;  %v7063_v56 = vld [vmem:[%s7100_s2 + $0x4] ss:$0 sm:$0xff] }
 0x62e   : > { %v3969_v37 = vmul.f32 %v6894_v46, %v3936_v51  ;;  %v3555_v53 = vmul.f32 0.0078125, %v3516_v45 }
 0x62f   : > { %v3819_v52 = vsub.f32 1.5, %v3818_v49 }
 0x630   : > { %v5073_v3 = vpop.eup %5072  ;;  %v4002_v32 = vadd.f32 %v6902_v57, %v3969_v37  ;;  %v3587_v63 = vadd.f32 1e-05, %v3555_v53 }
 0x631   : > { %v3820_v24 = vmul.f32 %v5071_v44, %v3819_v52  ;;  %v3826_v19 = vmul.f32 %v5073_v3, %v3586_v54  ;;  %vm3832_vm5 = vweird.f32 %v5073_v3 }
 0x632   : > { %v4851_v55 = vpack.c.bf16 %v4002_v32, %v4001_v17  ;;  %5074 = vrsqrt.f32 %v3587_v63  ;;  %vm3833_vm7 = vmor %vm3831_vm6, %vm3832_vm5  ;;  %vm3841_vm9 = vweird.f32 %v3587_v63 }
 0x633   : > { %v3827_v39 = vmul.f32 %v5073_v3, %v3826_v19  ;;  %v3824_v27 = vsel %vm3823_vm4, %v5071_v44, %v3820_v24 }
 0x634   : > { %4902 = vst [vmem:[%s6919_s15 + $0x50] sm:$0xff] %v4851_v55   ;;  %v3937_v38 = vmul.f32 %v3824_v27, %v6940_v21 }
 0x635   : > { %v3828_v12 = vmul.f32 0.5, %v3827_v39  ;;  %v3518_v22 = vpop.xlane.xlu1 %3517 }
 0x636   : > { %v3556_v4 = vmul.f32 0.0078125, %v3518_v22  ;;  %v3970_v33 = vmul.f32 %v6894_v46, %v3937_v38 }
 0x637   : > { %v3829_v43 = vsub.f32 1.5, %v3828_v12 }
 0x638   : > { %v5075_v58 = vpop.eup %5074  ;;  %v3588_v40 = vadd.f32 1e-05, %v3556_v4  ;;  %v4003_v36 = vadd.f32 %v6902_v57, %v3970_v33 }
 0x639   : > { %v3830_v59 = vmul.f32 %v5073_v3, %v3829_v43  ;;  %v3836_v29 = vmul.f32 %v5075_v58, %v3587_v63  ;;  %vm3842_vm8 = vweird.f32 %v5075_v58 }
 0x63a   : > { %5076 = vrsqrt.f32 %v3588_v40  ;;  %vm3843_vm10 = vmor %vm3841_vm9, %vm3842_vm8  ;;  %vm3851_vm12 = vweird.f32 %v3588_v40 }
 0x63b   : > { %v3834_v14 = vsel %vm3833_vm7, %v5073_v3, %v3830_v59  ;;  %v3837_v0 = vmul.f32 %v5075_v58, %v3836_v29 }
 0x63c   : > { %v3938_v35 = vmul.f32 %v3834_v14, %v6949_v25 }
 0x63d   : > { %v3838_v60 = vmul.f32 0.5, %v3837_v0  ;;  %v3520_v50 = vpop.xlane.xlu2 %3519 }
 0x63e   : > { %v3971_v11 = vmul.f32 %v6894_v46, %v3938_v35  ;;  %v3557_v6 = vmul.f32 0.0078125, %v3520_v50 }
 0x63f   : > { %v3839_v34 = vsub.f32 1.5, %v3838_v60 }
 0x640   : > { %v5077_v21 = vpop.eup %5076  ;;  %v4004_v23 = vadd.f32 %v6902_v57, %v3971_v11  ;;  %v3589_v7 = vadd.f32 1e-05, %v3557_v6  ;;  %v5095_v11 = vld [vmem:[%s7100_s2 + $0x5] ss:$0 sm:$0xff] }
 0x641   : > { %v3840_v28 = vmul.f32 %v5075_v58, %v3839_v34  ;;  %v3846_v30 = vmul.f32 %v5077_v21, %v3588_v40  ;;  %vm3852_vm11 = vweird.f32 %v5077_v21 }
 0x642   : > { %v4856_v13 = vpack.c.bf16 %v4004_v23, %v4003_v36  ;;  %5078 = vrsqrt.f32 %v3589_v7  ;;  %vm3853_vm13 = vmor %vm3851_vm12, %vm3852_vm11  ;;  %vm3861_vm15 = vweird.f32 %v3589_v7 }
 0x643   : > { %v3847_v25 = vmul.f32 %v5077_v21, %v3846_v30  ;;  %v3844_v62 = vsel %vm3843_vm10, %v5075_v58, %v3840_v28 }
 0x644   : > { %4903 = vst [vmem:[%s6919_s15 + $0x58] sm:$0xff] %v4856_v13   ;;  %v3939_v44 = vmul.f32 %v3844_v62, %v6957_v18 }
 0x645   : > { %v3848_v9 = vmul.f32 0.5, %v3847_v25  ;;  %v3522_v46 = vpop.xlane.xlu0 %3521 }
 0x646   : > { %v3558_v5 = vmul.f32 0.0078125, %v3522_v46  ;;  %v3972_v42 = vmul.f32 %v7063_v56, %v3939_v44 }
 0x647   : > { %v3849_v2 = vsub.f32 1.5, %v3848_v9 }
 0x648   : > { %v5079_v15 = vpop.eup %5078  ;;  %v3590_v10 = vadd.f32 1e-05, %v3558_v5  ;;  %v4005_v3 = vadd.f32 %v6902_v57, %v3972_v42 }
 0x649   : > { %v3850_v54 = vmul.f32 %v5077_v21, %v3849_v2  ;;  %v3856_v47 = vmul.f32 %v5079_v15, %v3589_v7  ;;  %vm3862_vm14 = vweird.f32 %v5079_v15 }
 0x64a   : > { %5080 = vrsqrt.f32 %v3590_v10  ;;  %vm3863_vm0 = vmor %vm3861_vm15, %vm3862_vm14  ;;  %vm3871_vm2 = vweird.f32 %v3590_v10 }
 0x64b   : > { %v3854_v61 = vsel %vm3853_vm13, %v5077_v21, %v3850_v54  ;;  %v3857_v31 = vmul.f32 %v5079_v15, %v3856_v47 }
 0x64c   : > { %v3940_v51 = vmul.f32 %v3854_v61, %v6966_v20 }
 0x64d   : > { %v3858_v49 = vmul.f32 0.5, %v3857_v31  ;;  %v3524_v18 = vpop.xlane.xlu1 %3523 }
 0x64e   : > { %v3973_v45 = vmul.f32 %v7063_v56, %v3940_v51  ;;  %v3559_v37 = vmul.f32 0.0078125, %v3524_v18 }
 0x64f   : > { %v3859_v53 = vsub.f32 1.5, %v3858_v49 }
 0x650   : > { %v5081_v52 = vpop.eup %5080  ;;  %v4006_v17 = vadd.f32 %v6902_v57, %v3973_v45  ;;  %v3591_v32 = vadd.f32 1e-05, %v3559_v37 }
 0x651   : > { %v3860_v63 = vmul.f32 %v5079_v15, %v3859_v53  ;;  %v3866_v24 = vmul.f32 %v5081_v52, %v3590_v10  ;;  %vm3872_vm1 = vweird.f32 %v5081_v52 }
 0x652   : > { %v4861_v19 = vpack.c.bf16 %v4006_v17, %v4005_v3  ;;  %5082 = vrsqrt.f32 %v3591_v32  ;;  %vm3873_vm3 = vmor %vm3871_vm2, %vm3872_vm1  ;;  %vm3881_vm5 = vweird.f32 %v3591_v32 }
 0x653   : > { %v3867_v20 = vmul.f32 %v5081_v52, %v3866_v24  ;;  %v3864_v55 = vsel %vm3863_vm0, %v5079_v15, %v3860_v63 }
 0x654   : > { %4904 = vst [vmem:[%s6919_s15 + $0x60] sm:$0xff] %v4861_v19   ;;  %v3941_v43 = vmul.f32 %v3864_v55, %v6974_v48 }
 0x655   : > { %v3868_v39 = vmul.f32 0.5, %v3867_v20  ;;  %v3526_v27 = vpop.xlane.xlu2 %3525 }
 0x656   : > { %v3560_v12 = vmul.f32 0.0078125, %v3526_v27  ;;  %v3974_v29 = vmul.f32 %v7063_v56, %v3941_v43 }
 0x657   : > { %v3869_v22 = vsub.f32 1.5, %v3868_v39 }
 0x658   : > { %v5083_v4 = vpop.eup %5082  ;;  %v3592_v57 = vadd.f32 1e-05, %v3560_v12  ;;  %v4007_v6 = vadd.f32 %v5095_v11, %v3974_v29 }
 0x659   : > { %v3870_v58 = vmul.f32 %v5081_v52, %v3869_v22  ;;  %v3876_v38 = vmul.f32 %v5083_v4, %v3591_v32  ;;  %vm3882_vm4 = vweird.f32 %v5083_v4 }
 0x65a   : > { %5084 = vrsqrt.f32 %v3592_v57  ;;  %vm3883_vm6 = vmor %vm3881_vm5, %vm3882_vm4  ;;  %vm3891_vm8 = vweird.f32 %v3592_v57 }
 0x65b   : > { %v3874_v40 = vsel %vm3873_vm3, %v5081_v52, %v3870_v58  ;;  %v3877_v59 = vmul.f32 %v5083_v4, %v3876_v38 }
 0x65c   : > { %v3942_v14 = vmul.f32 %v3874_v40, %v6983_v16 }
 0x65d   : > { %v3878_v0 = vmul.f32 0.5, %v3877_v59  ;;  %v3528_v33 = vpop.xlane.xlu0 %3527 }
 0x65e   : > { %v3975_v35 = vmul.f32 %v7063_v56, %v3942_v14  ;;  %v3561_v60 = vmul.f32 0.0078125, %v3528_v33 }
 0x65f   : > { %v3879_v50 = vsub.f32 1.5, %v3878_v0 }
 0x660   : > { %v5085_v48 = vpop.eup %5084  ;;  %v4008_v34 = vadd.f32 %v5095_v11, %v3975_v35  ;;  %v3593_v21 = vadd.f32 1e-05, %v3561_v60 }
 0x661   : > { %v3880_v36 = vmul.f32 %v5083_v4, %v3879_v50  ;;  %v3886_v23 = vmul.f32 %v5085_v48, %v3592_v57  ;;  %vm3892_vm7 = vweird.f32 %v5085_v48 }
 0x662   : > { %v4866_v7 = vpack.c.bf16 %v4008_v34, %v4007_v6  ;;  %5086 = vrsqrt.f32 %v3593_v21  ;;  %vm3893_vm9 = vmor %vm3891_vm8, %vm3892_vm7  ;;  %vm3901_vm11 = vweird.f32 %v3593_v21 }
 0x663   : > { %v3887_v16 = vmul.f32 %v5085_v48, %v3886_v23  ;;  %v3884_v28 = vsel %vm3883_vm6, %v5083_v4, %v3880_v36 }
 0x664   : > { %4905 = vst [vmem:[%s6919_s15 + $0x68] sm:$0xff] %v4866_v7   ;;  %v3943_v46 = vmul.f32 %v3884_v28, %v6991_v8 }
 0x665   : > { %v3888_v30 = vmul.f32 0.5, %v3887_v16  ;;  %v3530_v13 = vpop.xlane.xlu1 %3529 }
 0x666   : > { %v3562_v25 = vmul.f32 0.0078125, %v3530_v13  ;;  %v3976_v54 = vmul.f32 %v7063_v56, %v3943_v46 }
 0x667   : > { %v3889_v62 = vsub.f32 1.5, %v3888_v30 }
 0x668   : > { %v5087_v9 = vpop.eup %5086  ;;  %v3594_v5 = vadd.f32 1e-05, %v3562_v25  ;;  %v4009_v49 = vadd.f32 %v5095_v11, %v3976_v54 }
 0x669   : > { %v3890_v2 = vmul.f32 %v5085_v48, %v3889_v62  ;;  %v3896_v15 = vmul.f32 %v5087_v9, %v3593_v21  ;;  %vm3902_vm10 = vweird.f32 %v5087_v9 }
 0x66a   : > { %5088 = vrsqrt.f32 %v3594_v5  ;;  %vm3903_vm12 = vmor %vm3901_vm11, %vm3902_vm10  ;;  %vm3911_vm14 = vweird.f32 %v3594_v5 }
 0x66b   : > { %v3894_v44 = vsel %vm3893_vm9, %v5085_v48, %v3890_v2  ;;  %v3897_v10 = vmul.f32 %v5087_v9, %v3896_v15 }
 0x66c   : > { %v3944_v47 = vmul.f32 %v3894_v44, %v7000_v1 }
 0x66d   : > { %v3898_v61 = vmul.f32 0.5, %v3897_v10 }
 0x66e   : > { %v3977_v31 = vmul.f32 %v7063_v56, %v3944_v47 }
 0x66f   : > { %v3899_v42 = vsub.f32 1.5, %v3898_v61 }
 0x670   : > { %v5089_v51 = vpop.eup %5088  ;;  %v4010_v8 = vadd.f32 %v5095_v11, %v3977_v31 }
 0x671   : > { %v3900_v18 = vmul.f32 %v5087_v9, %v3899_v42  ;;  %v3906_v45 = vmul.f32 %v5089_v51, %v3594_v5  ;;  %vm3912_vm13 = vweird.f32 %v5089_v51 }
 0x672   : > { %v4871_v37 = vpack.c.bf16 %v4010_v8, %v4009_v49  ;;  %vm3913_vm15 = vmor %vm3911_vm14, %vm3912_vm13 }
 0x673   : > { %v3907_v53 = vmul.f32 %v5089_v51, %v3906_v45  ;;  %v3904_v52 = vsel %vm3903_vm12, %v5087_v9, %v3900_v18 }
 0x674   : > { %4906 = vst [vmem:[%s6919_s15 + $0x70] sm:$0xff] %v4871_v37   ;;  %v3945_v1 = vmul.f32 %v3904_v52, %v7008_v26 }
 0x675   : > { %v3908_v3 = vmul.f32 0.5, %v3907_v53 }
 0x676   : > { %v3978_v24 = vmul.f32 %v7063_v56, %v3945_v1 }
 0x677   : > { %v3909_v17 = vsub.f32 1.5, %v3908_v3 }
 0x678   : > { %v4011_v55 = vadd.f32 %v5095_v11, %v3978_v24 }
 0x679   : > { %v3910_v32 = vmul.f32 %v5089_v51, %v3909_v17 }
 0x67b   : > { %v3914_v63 = vsel %vm3913_vm15, %v5089_v51, %v3910_v32 }
 0x67c   : > { %v3946_v19 = vmul.f32 %v3914_v63, %v7017_v41 }
 0x67e   : > { %v3979_v20 = vmul.f32 %v7063_v56, %v3946_v19 }
 0x680   : > { %v4012_v39 = vadd.f32 %v5095_v11, %v3979_v20 }
 0x682   : > { %v4876_v27 = vpack.c.bf16 %v4012_v39, %v4011_v55 }
 0x684   : > { %4907 = vst [vmem:[%s6919_s15 + $0x78] sm:$0xff] %v4876_v27  }
 0x685 PF: > { %s16_s23 = sadd.s32 1, %s5118_s23   ;;  %s7297_s21 = smov %s5114_s22 }
 0x686   : > { %p13_p5 = scmp.ge.s32.totalorder %s16_s23, 4   ;;  %s7298_s22 = smov %s7300_s24 }
 0x688   :  { %15 = sbr.rel (!%p13_p5) target bundleno = 2 (0x2), region = 91 }

</bundles_post_ra>
